<compile_context>
chip_gen: v5e
topology: v5e:2x2
jax: 0.10.0
libtpu: 0.0.40
codegen_flags: <defaults>
</compile_context>

<pallas_src>
import jax
import jax.numpy as jnp
from jax.experimental import pallas as pl
from jax.experimental.pallas import tpu as pltpu


def _round_up(n, m):
    return ((n + m - 1) // m) * m


def _pad_to(a, shape):
    pads = [(0, s - d) for d, s in zip(a.shape, shape)]
    return jnp.pad(a, pads)


# --------------------------------------------------------------------------- #
# Kernel: fused 7-layer MLP on one batch tile, all weights resident in VMEM.
# --------------------------------------------------------------------------- #
def _mlp_kernel(x_ref, w1_ref, b1_ref, wh_ref, bh_ref, wo_ref, bo_ref, out_ref):
    cdtype = w1_ref.dtype  # compute dtype for the MXU (bf16 default, f32 optional)

    # Layer 1: (tile, D_in) @ (D_in, H_pad), f32 accumulate, bias + ReLU in f32.
    h = jnp.dot(x_ref[...].astype(cdtype), w1_ref[...],
                preferred_element_type=jnp.float32)
    h = jnp.maximum(h + b1_ref[...], 0.0)

    # Layers 2..6: statically unrolled over the stacked (5, H_pad, H_pad) weights.
    for k in range(5):
        y = jnp.dot(h.astype(cdtype), wh_ref[k],
                    preferred_element_type=jnp.float32)
        h = jnp.maximum(y + bh_ref[k], 0.0)

    # Output layer (classifier dim lane-dense padded to 128 -> unmasked vst).
    logits = jnp.dot(h.astype(cdtype), wo_ref[...],
                     preferred_element_type=jnp.float32)
    out_ref[...] = (logits + bo_ref[...]).astype(out_ref.dtype)


# --------------------------------------------------------------------------- #
# One-time weight preparation (hoisted out of the forward call path).
# --------------------------------------------------------------------------- #
def prepare_params(params, *, compute_dtype=jnp.bfloat16):
    """Pad / stack / cast the raw params ONCE.

    params: dict with w1..w6 of shape (in, out), b1..b6 of shape (1, out),
            wo (H, C), bo (1, C), all float32.
    Returns a dict of device arrays ready for deep_nn_forward.
    """
    D_in, H = params["w1"].shape
    C = params["wo"].shape[1]
    H_pad = _round_up(H, 128)   # hidden width lane-dense
    C_pad = _round_up(C, 128)   # classifier dim lane-dense (10 -> 128)
    f32 = jnp.float32
    return {
        # NOTE: input-feature dim intentionally NOT padded (full-extent block).
        "w1": _pad_to(params["w1"], (D_in, H_pad)).astype(compute_dtype),
        "b1": _pad_to(params["b1"], (1, H_pad)).astype(f32),
        "wh": jnp.stack([_pad_to(params[f"w{k}"], (H_pad, H_pad))
                         for k in range(2, 7)]).astype(compute_dtype),   # (5,H,H)
        "bh": jnp.stack([_pad_to(params[f"b{k}"], (1, H_pad))
                         for k in range(2, 7)]).astype(f32),             # (5,1,H)
        "wo": _pad_to(params["wo"], (H_pad, C_pad)).astype(compute_dtype),
        "bo": _pad_to(params["bo"], (1, C_pad)).astype(f32),
        "num_classes": int(C),
        "input_size": int(D_in),
    }


def _pick_batch_tile(batch, *, max_tile=1024, min_steps=4):
    """Multiple of 128, capped at 1024, sized so the grid has >= min_steps steps
    (>= 2 pipelined steps per TensorCore on v7x under dimension_semantics=parallel)."""
    tile = _round_up(max(batch // min_steps, 1), 128)
    tile = max(128, min(tile, max_tile))
    return min(tile, _round_up(batch, 128))


# --------------------------------------------------------------------------- #
# Forward wrapper.
# --------------------------------------------------------------------------- #
def deep_nn_forward(x, prepped, *, batch_tile=None, out_dtype=jnp.float32,
                    single_buffer_weights=False):
    """x: (B, input_size) float32. prepped: output of prepare_params().
    Returns (B, num_classes) logits in out_dtype."""
    B, D_in = x.shape
    assert D_in == prepped["input_size"], "input feature mismatch"
    H_pad = prepped["w1"].shape[1]
    C_pad = prepped["wo"].shape[1]
    C = prepped["num_classes"]

    if batch_tile is None:
        batch_tile = _pick_batch_tile(B)
    grid = (pl.cdiv(B, batch_tile),)   # ragged last block: Pallas masks the store

    # Constant-index weight blocks: optionally single-buffered (pl.Buffered(1)).
    # Marginal at H=200 (weights < 2 MiB even double-buffered); enable if H grows.
    w_kwargs = dict(pipeline_mode=pl.Buffered(1)) if single_buffer_weights else {}

    def wspec(shape, idx):
        return pl.BlockSpec(shape, idx, **w_kwargs)

    in_specs = [
        pl.BlockSpec((batch_tile, D_in), lambda i: (i, 0)),       # x tile (D_in full)
        wspec((D_in, H_pad), lambda i: (0, 0)),                   # w1
        wspec((1, H_pad), lambda i: (0, 0)),                      # b1
        wspec((5, H_pad, H_pad), lambda i: (0, 0, 0)),            # stacked hidden W
        wspec((5, 1, H_pad), lambda i: (0, 0, 0)),                # stacked hidden b
        wspec((H_pad, C_pad), lambda i: (0, 0)),                  # wo
        wspec((1, C_pad), lambda i: (0, 0)),                      # bo
    ]
    out_specs = pl.BlockSpec((batch_tile, C_pad), lambda i: (i, 0))

    out_padded = pl.pallas_call(
        _mlp_kernel,
        out_shape=jax.ShapeDtypeStruct((B, C_pad), out_dtype),
        grid=grid,
        in_specs=in_specs,
        out_specs=out_specs,
        compiler_params=pltpu.CompilerParams(
            dimension_semantics=("parallel",)),
    )(x, prepped["w1"], prepped["b1"], prepped["wh"], prepped["bh"],
      prepped["wo"], prepped["bo"])

    return out_padded[:, :C]


# --------------------------------------------------------------------------- #
# Reference init / forward (pure JAX) for correctness checking.
# --------------------------------------------------------------------------- #
def init_params(key, input_size, num_classes, num_hidden):
    """Deterministic init mimicking nn.Linear's U(-1/sqrt(fan_in), 1/sqrt(fan_in))."""
    params = {}
    dims = [(input_size, num_hidden)] + [(num_hidden, num_hidden)] * 5
    keys = jax.random.split(key, 14)
    ki = 0
    for idx, (din, dout) in enumerate(dims, start=1):
        bound = 1.0 / jnp.sqrt(din)
        params[f"w{idx}"] = jax.random.uniform(
            keys[ki], (din, dout), jnp.float32, -bound, bound); ki += 1
        params[f"b{idx}"] = jax.random.uniform(
            keys[ki], (1, dout), jnp.float32, -bound, bound); ki += 1
    bound = 1.0 / jnp.sqrt(num_hidden)
    params["wo"] = jax.random.uniform(
        keys[ki], (num_hidden, num_classes), jnp.float32, -bound, bound); ki += 1
    params["bo"] = jax.random.uniform(
        keys[ki], (1, num_classes), jnp.float32, -bound, bound)
    return params


def reference_forward(x, params):
    h = x
    for idx in range(1, 7):
        h = jnp.maximum(h @ params[f"w{idx}"] + params[f"b{idx}"], 0.0)
    return h @ params["wo"] + params["bo"]


if __name__ == "__main__":
    # Shapes consistent with the module (num_hidden=200 as in the spec).
    batch = 512          # auto tile = 128 -> grid of 4 (2 steps per v7x TensorCore)
    input_size = 64
    num_hidden = 200
    num_classes = 10

    key = jax.random.PRNGKey(0)
    k_x, k_p, k_x2 = jax.random.split(key, 3)
    x = jax.random.normal(k_x, (batch, input_size), jnp.float32)
    params = init_params(k_p, input_size, num_classes, num_hidden)

    ref = reference_forward(x, params)

    # f32 compute path (tight match vs JAX reference). Weight prep done ONCE.
    prepped_f32 = prepare_params(params, compute_dtype=jnp.float32)
    out_f32 = jax.block_until_ready(deep_nn_forward(x, prepped_f32))
    assert out_f32.shape == (batch, num_classes)
    assert jnp.allclose(out_f32, ref, atol=1e-4, rtol=1e-4), "f32 mismatch vs JAX reference"

    # Default bf16 compute path (MXU-native), f32 accumulation; looser tolerance.
    prepped_bf16 = prepare_params(params)                 # compute_dtype=bf16 default
    out_bf16 = jax.block_until_ready(deep_nn_forward(x, prepped_bf16))
    assert jnp.allclose(out_bf16, ref, atol=1e-1, rtol=1e-1), "bf16 mismatch vs JAX reference"

    # Ragged batch (not a multiple of the tile): cdiv grid, masked final block,
    # no per-call padding copy of x.
    batch2 = 500
    x2 = jax.random.normal(k_x2, (batch2, input_size), jnp.float32)
    ref2 = reference_forward(x2, params)
    out2 = jax.block_until_ready(deep_nn_forward(x2, prepped_f32, batch_tile=128))
    assert out2.shape == (batch2, num_classes)
    assert jnp.allclose(out2, ref2, atol=1e-4, rtol=1e-4), "ragged-batch mismatch"

    print("KERNEL_OK")
</pallas_src>

<mosaic_0001>
module attributes {stable_mosaic.version = 11 : i64} {
  func.func @_mlp_kernel(%arg0: i32, %arg1: memref<128x64xf32, #tpu.memory_space<vmem>>, %arg2: memref<64x256xf32, #tpu.memory_space<vmem>>, %arg3: memref<1x256xf32, #tpu.memory_space<vmem>>, %arg4: memref<5x256x256xf32, #tpu.memory_space<vmem>>, %arg5: memref<5x1x256xf32, #tpu.memory_space<vmem>>, %arg6: memref<256x128xf32, #tpu.memory_space<vmem>>, %arg7: memref<1x128xf32, #tpu.memory_space<vmem>>, %arg8: memref<128x128xf32, #tpu.memory_space<vmem>>) attributes {dimension_semantics = [#tpu.dimension_semantics<parallel>], iteration_bounds = array<i64: 4>, scalar_prefetch = 0 : i64, scratch_operands = 0 : i64, tpu.core_type = #tpu.core_type<tc>, window_params = [{transform_indices = @transform_0, window_bounds = array<i64: 128, 64>}, {pipeline_mode = #tpu.pipeline_mode<synchronous>, transform_indices = @transform_1, window_bounds = array<i64: 64, 256>}, {pipeline_mode = #tpu.pipeline_mode<synchronous>, transform_indices = @transform_2, window_bounds = array<i64: 1, 256>}, {pipeline_mode = #tpu.pipeline_mode<synchronous>, transform_indices = @transform_3, window_bounds = array<i64: 5, 256, 256>}, {pipeline_mode = #tpu.pipeline_mode<synchronous>, transform_indices = @transform_4, window_bounds = array<i64: 5, 1, 256>}, {pipeline_mode = #tpu.pipeline_mode<synchronous>, transform_indices = @transform_5, window_bounds = array<i64: 256, 128>}, {pipeline_mode = #tpu.pipeline_mode<synchronous>, transform_indices = @transform_6, window_bounds = array<i64: 1, 128>}, {transform_indices = @transform_7, window_bounds = array<i64: 128, 128>}]} {
    %c0 = arith.constant 0 : index
    %c0_0 = arith.constant 0 : index
    %0 = vector.load %arg1[%c0, %c0_0] : memref<128x64xf32, #tpu.memory_space<vmem>>, vector<128x64xf32>
    %c0_1 = arith.constant 0 : index
    %c0_2 = arith.constant 0 : index
    %1 = vector.load %arg2[%c0_1, %c0_2] : memref<64x256xf32, #tpu.memory_space<vmem>>, vector<64x256xf32>
    %cst = arith.constant dense<0.000000e+00> : vector<128x256xf32>
    %2 = tpu.matmul %0, %1, %cst {dimension_numbers = #tpu.dot_dimension_numbers<[1], [0], [0], [1], [0, 0, 1, 1], [], []>} : vector<128x64xf32>, vector<64x256xf32>, vector<128x256xf32> -> vector<128x256xf32>
    %c0_3 = arith.constant 0 : index
    %c0_4 = arith.constant 0 : index
    %3 = vector.load %arg3[%c0_3, %c0_4] : memref<1x256xf32, #tpu.memory_space<vmem>>, vector<1x256xf32>
    %4 = vector.broadcast %3 : vector<1x256xf32> to vector<128x256xf32>
    %5 = arith.addf %2, %4 : vector<128x256xf32>
    %cst_5 = arith.constant 0.000000e+00 : f32
    %6 = vector.broadcast %cst_5 : f32 to vector<128x256xf32>
    %7 = arith.maximumf %5, %6 : vector<128x256xf32>
    %c0_6 = arith.constant 0 : index
    %c0_7 = arith.constant 0 : index
    %c0_8 = arith.constant 0 : index
    %8 = vector.load %arg4[%c0_6, %c0_7, %c0_8] : memref<5x256x256xf32, #tpu.memory_space<vmem>>, vector<1x256x256xf32>
    %9 = vector.shape_cast %8 : vector<1x256x256xf32> to vector<256x256xf32>
    %cst_9 = arith.constant dense<0.000000e+00> : vector<128x256xf32>
    %10 = tpu.matmul %7, %9, %cst_9 {dimension_numbers = #tpu.dot_dimension_numbers<[1], [0], [0], [1], [0, 0, 1, 1], [], []>} : vector<128x256xf32>, vector<256x256xf32>, vector<128x256xf32> -> vector<128x256xf32>
    %c0_10 = arith.constant 0 : index
    %c0_11 = arith.constant 0 : index
    %c0_12 = arith.constant 0 : index
    %11 = vector.load %arg5[%c0_10, %c0_11, %c0_12] : memref<5x1x256xf32, #tpu.memory_space<vmem>>, vector<1x1x256xf32>
    %12 = vector.shape_cast %11 : vector<1x1x256xf32> to vector<1x256xf32>
    %13 = vector.broadcast %12 : vector<1x256xf32> to vector<128x256xf32>
    %14 = arith.addf %10, %13 : vector<128x256xf32>
    %cst_13 = arith.constant 0.000000e+00 : f32
    %15 = vector.broadcast %cst_13 : f32 to vector<128x256xf32>
    %16 = arith.maximumf %14, %15 : vector<128x256xf32>
    %c1 = arith.constant 1 : index
    %c0_14 = arith.constant 0 : index
    %c0_15 = arith.constant 0 : index
    %17 = vector.load %arg4[%c1, %c0_14, %c0_15] : memref<5x256x256xf32, #tpu.memory_space<vmem>>, vector<1x256x256xf32>
    %18 = vector.shape_cast %17 : vector<1x256x256xf32> to vector<256x256xf32>
    %cst_16 = arith.constant dense<0.000000e+00> : vector<128x256xf32>
    %19 = tpu.matmul %16, %18, %cst_16 {dimension_numbers = #tpu.dot_dimension_numbers<[1], [0], [0], [1], [0, 0, 1, 1], [], []>} : vector<128x256xf32>, vector<256x256xf32>, vector<128x256xf32> -> vector<128x256xf32>
    %c1_17 = arith.constant 1 : index
    %c0_18 = arith.constant 0 : index
    %c0_19 = arith.constant 0 : index
    %20 = vector.load %arg5[%c1_17, %c0_18, %c0_19] : memref<5x1x256xf32, #tpu.memory_space<vmem>>, vector<1x1x256xf32>
    %21 = vector.shape_cast %20 : vector<1x1x256xf32> to vector<1x256xf32>
    %22 = vector.broadcast %21 : vector<1x256xf32> to vector<128x256xf32>
    %23 = arith.addf %19, %22 : vector<128x256xf32>
    %cst_20 = arith.constant 0.000000e+00 : f32
    %24 = vector.broadcast %cst_20 : f32 to vector<128x256xf32>
    %25 = arith.maximumf %23, %24 : vector<128x256xf32>
    %c2 = arith.constant 2 : index
    %c0_21 = arith.constant 0 : index
    %c0_22 = arith.constant 0 : index
    %26 = vector.load %arg4[%c2, %c0_21, %c0_22] : memref<5x256x256xf32, #tpu.memory_space<vmem>>, vector<1x256x256xf32>
    %27 = vector.shape_cast %26 : vector<1x256x256xf32> to vector<256x256xf32>
    %cst_23 = arith.constant dense<0.000000e+00> : vector<128x256xf32>
    %28 = tpu.matmul %25, %27, %cst_23 {dimension_numbers = #tpu.dot_dimension_numbers<[1], [0], [0], [1], [0, 0, 1, 1], [], []>} : vector<128x256xf32>, vector<256x256xf32>, vector<128x256xf32> -> vector<128x256xf32>
    %c2_24 = arith.constant 2 : index
    %c0_25 = arith.constant 0 : index
    %c0_26 = arith.constant 0 : index
    %29 = vector.load %arg5[%c2_24, %c0_25, %c0_26] : memref<5x1x256xf32, #tpu.memory_space<vmem>>, vector<1x1x256xf32>
    %30 = vector.shape_cast %29 : vector<1x1x256xf32> to vector<1x256xf32>
    %31 = vector.broadcast %30 : vector<1x256xf32> to vector<128x256xf32>
    %32 = arith.addf %28, %31 : vector<128x256xf32>
    %cst_27 = arith.constant 0.000000e+00 : f32
    %33 = vector.broadcast %cst_27 : f32 to vector<128x256xf32>
    %34 = arith.maximumf %32, %33 : vector<128x256xf32>
    %c3 = arith.constant 3 : index
    %c0_28 = arith.constant 0 : index
    %c0_29 = arith.constant 0 : index
    %35 = vector.load %arg4[%c3, %c0_28, %c0_29] : memref<5x256x256xf32, #tpu.memory_space<vmem>>, vector<1x256x256xf32>
    %36 = vector.shape_cast %35 : vector<1x256x256xf32> to vector<256x256xf32>
    %cst_30 = arith.constant dense<0.000000e+00> : vector<128x256xf32>
    %37 = tpu.matmul %34, %36, %cst_30 {dimension_numbers = #tpu.dot_dimension_numbers<[1], [0], [0], [1], [0, 0, 1, 1], [], []>} : vector<128x256xf32>, vector<256x256xf32>, vector<128x256xf32> -> vector<128x256xf32>
    %c3_31 = arith.constant 3 : index
    %c0_32 = arith.constant 0 : index
    %c0_33 = arith.constant 0 : index
    %38 = vector.load %arg5[%c3_31, %c0_32, %c0_33] : memref<5x1x256xf32, #tpu.memory_space<vmem>>, vector<1x1x256xf32>
    %39 = vector.shape_cast %38 : vector<1x1x256xf32> to vector<1x256xf32>
    %40 = vector.broadcast %39 : vector<1x256xf32> to vector<128x256xf32>
    %41 = arith.addf %37, %40 : vector<128x256xf32>
    %cst_34 = arith.constant 0.000000e+00 : f32
    %42 = vector.broadcast %cst_34 : f32 to vector<128x256xf32>
    %43 = arith.maximumf %41, %42 : vector<128x256xf32>
    %c4 = arith.constant 4 : index
    %c0_35 = arith.constant 0 : index
    %c0_36 = arith.constant 0 : index
    %44 = vector.load %arg4[%c4, %c0_35, %c0_36] : memref<5x256x256xf32, #tpu.memory_space<vmem>>, vector<1x256x256xf32>
    %45 = vector.shape_cast %44 : vector<1x256x256xf32> to vector<256x256xf32>
    %cst_37 = arith.constant dense<0.000000e+00> : vector<128x256xf32>
    %46 = tpu.matmul %43, %45, %cst_37 {dimension_numbers = #tpu.dot_dimension_numbers<[1], [0], [0], [1], [0, 0, 1, 1], [], []>} : vector<128x256xf32>, vector<256x256xf32>, vector<128x256xf32> -> vector<128x256xf32>
    %c4_38 = arith.constant 4 : index
    %c0_39 = arith.constant 0 : index
    %c0_40 = arith.constant 0 : index
    %47 = vector.load %arg5[%c4_38, %c0_39, %c0_40] : memref<5x1x256xf32, #tpu.memory_space<vmem>>, vector<1x1x256xf32>
    %48 = vector.shape_cast %47 : vector<1x1x256xf32> to vector<1x256xf32>
    %49 = vector.broadcast %48 : vector<1x256xf32> to vector<128x256xf32>
    %50 = arith.addf %46, %49 : vector<128x256xf32>
    %cst_41 = arith.constant 0.000000e+00 : f32
    %51 = vector.broadcast %cst_41 : f32 to vector<128x256xf32>
    %52 = arith.maximumf %50, %51 : vector<128x256xf32>
    %c0_42 = arith.constant 0 : index
    %c0_43 = arith.constant 0 : index
    %53 = vector.load %arg6[%c0_42, %c0_43] : memref<256x128xf32, #tpu.memory_space<vmem>>, vector<256x128xf32>
    %cst_44 = arith.constant dense<0.000000e+00> : vector<128x128xf32>
    %54 = tpu.matmul %52, %53, %cst_44 {dimension_numbers = #tpu.dot_dimension_numbers<[1], [0], [0], [1], [0, 0, 1, 1], [], []>} : vector<128x256xf32>, vector<256x128xf32>, vector<128x128xf32> -> vector<128x128xf32>
    %c0_45 = arith.constant 0 : index
    %c0_46 = arith.constant 0 : index
    %55 = vector.load %arg7[%c0_45, %c0_46] : memref<1x128xf32, #tpu.memory_space<vmem>>, vector<1x128xf32>
    %56 = vector.broadcast %55 : vector<1x128xf32> to vector<128x128xf32>
    %57 = arith.addf %54, %56 : vector<128x128xf32>
    %c0_47 = arith.constant 0 : index
    %c0_48 = arith.constant 0 : index
    %58 = vector.load %arg8[%c0_47, %c0_48] : memref<128x128xf32, #tpu.memory_space<vmem>>, vector<128x128xf32>
    tpu.vector_store %arg8[%c0_47, %c0_48], %57 {strides = array<i32>} : memref<128x128xf32, #tpu.memory_space<vmem>>, vector<128x128xf32>,
    return
  }
  func.func @transform_0(%arg0: i32) -> (i32, i32) {
    %c0_i32 = arith.constant 0 : i32
    %c0_i32_0 = arith.constant 0 : i32
    return %arg0, %c0_i32 : i32, i32
  }
  func.func @transform_1(%arg0: i32) -> (i32, i32) {
    %c0_i32 = arith.constant 0 : i32
    %c0_i32_0 = arith.constant 0 : i32
    %c0_i32_1 = arith.constant 0 : i32
    return %c0_i32, %c0_i32_0 : i32, i32
  }
  func.func @transform_2(%arg0: i32) -> (i32, i32) {
    %c0_i32 = arith.constant 0 : i32
    %c0_i32_0 = arith.constant 0 : i32
    %c0_i32_1 = arith.constant 0 : i32
    return %c0_i32, %c0_i32_0 : i32, i32
  }
  func.func @transform_3(%arg0: i32) -> (i32, i32, i32) {
    %c0_i32 = arith.constant 0 : i32
    %c0_i32_0 = arith.constant 0 : i32
    %c0_i32_1 = arith.constant 0 : i32
    %c0_i32_2 = arith.constant 0 : i32
    return %c0_i32, %c0_i32_0, %c0_i32_1 : i32, i32, i32
  }
  func.func @transform_4(%arg0: i32) -> (i32, i32, i32) {
    %c0_i32 = arith.constant 0 : i32
    %c0_i32_0 = arith.constant 0 : i32
    %c0_i32_1 = arith.constant 0 : i32
    %c0_i32_2 = arith.constant 0 : i32
    return %c0_i32, %c0_i32_0, %c0_i32_1 : i32, i32, i32
  }
  func.func @transform_5(%arg0: i32) -> (i32, i32) {
    %c0_i32 = arith.constant 0 : i32
    %c0_i32_0 = arith.constant 0 : i32
    %c0_i32_1 = arith.constant 0 : i32
    return %c0_i32, %c0_i32_0 : i32, i32
  }
  func.func @transform_6(%arg0: i32) -> (i32, i32) {
    %c0_i32 = arith.constant 0 : i32
    %c0_i32_0 = arith.constant 0 : i32
    %c0_i32_1 = arith.constant 0 : i32
    return %c0_i32, %c0_i32_0 : i32, i32
  }
  func.func @transform_7(%arg0: i32) -> (i32, i32) {
    %c0_i32 = arith.constant 0 : i32
    %c0_i32_0 = arith.constant 0 : i32
    return %arg0, %c0_i32 : i32, i32
  }
}

</mosaic_0001>

<bundles_post_ra>
// kernel: tpu_custom_call.1
= control target key start
LH: loop header
LB: loop body
LE: loop exit
PB: predicated region body
PF: predicated region fallthrough
CT: control target
= control target key end

     0   :  { %s3727_s0 = inlined_call_operand.vmem [shape: f32[512,64], index: 0, kind: input, shape index: {}]   ;;  %s3728_s1 = inlined_call_operand.hbm [shape: f32[64,256], index: 1, kind: input, shape index: {}]   ;;  %s3729_s2 = inlined_call_operand.hbm [shape: f32[1,256], index: 2, kind: input, shape index: {}]   ;;  %s3730_s3 = inlined_call_operand.hbm [shape: f32[5,256,256], index: 3, kind: input, shape index: {}]   ;;  %s3731_s4 = inlined_call_operand.hbm [shape: f32[5,1,256], index: 4, kind: input, shape index: {}]   ;;  %s3732_s5 = inlined_call_operand.hbm [shape: f32[256,128], index: 5, kind: input, shape index: {}]   ;;  %s3733_s6 = inlined_call_operand.hbm [shape: f32[1,128], index: 6, kind: input, shape index: {}]   ;;  %s3734_s7 = inlined_call_operand.hbm [shape: f32[512,128], index: 7, kind: output, shape index: {}]  }
   0x1   :  { %3735 = sst [smem:[#allocation20_spill]] %s3729_s2 }
   0x2   :  { %3736 = sst [smem:[#allocation21_spill]] %s3731_s4 }
   0x3   :  { %12 = vsyncpa [#allocation3], 0 }
   0x4   :  { %13 = vsyncpa [#allocation6], 0 }
   0x5   :  { %14 = vsyncpa [#allocation9], 0 }
   0x6   :  { %15 = vsyncpa [#allocation12], 0 }
   0x7   :  { %16 = vsyncpa [#allocation4], 0 }
   0x8   :  { %18 = vsyncpa [#allocation4 + $0x1], 0  ;;  %s3275_s24 = smov 0   ;;  %s3277_s25 = smov 0  }
   0x9   :  { %s3279_s26 = smov 0   ;;  %s3281_s27 = smov 0  }
   0xa LB: > { %s3296_s28 = sadd.s32 4294967295, %s3219_s27   ;;  %s2763_s29 = sadd.s32 4294967294, %s3219_s27   ;;  %s3219_s27 = sphi %s3281_s27, %s3748_s27   ;;  %s3215_s26 = sphi %s3279_s26, %s3747_s26   ;;  %s3211_s25 = sphi %s3277_s25, %s3746_s25   ;;  %s3207_s24 = sphi %s3275_s24, %s3745_s24  }
   0xb   : > { %s3300_s30 = sadd.s32 1, %s3219_s27   ;;  %s183_s8 = sadd.s32 1, %s3215_s26 }
   0xc   : > { %s180_s9 = ssub.s32 %s3219_s27, %s3300_s30  ;;  %p193_p0 = scmp.ne.s32.totalorder %s3215_s26, %s3211_s25 }
   0xd   : > { %p181_p1 = scmp.eq.s32.totalorder %s180_s9, 0  ;;  %p194_p2 = scmp.eq.s32.totalorder %s3296_s28, 3 }
   0xe   : > { %p199_p3 = scmp.ne.s32.totalorder %s3211_s25, %s3207_s24  ;;  %p200_p4 = scmp.eq.s32.totalorder %s2763_s29, 3 }
   0xf   : > { %s3311_s10 = scalar_select %p181_p1, %s3215_s26, %s183_s8  }
  0x10   : > { %p3313_p5 = por %p194_p2, %p193_p0  ;;  %p3317_p6 = por %p200_p4, %p199_p3 }
  0x11   : > { %3737 = sst [smem:[#allocation19_spill]] %s3311_s10  ;;  %p2764_p7 = scmp.ge.s32.totalorder %s3219_s27, 1 }
  0x12   : > { %p207_p8 = scmp.lt.s32.totalorder %s3219_s27, 5  ;;  %p2901_p9 = scmp.eq.s32.totalorder %s3296_s28, 0 }
  0x13   : > { %s3741_s2 = sld [smem:[#allocation20_spill]]  ;;  %s3221_s17 = smov [#allocation5]  }
  0x14   : > { %p3324_p10 = pnand %p2764_p7, %p207_p8  ;;  %s235_s18 = sshll.u32 %s3221_s17, 4  ;;  %s236_s18 = int_to_ptr.vmem [resolvable:$true] %s235_s18 }
  0x15   : > { %s3742_s4 = sld [smem:[#allocation21_spill]]  ;;  %s3222_s23 = smov [#allocation8]  }
  0x16   : > { %p2878_p11 = pneg %p3324_p10  ;;  %s260_s29 = sshll.u32 %s3222_s23, 4  ;;  %s261_s29 = int_to_ptr.vmem [resolvable:$true] %s260_s29 }
  0x17   : > { %s3223_s8 = smov 32   ;;  %s3224_s9 = smov 2  }
  0x18   : > { %p3338_p12 = pnand %p2901_p9, %p2878_p11  ;;  %s218_s17 = sshll.u32 %s3728_s1, 4  ;;  %s219_s17 = int_to_ptr.hbm [resolvable:$true] %s218_s17 }
  0x19   : > { %s233_s16 = sshll.u32 %s3741_s2, 4  ;;  %s3225_s19 = smov [#allocation2]   ;;  %s234_s16 = int_to_ptr.hbm [resolvable:$true] %s233_s16 }
  0x1a   : > { %2884 = dma.hbm_to_vmem [thread:$0]  (!%p3338_p12), %s234_s16, 32, %s236_s18, [#allocation6]  }
  0x1b   : > { %s258_s21 = sshll.u32 %s3742_s4, 4  ;;  %s220_s20 = sshll.u32 %s3225_s19, 4  ;;  %s259_s21 = int_to_ptr.hbm [resolvable:$true] %s258_s21  ;;  %s221_s20 = int_to_ptr.vmem [resolvable:$true] %s220_s20 }
  0x1c   : > { %2890 = dma.hbm_to_vmem [thread:$0]  (!%p3338_p12), %s259_s21, 160, %s261_s29, [#allocation9], %s3223_s8, %s3223_s8, %s3224_s9  }
  0x1d   : > { %s244_s23 = sshll.u32 %s3730_s3, 4  ;;  %s3226_s10 = smov 256   ;;  %s245_s23 = int_to_ptr.hbm [resolvable:$true] %s244_s23 }
  0x1e   : > { %s3227_s16 = smov 16   ;;  %s3228_s18 = smov [#allocation7]  }
  0x1f   : > { %2881 = dma.hbm_to_vmem [thread:$0]  (!%p3338_p12), %s219_s17, 2048, %s221_s20, [#allocation3], %s3226_s10, %s3226_s10, %s3227_s16  }
  0x20   : > { %s246_s21 = sshll.u32 %s3228_s18, 4  ;;  %s272_s9 = sshll.u32 %s3732_s5, 4  ;;  %s247_s21 = int_to_ptr.vmem [resolvable:$true] %s246_s21  ;;  %s273_s9 = int_to_ptr.hbm [resolvable:$true] %s272_s9 }
  0x21   : > { %2887 = dma.hbm_to_vmem [thread:$0]  (!%p3338_p12), %s245_s23, 40960, %s247_s21, [#allocation6], %s3226_s10, %s3226_s10, %s3227_s16  }
  0x22   : > { %s3229_s14 = smov [#allocation10]   ;;  %s287_s19 = sshll.u32 %s3733_s6, 4  ;;  %s288_s19 = int_to_ptr.hbm [resolvable:$true] %s287_s19 }
  0x23   : > { %s274_s2 = sshll.u32 %s3229_s14, 4  ;;  %s3230_s17 = smov 128   ;;  %s275_s2 = int_to_ptr.vmem [resolvable:$true] %s274_s2 }
  0x24   : > { %s3231_s20 = smov 8   ;;  %s3232_s18 = smov [#allocation11]  }
  0x25   : > { %2893 = dma.hbm_to_vmem [thread:$0]  (!%p3338_p12), %s273_s9, 4096, %s275_s2, [#allocation9], %s3230_s17, %s3230_s17, %s3231_s20  }
  0x26   : > { %s289_s29 = sshll.u32 %s3232_s18, 4  ;;  %311 = sbr.rel (%p3324_p10) target bundleno = 1146 (0x47a), region = 48  ;;  %s290_s29 = int_to_ptr.vmem [resolvable:$true] %s289_s29 }
  0x27   : > { %2896 = dma.hbm_to_vmem [thread:$0]  (!%p3338_p12), %s288_s19, 16, %s290_s29, [#allocation12]  }
  0x2b   : > { %3186 = dma.done.wait (%p2901_p9), [#allocation3], 2048  }
  0x2c   : > { %3188 = vsyncadd (%p2901_p9), [#allocation3], 4294965248 }
  0x2d   : > { %3190 = dma.done.wait (%p2901_p9), [#allocation6], 40992  }
  0x2e   : > { %3192 = vsyncadd (%p2901_p9), [#allocation6], 4294926304 }
  0x2f   : > { %3194 = dma.done.wait (%p2901_p9), [#allocation9], 4256  }
  0x30   : > { %3196 = vsyncadd (%p2901_p9), [#allocation9], 4294963040 }
  0x31   : > { %3198 = dma.done.wait (%p2901_p9), [#allocation12], 16  }
  0x32   : > { %3200 = vsyncadd (%p2901_p9), [#allocation12], 4294967280  ;;  %s2780_s10 = sshll.u32 %s3296_s28, 4  ;;  %v406_v0 = vld [vmem:[#allocation2 + $0x70] sm:$0xff]  ;;  %v404_v1 = vld [vmem:[#allocation2 + $0x60] sm:$0xff]  ;;  %vm414_vm0 = vcmask 523264  }
  0x33   : > { %p370_p13 = scmp.lt.s32.totalorder %s2780_s10, 63  ;;  %v407_v2 = vld [vmem:[#allocation2 + $0x78] sm:$0xff]  ;;  %471 = vmatpush.msra.mxu0 %v406_v0  ;;  %v405_v3 = vld [vmem:[#allocation2 + $0x68] sm:$0xff]  ;;  %v402_v4 = vld [vmem:[#allocation2 + $0x50] sm:$0xff]  ;;  %s366_s21 = sand.u32 1, %s3211_s25  }
  0x34   : > { %536 = vmatpush.msra.mxu1 %v407_v2  ;;  %v403_v5 = vld [vmem:[#allocation2 + $0x58] sm:$0xff]  ;;  %v400_v6 = vld [vmem:[#allocation2 + $0x40] sm:$0xff]  ;;  %v401_v7 = vld [vmem:[#allocation2 + $0x48] sm:$0xff]  ;;  %s2779_s8 = sshll.u32 %s366_s21, 7  ;;  %s2819_s14 = sshll.u32 %s3296_s28, 7 }
  0x35   : > { %472 = vmatpush.msra.mxu0 %v404_v1  ;;  %s3750_s10 = smov (!%p370_p13, %s2780_s10), 63  ;;  %v398_v8 = vld [vmem:[#allocation2 + $0x30] sm:$0xff]  ;;  %v399_v9 = vld [vmem:[#allocation2 + $0x38] sm:$0xff]  ;;  %v396_v10 = vld [vmem:[#allocation2 + $0x20] sm:$0xff]  ;;  %s3660_s9 = scalar_lea.vmem [#allocation13], %s2779_s8 }
  0x36   : > { %537 = vmatpush.msra.mxu1 %v405_v3  ;;  %s2781_s13 = sshll.u32 %s3750_s10, 3  ;;  %v397_v11 = vld [vmem:[#allocation2 + $0x28] sm:$0xff]  ;;  %v394_v12 = vld [vmem:[#allocation2 + $0x10] sm:$0xff]  ;;  %v395_v13 = vld [vmem:[#allocation2 + $0x18] sm:$0xff]  ;;  %s2637_s15 = scalar_lea.hbm %s3734_s7, %s2819_s14 }
  0x37   : > { %473 = vmatpush.msra.mxu0 %v402_v4  ;;  %s3388_s16 = scalar_lea.vmem %s3727_s0, %s2781_s13  ;;  %v392_v14 = vld [vmem:[#allocation2] sm:$0xff]  ;;  %v393_v15 = vld [vmem:[#allocation2 + $0x8] sm:$0xff]  ;;  %v655_v48 = vld [vmem:[#allocation7 + $0xf0] sm:$0xff]  ;;  %s2638_s19 = sshll.u32 %s3660_s9, 4  ;;  %s2639_s19 = int_to_ptr.vmem [resolvable:$true] %s2638_s19 }
  0x38   : > { %538 = vmatpush.msra.mxu1 %v403_v5  ;;  %v376_v16 = vld [vmem:[%s3388_s16] sm:$0xff]  ;;  %v654_v19 = vld [vmem:[#allocation7 + $0xe8] sm:$0xff]  ;;  %v379_v31 = vld [vmem:[%s3388_s16 + $0x18] sm:$0xff]  ;;  %695 = vmatpush.msra.mxu2 %v655_v48  ;;  %s2640_s17 = sshll.u32 %s2637_s15, 4  ;;  %s2626_s20 = scalar_lea.sflag [#allocation4], %s366_s21  ;;  %s2641_s17 = int_to_ptr.hbm [resolvable:$true] %s2640_s17 }
  0x39   : > { %474 = vmatpush.msra.mxu0 %v400_v6  ;;  %v656_v17 = vld [vmem:[#allocation7 + $0xf8] sm:$0xff]  ;;  %v686_v20 = vld [vmem:[#allocation7 + $0x1e8] sm:$0xff]  ;;  %v653_v50 = vld [vmem:[#allocation7 + $0xe0] sm:$0xff]  ;;  %s3155_s28 = sshra.s32 %s2641_s17, 4  ;;  %s3161_s13 = scalar_lea.hbm %s3734_s7, 512  ;;  %s3156_s28 = int_to_ptr.hbm [resolvable:$true] %s3155_s28 }
  0x3a   : > { %539 = vmatpush.msra.mxu1 %v401_v7  ;;  %v688_v18 = vld [vmem:[#allocation7 + $0x1f8] sm:$0xff]  ;;  %v650_v23 = vld [vmem:[#allocation7 + $0xc8] sm:$0xff]  ;;  %v687_v51 = vld [vmem:[#allocation7 + $0x1f0] sm:$0xff]  ;;  %696 = vmatpush.msra.mxu2 %v653_v50  ;;  %s3157_s18 = scalar_lea.hbm %s3156_s28, 128  ;;  %p3162_p3 = scmp.lt.s32.totalorder %s3156_s28, %s3734_s7 }
  0x3b   : > { %475 = vmatpush.msra.mxu0 %v398_v8  ;;  %v652_v21 = vld [vmem:[#allocation7 + $0xd8] sm:$0xff]  ;;  %v682_v24 = vld [vmem:[#allocation7 + $0x1c8] sm:$0xff]  ;;  %760 = vmatpush.msra.mxu3 %v687_v51  ;;  %v651_v52 = vld [vmem:[#allocation7 + $0xd0] sm:$0xff]  ;;  %p3158_p0 = scmp.ne.s32.totalorder %s3156_s28, %s3157_s18  ;;  %p3163_p4 = scmp.lt.s32.totalorder %s3161_s13, %s3157_s18 }
  0x3c   : > { %540 = vmatpush.msra.mxu1 %v399_v9  ;;  %v684_v22 = vld [vmem:[#allocation7 + $0x1d8] sm:$0xff]  ;;  %v377_v25 = vld [vmem:[%s3388_s16 + $0x8] sm:$0xff]  ;;  %v378_v28 = vld [vmem:[%s3388_s16 + $0x10] sm:$0xff]  ;;  %697 = vmatpush.msra.mxu2 %v651_v52 }
  0x3d   : > { %476 = vmatpush.msra.mxu0 %v396_v10  ;;  %v648_v26 = vld [vmem:[#allocation7 + $0xb8] sm:$0xff]  ;;  %v646_v29 = vld [vmem:[#allocation7 + $0xa8] sm:$0xff]  ;;  %v685_v53 = vld [vmem:[#allocation7 + $0x1e0] sm:$0xff]  ;;  %p3159_p1 = pnand %p3158_p0, %p3313_p5  ;;  %p3164_p7 = por %p3163_p4, %p3162_p3 }
  0x3e   : > { %541 = vmatpush.msra.mxu1 %v397_v11  ;;  %v680_v27 = vld [vmem:[#allocation7 + $0x1b8] sm:$0xff]  ;;  %v678_v30 = vld [vmem:[#allocation7 + $0x1a8] sm:$0xff]  ;;  %761 = vmatpush.msra.mxu3 %v685_v53  ;;  %v649_v55 = vld [vmem:[#allocation7 + $0xc0] sm:$0xff] }
  0x3f   : > { %477 = vmatpush.msra.mxu0 %v394_v12  ;;  %v644_v32 = vld [vmem:[#allocation7 + $0x98] sm:$0xff]  ;;  %v642_v35 = vld [vmem:[#allocation7 + $0x88] sm:$0xff]  ;;  %v683_v56 = vld [vmem:[#allocation7 + $0x1d0] sm:$0xff]  ;;  %698 = vmatpush.msra.mxu2 %v649_v55  ;;  %p3160_p2 = pneg %p3159_p1 }
  0x40   : > { %542 = vmatpush.msra.mxu1 %v395_v13  ;;  %v676_v33 = vld [vmem:[#allocation7 + $0x198] sm:$0xff]  ;;  %v674_v36 = vld [vmem:[#allocation7 + $0x188] sm:$0xff]  ;;  %762 = vmatpush.msra.mxu3 %v683_v56  ;;  %v647_v58 = vld [vmem:[#allocation7 + $0xb0] sm:$0xff] }
  0x41   : > { %478 = vmatpush.msra.mxu0 %v392_v14  ;;  %v380_v34 = vld [vmem:[%s3388_s16 + $0x20] sm:$0xff]  ;;  %v381_v37 = vld [vmem:[%s3388_s16 + $0x28] sm:$0xff]  ;;  %v382_v40 = vld [vmem:[%s3388_s16 + $0x30] sm:$0xff]  ;;  %699 = vmatpush.msra.mxu2 %v647_v58  ;;  %p3165_p8 = pnand %p3164_p7, %p3160_p2 }
  0x42   : > { %543 = vmatpush.msra.mxu1 %v393_v15  ;;  %2782 = vmatmul.msk.f32.vlgmr.msra.gmra.mxu0 %vm414_vm0, %v376_v16  ;;  %v640_v38 = vld [vmem:[#allocation7 + $0x78] sm:$0xff]  ;;  %v638_v41 = vld [vmem:[#allocation7 + $0x68] sm:$0xff]  ;;  %v681_v59 = vld [vmem:[#allocation7 + $0x1c0] sm:$0xff] }
  0x43   : > { %2798 = vmatmul.msk.f32.vlgmr.msra.gmra.mxu1 %vm414_vm0, %v376_v16  ;;  %825 = vmatpush.msrb.mxu0 %v656_v17  ;;  %v672_v39 = vld [vmem:[#allocation7 + $0x178] sm:$0xff]  ;;  %v670_v42 = vld [vmem:[#allocation7 + $0x168] sm:$0xff]  ;;  %v645_v61 = vld [vmem:[#allocation7 + $0xa0] sm:$0xff] }
  0x44   : > { %890 = vmatpush.msrb.mxu1 %v688_v18  ;;  %v383_v43 = vld [vmem:[%s3388_s16 + $0x38] sm:$0xff]  ;;  %v384_v46 = vld [vmem:[%s3388_s16 + $0x40] sm:$0xff]  ;;  %v634_v47 = vld [vmem:[#allocation7 + $0x48] sm:$0xff]  ;;  %763 = vmatpush.msra.mxu3 %v681_v59 }
  0x45   : > { %826 = vmatpush.msrb.mxu0 %v654_v19  ;;  %v636_v44 = vld [vmem:[#allocation7 + $0x58] sm:$0xff]  ;;  %v666_v49 = vld [vmem:[#allocation7 + $0x148] sm:$0xff]  ;;  %v679_v62 = vld [vmem:[#allocation7 + $0x1b0] sm:$0xff]  ;;  %700 = vmatpush.msra.mxu2 %v645_v61 }
  0x46   : > { %891 = vmatpush.msrb.mxu1 %v686_v20  ;;  %v668_v45 = vld [vmem:[#allocation7 + $0x158] sm:$0xff]  ;;  %v385_v54 = vld [vmem:[%s3388_s16 + $0x48] sm:$0xff]  ;;  %v643_v63 = vld [vmem:[#allocation7 + $0x90] sm:$0xff]  ;;  %764 = vmatpush.msra.mxu3 %v679_v62 }
  0x47   : > { %827 = vmatpush.msrb.mxu0 %v652_v21  ;;  %v632_v57 = vld [vmem:[#allocation7 + $0x38] sm:$0xff]  ;;  %v677_v0 = vld [vmem:[#allocation7 + $0x1a0] sm:$0xff]  ;;  %v386_v1 = vld [vmem:[%s3388_s16 + $0x50] sm:$0xff]  ;;  %701 = vmatpush.msra.mxu2 %v643_v63 }
  0x48   : > { %892 = vmatpush.msrb.mxu1 %v684_v22  ;;  %v664_v60 = vld [vmem:[#allocation7 + $0x138] sm:$0xff]  ;;  %765 = vmatpush.msra.mxu3 %v677_v0  ;;  %v641_v2 = vld [vmem:[#allocation7 + $0x80] sm:$0xff]  ;;  %v675_v3 = vld [vmem:[#allocation7 + $0x190] sm:$0xff] }
  0x49   : > { %828 = vmatpush.msrb.mxu0 %v650_v23  ;;  %v630_v4 = vld [vmem:[#allocation7 + $0x28] sm:$0xff]  ;;  %702 = vmatpush.msra.mxu2 %v641_v2  ;;  %v639_v5 = vld [vmem:[#allocation7 + $0x70] sm:$0xff]  ;;  %v673_v6 = vld [vmem:[#allocation7 + $0x180] sm:$0xff] }
  0x4a   : > { %893 = vmatpush.msrb.mxu1 %v682_v24  ;;  %2783 = vmatmul.msk.f32.gmra.mxu0 %vm414_vm0, %v377_v25  ;;  %v662_v7 = vld [vmem:[#allocation7 + $0x128] sm:$0xff]  ;;  %v637_v8 = vld [vmem:[#allocation7 + $0x60] sm:$0xff]  ;;  %v671_v9 = vld [vmem:[#allocation7 + $0x170] sm:$0xff] }
  0x4b   : > { %2799 = vmatmul.msk.f32.gmra.mxu1 %vm414_vm0, %v377_v25  ;;  %829 = vmatpush.msrb.mxu0 %v648_v26  ;;  %v635_v10 = vld [vmem:[#allocation7 + $0x50] sm:$0xff]  ;;  %v669_v11 = vld [vmem:[#allocation7 + $0x160] sm:$0xff]  ;;  %v628_v15 = vld [vmem:[#allocation7 + $0x18] sm:$0xff] }
  0x4c   : > { %894 = vmatpush.msrb.mxu1 %v680_v27  ;;  %766 = vmatpush.msra.mxu3 %v675_v3  ;;  %v387_v12 = vld [vmem:[%s3388_s16 + $0x58] sm:$0xff]  ;;  %v633_v13 = vld [vmem:[#allocation7 + $0x40] sm:$0xff]  ;;  %v626_v26 = vld [vmem:[#allocation7 + $0x8] sm:$0xff] }
  0x4d   : > { %830 = vmatpush.msrb.mxu0 %v646_v29  ;;  %703 = vmatpush.msra.mxu2 %v639_v5  ;;  %v667_v14 = vld [vmem:[#allocation7 + $0x150] sm:$0xff]  ;;  %v665_v17 = vld [vmem:[#allocation7 + $0x140] sm:$0xff]  ;;  %v660_v18 = vld [vmem:[#allocation7 + $0x118] sm:$0xff] }
  0x4e   : > { %895 = vmatpush.msrb.mxu1 %v678_v30  ;;  %767 = vmatpush.msra.mxu3 %v673_v6  ;;  %v631_v16 = vld [vmem:[#allocation7 + $0x30] sm:$0xff]  ;;  %v629_v19 = vld [vmem:[#allocation7 + $0x20] sm:$0xff]  ;;  %v1049_v48 = vld [vmem:[#allocation7 + $0x3e8] sm:$0xff] }
  0x4f   : > { %831 = vmatpush.msrb.mxu0 %v644_v32  ;;  %704 = vmatpush.msra.mxu2 %v637_v8  ;;  %v663_v20 = vld [vmem:[#allocation7 + $0x130] sm:$0xff]  ;;  %v388_v21 = vld [vmem:[%s3388_s16 + $0x60] sm:$0xff]  ;;  %v389_v29 = vld [vmem:[%s3388_s16 + $0x68] sm:$0xff] }
  0x50   : > { %896 = vmatpush.msrb.mxu1 %v676_v33  ;;  %768 = vmatpush.msra.mxu3 %v671_v9  ;;  %v627_v22 = vld [vmem:[#allocation7 + $0x10] sm:$0xff]  ;;  %v661_v23 = vld [vmem:[#allocation7 + $0x120] sm:$0xff]  ;;  %v1015_v52 = vld [vmem:[#allocation7 + $0x2d8] sm:$0xff] }
  0x51   : > { %832 = vmatpush.msrb.mxu0 %v642_v35  ;;  %705 = vmatpush.msra.mxu2 %v635_v10  ;;  %v625_v24 = vld [vmem:[#allocation7] sm:$0xff]  ;;  %v659_v25 = vld [vmem:[#allocation7 + $0x110] sm:$0xff]  ;;  %v1047_v58 = vld [vmem:[#allocation7 + $0x3d8] sm:$0xff] }
  0x52   : > { %2784 = vmatmul.msk.f32.gmra.mxu0 %vm414_vm0, %v378_v28  ;;  %897 = vmatpush.msrb.mxu1 %v674_v36  ;;  %v657_v27 = vld [vmem:[#allocation7 + $0x100] sm:$0xff]  ;;  %v1018_v30 = vld [vmem:[#allocation7 + $0x2f0] sm:$0xff]  ;;  %v1013_v62 = vld [vmem:[#allocation7 + $0x2c8] sm:$0xff] }
  0x53   : > { %2800 = vmatmul.msk.f32.gmra.mxu1 %vm414_vm0, %v378_v28  ;;  %833 = vmatpush.msrb.mxu0 %v640_v38  ;;  %v658_v28 = vld [vmem:[#allocation7 + $0x108] sm:$0xff]  ;;  %v1050_v32 = vld [vmem:[#allocation7 + $0x3f0] sm:$0xff]  ;;  %v1016_v33 = vld [vmem:[#allocation7 + $0x2e0] sm:$0xff] }
  0x54   : > { %898 = vmatpush.msrb.mxu1 %v672_v39  ;;  %769 = vmatpush.msra.mxu3 %v669_v11  ;;  %v391_v35 = vld [vmem:[%s3388_s16 + $0x78] sm:$0xff]  ;;  %v1048_v36 = vld [vmem:[#allocation7 + $0x3e0] sm:$0xff]  ;;  %v408_v38 = vld [vmem:[#allocation5] sm:$0x3] }
  0x55   : > { %834 = vmatpush.msrb.mxu0 %v638_v41  ;;  %706 = vmatpush.msra.mxu2 %v633_v13  ;;  %v3438_v39 = vperm.slane %v408_v38, 0  ;;  %v1014_v41 = vld [vmem:[#allocation7 + $0x2d0] sm:$0xff]  ;;  %v1012_v51 = vld [vmem:[#allocation7 + $0x2c0] sm:$0xff]  ;;  %v1011_v8 = vld [vmem:[#allocation7 + $0x2b8] sm:$0xff] }
  0x56   : > { %899 = vmatpush.msrb.mxu1 %v670_v42  ;;  %770 = vmatpush.msra.mxu3 %v667_v14  ;;  %v1017_v42 = vld [vmem:[#allocation7 + $0x2e8] sm:$0xff]  ;;  %v1010_v61 = vld [vmem:[#allocation7 + $0x2b0] sm:$0xff]  ;;  %v1040_v13 = vld [vmem:[#allocation7 + $0x3a0] sm:$0xff] }
  0x57   : > { %835 = vmatpush.msrb.mxu0 %v636_v44  ;;  %707 = vmatpush.msra.mxu2 %v631_v16  ;;  %v1042_v3 = vld [vmem:[#allocation7 + $0x3b0] sm:$0xff]  ;;  %v1043_v14 = vld [vmem:[#allocation7 + $0x3b8] sm:$0xff] }
  0x58   : > { %900 = vmatpush.msrb.mxu1 %v668_v45  ;;  %771 = vmatpush.msra.mxu3 %v665_v17  ;;  %v1006_v17 = vld [vmem:[#allocation7 + $0x290] sm:$0xff] }
  0x59   : > { %836 = vmatpush.msrb.mxu0 %v634_v47  ;;  %708 = vmatpush.msra.mxu2 %v629_v19  ;;  %v1046_v47 = vld [vmem:[#allocation7 + $0x3d0] sm:$0xff] }
  0x5a   : > { %2785 = vmatmul.msk.f32.gmra.mxu0 %vm414_vm0, %v379_v31  ;;  %901 = vmatpush.msrb.mxu1 %v666_v49 }
  0x5b   : > { %2801 = vmatmul.msk.f32.gmra.mxu1 %vm414_vm0, %v379_v31  ;;  %837 = vmatpush.msrb.mxu0 %v632_v57  ;;  %v390_v31 = vld [vmem:[%s3388_s16 + $0x70] sm:$0xff]  ;;  %v1044_v57 = vld [vmem:[#allocation7 + $0x3c0] sm:$0xff] }
  0x5c   : > { %902 = vmatpush.msrb.mxu1 %v664_v60  ;;  %772 = vmatpush.msra.mxu3 %v663_v20 }
  0x5d   : > { %838 = vmatpush.msrb.mxu0 %v630_v4  ;;  %709 = vmatpush.msra.mxu2 %v627_v22  ;;  %v1045_v4 = vld [vmem:[#allocation7 + $0x3c8] sm:$0xff] }
  0x5e   : > { %903 = vmatpush.msrb.mxu1 %v662_v7  ;;  %773 = vmatpush.msra.mxu3 %v661_v23  ;;  %v1008_v7 = vld [vmem:[#allocation7 + $0x2a0] sm:$0xff]  ;;  %v1038_v23 = vld [vmem:[#allocation7 + $0x390] sm:$0xff] }
  0x5f   : > { %839 = vmatpush.msrb.mxu0 %v628_v15  ;;  %710 = vmatpush.msra.mxu2 %v625_v24  ;;  %v1041_v24 = vld [vmem:[#allocation7 + $0x3a8] sm:$0xff] }
  0x60   : > { %904 = vmatpush.msrb.mxu1 %v660_v18  ;;  %774 = vmatpush.msra.mxu3 %v659_v25  ;;  %v1009_v18 = vld [vmem:[#allocation7 + $0x2a8] sm:$0xff] }
  0x61   : > { %840 = vmatpush.msrb.mxu0 %v626_v26  ;;  %1059 = vmatpush.msrb.mxu2 %v1018_v30 }
  0x62   : > { %2786 = vmatmul.msk.f32.gmra.mxu0 %vm414_vm0, %v380_v34  ;;  %775 = vmatpush.msra.mxu3 %v657_v27  ;;  %v1004_v27 = vld [vmem:[#allocation7 + $0x280] sm:$0xff] }
  0x63   : > { %2802 = vmatmul.msk.f32.gmra.mxu1 %vm414_vm0, %v380_v34  ;;  %v1019_v34 = vld [vmem:[#allocation7 + $0x2f8] sm:$0xff]  ;;  %1060 = vmatpush.msrb.mxu2 %v1016_v33  ;;  %v1036_v33 = vld [vmem:[#allocation7 + $0x380] sm:$0xff] }
  0x64   : > { %905 = vmatpush.msrb.mxu1 %v658_v28  ;;  %1124 = vmatpush.msrb.mxu3 %v1050_v32  ;;  %v1007_v28 = vld [vmem:[#allocation7 + $0x298] sm:$0xff] }
  0x65   : > { %1189 = vmatpush.msra.mxu0 %v1019_v34  ;;  %1061 = vmatpush.msrb.mxu2 %v1014_v41  ;;  %v1039_v34 = vld [vmem:[#allocation7 + $0x398] sm:$0xff] }
  0x66   : > { %1125 = vmatpush.msrb.mxu3 %v1048_v36 }
  0x67   : > { %1190 = vmatpush.msra.mxu0 %v1017_v42  ;;  %1062 = vmatpush.msrb.mxu2 %v1012_v51 }
  0x68   : > { %1126 = vmatpush.msrb.mxu3 %v1046_v47 }
  0x69   : > { %1191 = vmatpush.msra.mxu0 %v1015_v52  ;;  %1063 = vmatpush.msrb.mxu2 %v1010_v61 }
  0x6a   : > { %2787 = vmatmul.msk.f32.gmra.mxu0 %vm414_vm0, %v381_v37  ;;  %1127 = vmatpush.msrb.mxu3 %v1044_v57 }
  0x6b   : > { %2803 = vmatmul.msk.f32.gmra.mxu1 %vm414_vm0, %v381_v37  ;;  %v1051_v37 = vld [vmem:[#allocation7 + $0x3f8] sm:$0xff]  ;;  %1192 = vmatpush.msra.mxu0 %v1013_v62 }
  0x6c   : > { %1254 = vmatpush.msra.mxu1 %v1051_v37  ;;  %1128 = vmatpush.msrb.mxu3 %v1042_v3  ;;  %v1002_v37 = vld [vmem:[#allocation7 + $0x270] sm:$0xff] }
  0x6d   : > { %1064 = vmatpush.msrb.mxu2 %v1008_v7  ;;  %1193 = vmatpush.msra.mxu0 %v1011_v8 }
  0x6e   : > { %1255 = vmatpush.msra.mxu1 %v1049_v48  ;;  %1129 = vmatpush.msrb.mxu3 %v1040_v13 }
  0x6f   : > { %1065 = vmatpush.msrb.mxu2 %v1006_v17  ;;  %1194 = vmatpush.msra.mxu0 %v1009_v18 }
  0x70   : > { %1256 = vmatpush.msra.mxu1 %v1047_v58  ;;  %1130 = vmatpush.msrb.mxu3 %v1038_v23 }
  0x71   : > { %1066 = vmatpush.msrb.mxu2 %v1004_v27  ;;  %1195 = vmatpush.msra.mxu0 %v1007_v28 }
  0x72   : > { %2788 = vmatmul.msk.f32.gmra.mxu0 %vm414_vm0, %v382_v40  ;;  %1257 = vmatpush.msra.mxu1 %v1045_v4 }
  0x73   : > { %2804 = vmatmul.msk.f32.gmra.mxu1 %vm414_vm0, %v382_v40  ;;  %v3440_v40 = vperm.slane %v408_v38, 1  ;;  %1131 = vmatpush.msrb.mxu3 %v1036_v33  ;;  %v1005_v38 = vld [vmem:[#allocation7 + $0x288] sm:$0xff] }
  0x74   : > { %1258 = vmatpush.msra.mxu1 %v1043_v14  ;;  %1067 = vmatpush.msrb.mxu2 %v1002_v37  ;;  %v1022_v37 = vld [vmem:[#allocation7 + $0x310] sm:$0xff] }
  0x75   : > { %1196 = vmatpush.msra.mxu0 %v1005_v38  ;;  %v1025_v38 = vld [vmem:[#allocation7 + $0x328] sm:$0xff] }
  0x76   : > { %1259 = vmatpush.msra.mxu1 %v1041_v24 }
  0x78   : > { %1260 = vmatpush.msra.mxu1 %v1039_v34 }
  0x7a   : > { %2789 = vmatmul.msk.f32.gmra.mxu0 %vm414_vm0, %v383_v43 }
  0x7b   : > { %2805 = vmatmul.msk.f32.gmra.mxu1 %vm414_vm0, %v383_v43 }
  0x82   : > { %2790 = vmatmul.msk.f32.gmra.mxu0 %vm414_vm0, %v384_v46 }
  0x83   : > { %2806 = vmatmul.msk.f32.gmra.mxu1 %vm414_vm0, %v384_v46 }
  0x8a   : > { %2791 = vmatmul.msk.f32.gmra.mxu0 %vm414_vm0, %v385_v54 }
  0x8b   : > { %2807 = vmatmul.msk.f32.gmra.mxu1 %vm414_vm0, %v385_v54 }
  0x92   : > { %2792 = vmatmul.msk.f32.gmra.mxu0 %vm414_vm0, %v386_v1 }
  0x93   : > { %2808 = vmatmul.msk.f32.gmra.mxu1 %vm414_vm0, %v386_v1 }
  0x9a   : > { %2793 = vmatmul.msk.f32.gmra.mxu0 %vm414_vm0, %v387_v12 }
  0x9b   : > { %2809 = vmatmul.msk.f32.gmra.mxu1 %vm414_vm0, %v387_v12 }
  0xa2   : > { %2794 = vmatmul.msk.f32.gmra.mxu0 %vm414_vm0, %v388_v21 }
  0xa3   : > { %2810 = vmatmul.msk.f32.gmra.mxu1 %vm414_vm0, %v388_v21 }
  0xaa   : > { %2795 = vmatmul.msk.f32.gmra.mxu0 %vm414_vm0, %v389_v29 }
  0xab   : > { %2811 = vmatmul.msk.f32.gmra.mxu1 %vm414_vm0, %v389_v29 }
  0xb2   : > { %2796 = vmatmul.msk.f32.gmra.mxu0 %vm414_vm0, %v390_v31 }
  0xb3   : > { %2812 = vmatmul.msk.f32.gmra.mxu1 %vm414_vm0, %v390_v31 }
  0xba   : > { %2797 = vmatmul.msk.f32.gmra.mxu0 %vm414_vm0, %v391_v35 }
  0xbb   : > { %2813 = vmatmul.msk.f32.gmra.mxu1 %vm414_vm0, %v391_v35 }
  0xbf   : > { %v480_v43 = vpop.f32.mrf.mxu0 }
  0xc0   : > { %v545_v44 = vpop.f32.mrf.mxu1  ;;  %v481_v45 = vadd.f32 %v480_v43, %v3438_v39 }
  0xc1   : > { %v546_v46 = vadd.f32 %v545_v44, %v3440_v40 }
  0xc2   : > { %v593_v49 = vmax.f32 %v481_v45, 0.0  ;;  %v1034_v45 = vld [vmem:[#allocation7 + $0x370] sm:$0xff] }
  0xc3   : > { %v594_v50 = vmax.f32 %v546_v46, 0.0  ;;  %v1037_v46 = vld [vmem:[#allocation7 + $0x388] sm:$0xff]  ;;  %1132 = vmatpush.msrb.mxu3 %v1034_v45 }
  0xc4   : > { %711 = vmatmul.f32.vlgmr.msra.gmra.mxu2 %v593_v49  ;;  %841 = vmatmul.f32.vlgmr.msrb.gmra.mxu0 %v593_v49  ;;  %v1000_v49 = vld [vmem:[#allocation7 + $0x260] sm:$0xff] }
  0xc5   : > { %776 = vmatmul.f32.vlgmr.msra.gmra.mxu3 %v594_v50  ;;  %906 = vmatmul.f32.vlgmr.msrb.gmra.mxu1 %v594_v50  ;;  %v1003_v50 = vld [vmem:[#allocation7 + $0x278] sm:$0xff] }
  0xc6   : > { %1261 = vmatpush.msra.mxu1 %v1037_v46  ;;  %1068 = vmatpush.msrb.mxu2 %v1000_v49  ;;  %v991_v49 = vld [vmem:[#allocation7 + $0x218] sm:$0xff] }
  0xc7   : > { %v483_v53 = vpop.f32.mrf.mxu0  ;;  %1197 = vmatpush.msra.mxu0 %v1003_v50  ;;  %v1020_v50 = vld [vmem:[#allocation7 + $0x300] sm:$0xff] }
  0xc8   : > { %v548_v54 = vpop.f32.mrf.mxu1  ;;  %v484_v55 = vadd.f32 %v483_v53, %v3438_v39 }
  0xc9   : > { %v549_v56 = vadd.f32 %v548_v54, %v3440_v40 }
  0xca   : > { %v595_v59 = vmax.f32 %v484_v55, 0.0  ;;  %v1032_v55 = vld [vmem:[#allocation7 + $0x360] sm:$0xff] }
  0xcb   : > { %v596_v60 = vmax.f32 %v549_v56, 0.0  ;;  %v1035_v56 = vld [vmem:[#allocation7 + $0x378] sm:$0xff]  ;;  %1133 = vmatpush.msrb.mxu3 %v1032_v55 }
  0xcc   : > { %714 = vmatmul.f32.gmra.mxu2 %v595_v59  ;;  %844 = vmatmul.f32.gmra.mxu0 %v595_v59  ;;  %v998_v59 = vld [vmem:[#allocation7 + $0x250] sm:$0xff] }
  0xcd   : > { %779 = vmatmul.f32.gmra.mxu3 %v596_v60  ;;  %909 = vmatmul.f32.gmra.mxu1 %v596_v60  ;;  %v1001_v60 = vld [vmem:[#allocation7 + $0x268] sm:$0xff] }
  0xce   : > { %1262 = vmatpush.msra.mxu1 %v1035_v56  ;;  %1069 = vmatpush.msrb.mxu2 %v998_v59 }
  0xcf   : > { %v486_v63 = vpop.f32.mrf.mxu0  ;;  %1198 = vmatpush.msra.mxu0 %v1001_v60 }
  0xd0   : > { %v551_v0 = vpop.f32.mrf.mxu1  ;;  %v487_v1 = vadd.f32 %v486_v63, %v3438_v39 }
  0xd1   : > { %v552_v2 = vadd.f32 %v551_v0, %v3440_v40 }
  0xd2   : > { %v597_v5 = vmax.f32 %v487_v1, 0.0  ;;  %v1030_v1 = vld [vmem:[#allocation7 + $0x350] sm:$0xff] }
  0xd3   : > { %v598_v6 = vmax.f32 %v552_v2, 0.0  ;;  %v1033_v2 = vld [vmem:[#allocation7 + $0x368] sm:$0xff]  ;;  %1134 = vmatpush.msrb.mxu3 %v1030_v1 }
  0xd4   : > { %717 = vmatmul.f32.gmra.mxu2 %v597_v5  ;;  %847 = vmatmul.f32.gmra.mxu0 %v597_v5  ;;  %v996_v5 = vld [vmem:[#allocation7 + $0x240] sm:$0xff] }
  0xd5   : > { %782 = vmatmul.f32.gmra.mxu3 %v598_v6  ;;  %912 = vmatmul.f32.gmra.mxu1 %v598_v6  ;;  %v999_v6 = vld [vmem:[#allocation7 + $0x258] sm:$0xff] }
  0xd6   : > { %1263 = vmatpush.msra.mxu1 %v1033_v2  ;;  %1070 = vmatpush.msrb.mxu2 %v996_v5  ;;  %v1382_v5 = vld [vmem:[#allocation7 + $0x4f0] sm:$0xff] }
  0xd7   : > { %v489_v9 = vpop.f32.mrf.mxu0  ;;  %1199 = vmatpush.msra.mxu0 %v999_v6 }
  0xd8   : > { %v554_v10 = vpop.f32.mrf.mxu1  ;;  %v490_v11 = vadd.f32 %v489_v9, %v3438_v39 }
  0xd9   : > { %v555_v12 = vadd.f32 %v554_v10, %v3440_v40 }
  0xda   : > { %v599_v15 = vmax.f32 %v490_v11, 0.0  ;;  %v1028_v11 = vld [vmem:[#allocation7 + $0x340] sm:$0xff] }
  0xdb   : > { %v600_v16 = vmax.f32 %v555_v12, 0.0  ;;  %v1031_v12 = vld [vmem:[#allocation7 + $0x358] sm:$0xff]  ;;  %1135 = vmatpush.msrb.mxu3 %v1028_v11  ;;  %v1380_v11 = vld [vmem:[#allocation7 + $0x4e0] sm:$0xff] }
  0xdc   : > { %720 = vmatmul.f32.gmra.mxu2 %v599_v15  ;;  %850 = vmatmul.f32.gmra.mxu0 %v599_v15  ;;  %v994_v15 = vld [vmem:[#allocation7 + $0x230] sm:$0xff] }
  0xdd   : > { %785 = vmatmul.f32.gmra.mxu3 %v600_v16  ;;  %915 = vmatmul.f32.gmra.mxu1 %v600_v16  ;;  %v997_v16 = vld [vmem:[#allocation7 + $0x248] sm:$0xff] }
  0xde   : > { %1264 = vmatpush.msra.mxu1 %v1031_v12  ;;  %1071 = vmatpush.msrb.mxu2 %v994_v15  ;;  %v1383_v12 = vld [vmem:[#allocation7 + $0x4f8] sm:$0xff] }
  0xdf   : > { %v492_v19 = vpop.f32.mrf.mxu0  ;;  %1200 = vmatpush.msra.mxu0 %v997_v16  ;;  %v1415_v15 = vld [vmem:[#allocation7 + $0x5f8] sm:$0xff] }
  0xe0   : > { %v557_v20 = vpop.f32.mrf.mxu1  ;;  %v493_v21 = vadd.f32 %v492_v19, %v3438_v39 }
  0xe1   : > { %v558_v22 = vadd.f32 %v557_v20, %v3440_v40 }
  0xe2   : > { %v601_v25 = vmax.f32 %v493_v21, 0.0  ;;  %v1026_v21 = vld [vmem:[#allocation7 + $0x330] sm:$0xff] }
  0xe3   : > { %v602_v26 = vmax.f32 %v558_v22, 0.0  ;;  %v1029_v22 = vld [vmem:[#allocation7 + $0x348] sm:$0xff]  ;;  %1136 = vmatpush.msrb.mxu3 %v1026_v21 }
  0xe4   : > { %723 = vmatmul.f32.gmra.mxu2 %v601_v25  ;;  %853 = vmatmul.f32.gmra.mxu0 %v601_v25  ;;  %v992_v25 = vld [vmem:[#allocation7 + $0x220] sm:$0xff] }
  0xe5   : > { %788 = vmatmul.f32.gmra.mxu3 %v602_v26  ;;  %918 = vmatmul.f32.gmra.mxu1 %v602_v26  ;;  %v995_v26 = vld [vmem:[#allocation7 + $0x238] sm:$0xff] }
  0xe6   : > { %1265 = vmatpush.msra.mxu1 %v1029_v22  ;;  %1072 = vmatpush.msrb.mxu2 %v992_v25  ;;  %v1378_v22 = vld [vmem:[#allocation7 + $0x4d0] sm:$0xff] }
  0xe7   : > { %v495_v29 = vpop.f32.mrf.mxu0  ;;  %1201 = vmatpush.msra.mxu0 %v995_v26 }
  0xe8   : > { %v560_v30 = vpop.f32.mrf.mxu1  ;;  %v496_v31 = vadd.f32 %v495_v29, %v3438_v39 }
  0xe9   : > { %v561_v32 = vadd.f32 %v560_v30, %v3440_v40 }
  0xea   : > { %v603_v35 = vmax.f32 %v496_v31, 0.0  ;;  %v1024_v31 = vld [vmem:[#allocation7 + $0x320] sm:$0xff] }
  0xeb   : > { %v604_v36 = vmax.f32 %v561_v32, 0.0  ;;  %v1027_v32 = vld [vmem:[#allocation7 + $0x338] sm:$0xff]  ;;  %1137 = vmatpush.msrb.mxu3 %v1024_v31 }
  0xec   : > { %726 = vmatmul.f32.gmra.mxu2 %v603_v35  ;;  %856 = vmatmul.f32.gmra.mxu0 %v603_v35  ;;  %v990_v35 = vld [vmem:[#allocation7 + $0x210] sm:$0xff] }
  0xed   : > { %791 = vmatmul.f32.gmra.mxu3 %v604_v36  ;;  %921 = vmatmul.f32.gmra.mxu1 %v604_v36  ;;  %v993_v36 = vld [vmem:[#allocation7 + $0x228] sm:$0xff] }
  0xee   : > { %1266 = vmatpush.msra.mxu1 %v1027_v32  ;;  %1073 = vmatpush.msrb.mxu2 %v990_v35 }
  0xef   : > { %v498_v41 = vpop.f32.mrf.mxu0  ;;  %1202 = vmatpush.msra.mxu0 %v993_v36  ;;  %1138 = vmatpush.msrb.mxu3 %v1022_v37  ;;  %v1376_v36 = vld [vmem:[#allocation7 + $0x4c0] sm:$0xff]  ;;  %v1379_v37 = vld [vmem:[#allocation7 + $0x4d8] sm:$0xff] }
  0xf0   : > { %v563_v42 = vpop.f32.mrf.mxu1  ;;  %v499_v43 = vadd.f32 %v498_v41, %v3438_v39  ;;  %1267 = vmatpush.msra.mxu1 %v1025_v38 }
  0xf1   : > { %v564_v44 = vadd.f32 %v563_v42, %v3440_v40  ;;  %1203 = vmatpush.msra.mxu0 %v991_v49  ;;  %1139 = vmatpush.msrb.mxu3 %v1020_v50 }
  0xf2   : > { %v605_v47 = vmax.f32 %v499_v43, 0.0 }
  0xf3   : > { %v606_v48 = vmax.f32 %v564_v44, 0.0 }
  0xf4   : > { %729 = vmatmul.f32.gmra.mxu2 %v605_v47  ;;  %859 = vmatmul.f32.gmra.mxu0 %v605_v47  ;;  %v1023_v47 = vld [vmem:[#allocation7 + $0x318] sm:$0xff] }
  0xf5   : > { %794 = vmatmul.f32.gmra.mxu3 %v606_v48  ;;  %924 = vmatmul.f32.gmra.mxu1 %v606_v48  ;;  %v988_v48 = vld [vmem:[#allocation7 + $0x200] sm:$0xff] }
  0xf6   : > { %1268 = vmatpush.msra.mxu1 %v1023_v47  ;;  %1074 = vmatpush.msrb.mxu2 %v988_v48 }
  0xf7   : > { %v501_v51 = vpop.f32.mrf.mxu0 }
  0xf8   : > { %v566_v52 = vpop.f32.mrf.mxu1  ;;  %v502_v53 = vadd.f32 %v501_v51, %v3438_v39  ;;  %1423 = vmatpush.msra.mxu2 %v1382_v5 }
  0xf9   : > { %v567_v54 = vadd.f32 %v566_v52, %v3440_v40 }
  0xfa   : > { %v607_v57 = vmax.f32 %v502_v53, 0.0  ;;  %v1021_v53 = vld [vmem:[#allocation7 + $0x308] sm:$0xff]  ;;  %1424 = vmatpush.msra.mxu2 %v1380_v11 }
  0xfb   : > { %v608_v58 = vmax.f32 %v567_v54, 0.0  ;;  %1269 = vmatpush.msra.mxu1 %v1021_v53  ;;  %v1377_v53 = vld [vmem:[#allocation7 + $0x4c8] sm:$0xff] }
  0xfc   : > { %732 = vmatmul.f32.gmra.mxu2 %v607_v57  ;;  %862 = vmatmul.f32.gmra.mxu0 %v607_v57 }
  0xfd   : > { %797 = vmatmul.f32.gmra.mxu3 %v608_v58  ;;  %927 = vmatmul.f32.gmra.mxu1 %v608_v58  ;;  %v989_v58 = vld [vmem:[#allocation7 + $0x208] sm:$0xff] }
  0xfe   : > { %1204 = vmatpush.msra.mxu0 %v989_v58  ;;  %1618 = vmatpush.msrb.mxu1 %v1415_v15  ;;  %v1406_v58 = vld [vmem:[#allocation7 + $0x5b0] sm:$0xff] }
  0xff   : > { %v504_v61 = vpop.f32.mrf.mxu0  ;;  %1425 = vmatpush.msra.mxu2 %v1378_v22  ;;  %v1370_v15 = vld [vmem:[#allocation7 + $0x490] sm:$0xff] }
 0x100   : > { %v569_v62 = vpop.f32.mrf.mxu1  ;;  %v505_v63 = vadd.f32 %v504_v61, %v3438_v39  ;;  %1553 = vmatpush.msrb.mxu0 %v1383_v12 }
 0x101   : > { %v570_v0 = vadd.f32 %v569_v62, %v3440_v40  ;;  %1426 = vmatpush.msra.mxu2 %v1376_v36 }
 0x102   : > { %v609_v3 = vmax.f32 %v505_v63, 0.0 }
 0x103   : > { %v610_v4 = vmax.f32 %v570_v0, 0.0 }
 0x104   : > { %735 = vmatmul.f32.gmra.mxu2 %v609_v3  ;;  %865 = vmatmul.f32.gmra.mxu0 %v609_v3 }
 0x105   : > { %800 = vmatmul.f32.gmra.mxu3 %v610_v4  ;;  %930 = vmatmul.f32.gmra.mxu1 %v610_v4 }
 0x107   : > { %v507_v7 = vpop.f32.mrf.mxu0 }
 0x108   : > { %v572_v8 = vpop.f32.mrf.mxu1  ;;  %v508_v9 = vadd.f32 %v507_v7, %v3438_v39 }
 0x109   : > { %v573_v10 = vadd.f32 %v572_v8, %v3440_v40  ;;  %v1414_v8 = vld [vmem:[#allocation7 + $0x5f0] sm:$0xff] }
 0x10a   : > { %v611_v13 = vmax.f32 %v508_v9, 0.0  ;;  %v689_v9 = vld [vmem:[#allocation8] sm:$0x3]  ;;  %1488 = vmatpush.msra.mxu3 %v1414_v8 }
 0x10b   : > { %v612_v14 = vmax.f32 %v573_v10, 0.0  ;;  %v3474_v10 = vperm.slane %v689_v9, 1  ;;  %v1404_v8 = vld [vmem:[#allocation7 + $0x5a0] sm:$0xff] }
 0x10c   : > { %738 = vmatmul.f32.gmra.mxu2 %v611_v13  ;;  %868 = vmatmul.f32.gmra.mxu0 %v611_v13 }
 0x10d   : > { %803 = vmatmul.f32.gmra.mxu3 %v612_v14  ;;  %933 = vmatmul.f32.gmra.mxu1 %v612_v14  ;;  %v1412_v14 = vld [vmem:[#allocation7 + $0x5e0] sm:$0xff] }
 0x10e   : > { %1489 = vmatpush.msra.mxu3 %v1412_v14 }
 0x10f   : > { %v510_v17 = vpop.f32.mrf.mxu0 }
 0x110   : > { %v575_v18 = vpop.f32.mrf.mxu1  ;;  %v511_v19 = vadd.f32 %v510_v17, %v3438_v39  ;;  %v3477_v17 = vperm.slane %v689_v9, 0  ;;  %v1407_v9 = vld [vmem:[#allocation7 + $0x5b8] sm:$0xff] }
 0x111   : > { %v576_v20 = vadd.f32 %v575_v18, %v3440_v40 }
 0x112   : > { %v613_v23 = vmax.f32 %v511_v19, 0.0 }
 0x113   : > { %v614_v24 = vmax.f32 %v576_v20, 0.0 }
 0x114   : > { %741 = vmatmul.f32.gmra.mxu2 %v613_v23  ;;  %871 = vmatmul.f32.gmra.mxu0 %v613_v23  ;;  %v1381_v23 = vld [vmem:[#allocation7 + $0x4e8] sm:$0xff] }
 0x115   : > { %806 = vmatmul.f32.gmra.mxu3 %v614_v24  ;;  %936 = vmatmul.f32.gmra.mxu1 %v614_v24 }
 0x116   : > { %1554 = vmatpush.msrb.mxu0 %v1381_v23 }
 0x117   : > { %v513_v27 = vpop.f32.mrf.mxu0 }
 0x118   : > { %v578_v28 = vpop.f32.mrf.mxu1  ;;  %v514_v29 = vadd.f32 %v513_v27, %v3438_v39  ;;  %1555 = vmatpush.msrb.mxu0 %v1379_v37 }
 0x119   : > { %v579_v30 = vadd.f32 %v578_v28, %v3440_v40  ;;  %v1410_v28 = vld [vmem:[#allocation7 + $0x5d0] sm:$0xff] }
 0x11a   : > { %v615_v33 = vmax.f32 %v514_v29, 0.0  ;;  %v1413_v29 = vld [vmem:[#allocation7 + $0x5e8] sm:$0xff]  ;;  %1490 = vmatpush.msra.mxu3 %v1410_v28  ;;  %1556 = vmatpush.msrb.mxu0 %v1377_v53 }
 0x11b   : > { %v616_v34 = vmax.f32 %v579_v30, 0.0  ;;  %1619 = vmatpush.msrb.mxu1 %v1413_v29 }
 0x11c   : > { %744 = vmatmul.f32.gmra.mxu2 %v615_v33  ;;  %874 = vmatmul.f32.gmra.mxu0 %v615_v33 }
 0x11d   : > { %809 = vmatmul.f32.gmra.mxu3 %v616_v34  ;;  %939 = vmatmul.f32.gmra.mxu1 %v616_v34 }
 0x11f   : > { %v516_v41 = vpop.f32.mrf.mxu0 }
 0x120   : > { %v581_v42 = vpop.f32.mrf.mxu1  ;;  %v517_v43 = vadd.f32 %v516_v41, %v3438_v39 }
 0x121   : > { %v582_v44 = vadd.f32 %v581_v42, %v3440_v40 }
 0x122   : > { %v617_v45 = vmax.f32 %v517_v43, 0.0 }
 0x123   : > { %v618_v46 = vmax.f32 %v582_v44, 0.0  ;;  %v1408_v44 = vld [vmem:[#allocation7 + $0x5c0] sm:$0xff] }
 0x124   : > { %747 = vmatmul.f32.gmra.mxu2 %v617_v45  ;;  %877 = vmatmul.f32.gmra.mxu0 %v617_v45  ;;  %v1411_v45 = vld [vmem:[#allocation7 + $0x5d8] sm:$0xff] }
 0x125   : > { %812 = vmatmul.f32.gmra.mxu3 %v618_v46  ;;  %942 = vmatmul.f32.gmra.mxu1 %v618_v46 }
 0x126   : > { %1491 = vmatpush.msra.mxu3 %v1408_v44  ;;  %1620 = vmatpush.msrb.mxu1 %v1411_v45 }
 0x127   : > { %v519_v51 = vpop.f32.mrf.mxu0 }
 0x128   : > { %v584_v52 = vpop.f32.mrf.mxu1  ;;  %v520_v54 = vadd.f32 %v519_v51, %v3438_v39  ;;  %1492 = vmatpush.msra.mxu3 %v1406_v58 }
 0x129   : > { %v585_v55 = vadd.f32 %v584_v52, %v3440_v40  ;;  %v1374_v52 = vld [vmem:[#allocation7 + $0x4b0] sm:$0xff] }
 0x12a   : > { %v619_v56 = vmax.f32 %v520_v54, 0.0  ;;  %1427 = vmatpush.msra.mxu2 %v1374_v52  ;;  %1493 = vmatpush.msra.mxu3 %v1404_v8 }
 0x12b   : > { %v620_v57 = vmax.f32 %v585_v55, 0.0 }
 0x12c   : > { %750 = vmatmul.f32.gmra.mxu2 %v619_v56  ;;  %880 = vmatmul.f32.gmra.mxu0 %v619_v56 }
 0x12d   : > { %815 = vmatmul.f32.gmra.mxu3 %v620_v57  ;;  %945 = vmatmul.f32.gmra.mxu1 %v620_v57 }
 0x12f   : > { %v522_v59 = vpop.f32.mrf.mxu0 }
 0x130   : > { %v587_v60 = vpop.f32.mrf.mxu1  ;;  %v523_v61 = vadd.f32 %v522_v59, %v3438_v39  ;;  %v1409_v59 = vld [vmem:[#allocation7 + $0x5c8] sm:$0xff] }
 0x131   : > { %v588_v62 = vadd.f32 %v587_v60, %v3440_v40  ;;  %1621 = vmatpush.msrb.mxu1 %v1409_v59 }
 0x132   : > { %v621_v63 = vmax.f32 %v523_v61, 0.0 }
 0x133   : > { %v622_v0 = vmax.f32 %v588_v62, 0.0  ;;  %1622 = vmatpush.msrb.mxu1 %v1407_v9 }
 0x134   : > { %753 = vmatmul.f32.gmra.mxu2 %v621_v63  ;;  %883 = vmatmul.f32.gmra.mxu0 %v621_v63 }
 0x135   : > { %818 = vmatmul.f32.gmra.mxu3 %v622_v0  ;;  %948 = vmatmul.f32.gmra.mxu1 %v622_v0 }
 0x137   : > { %v525_v1 = vpop.f32.mrf.mxu0 }
 0x138   : > { %v590_v2 = vpop.f32.mrf.mxu1  ;;  %v526_v3 = vadd.f32 %v525_v1, %v3438_v39 }
 0x139   : > { %v591_v4 = vadd.f32 %v590_v2, %v3440_v40  ;;  %v1372_v2 = vld [vmem:[#allocation7 + $0x4a0] sm:$0xff] }
 0x13a   : > { %v623_v6 = vmax.f32 %v526_v3, 0.0  ;;  %v1375_v3 = vld [vmem:[#allocation7 + $0x4b8] sm:$0xff]  ;;  %1428 = vmatpush.msra.mxu2 %v1372_v2 }
 0x13b   : > { %v624_v7 = vmax.f32 %v591_v4, 0.0  ;;  %1557 = vmatpush.msrb.mxu0 %v1375_v3 }
 0x13c   : > { %756 = vmatmul.f32.gmra.mxu2 %v623_v6  ;;  %886 = vmatmul.f32.gmra.mxu0 %v623_v6 }
 0x13d   : > { %821 = vmatmul.f32.gmra.mxu3 %v624_v7  ;;  %951 = vmatmul.f32.gmra.mxu1 %v624_v7 }
 0x13e   : > { %1429 = vmatpush.msra.mxu2 %v1370_v15 }
 0x141   : > { %v842_v13 = vpop.f32.mrf.mxu0 }
 0x142   : > { %v843_v39 = vadd.f32 %v842_v13, %v3474_v10  ;;  %v907_v40 = vpop.f32.mrf.mxu1 }
 0x144   : > { %v908_v16 = vadd.f32 %v907_v40, %v843_v39 }
 0x146   : > { %v956_v18 = vmax.f32 %v908_v16, 0.0  ;;  %v1373_v16 = vld [vmem:[#allocation7 + $0x4a8] sm:$0xff] }
 0x147   : > { %v712_v19 = vpop.f32.mrf.mxu2  ;;  %1558 = vmatpush.msrb.mxu0 %v1373_v16 }
 0x148   : > { %v713_v20 = vadd.f32 %v712_v19, %v3477_v17  ;;  %1140 = vmatmul.f32.vlgmr.msrb.gmra.mxu3 %v956_v18  ;;  %1270 = vmatmul.f32.vlgmr.msra.gmra.mxu1 %v956_v18  ;;  %v777_v21 = vpop.f32.mrf.mxu3 }
 0x149   : > { %v845_v24 = vpop.f32.mrf.mxu0 }
 0x14a   : > { %v778_v25 = vadd.f32 %v777_v21, %v713_v20  ;;  %v846_v26 = vadd.f32 %v845_v24, %v3474_v10  ;;  %v910_v27 = vpop.f32.mrf.mxu1  ;;  %v1402_v24 = vld [vmem:[#allocation7 + $0x590] sm:$0xff] }
 0x14b   : > { %1494 = vmatpush.msra.mxu3 %v1402_v24  ;;  %v1360_v24 = vld [vmem:[#allocation7 + $0x440] sm:$0xff] }
 0x14c   : > { %v955_v30 = vmax.f32 %v778_v25, 0.0  ;;  %v911_v31 = vadd.f32 %v910_v27, %v846_v26  ;;  %v1405_v25 = vld [vmem:[#allocation7 + $0x5a8] sm:$0xff] }
 0x14d   : > { %1623 = vmatpush.msrb.mxu1 %v1405_v25  ;;  %v1363_v25 = vld [vmem:[#allocation7 + $0x458] sm:$0xff] }
 0x14e   : > { %1075 = vmatmul.f32.vlgmr.msrb.gmra.mxu2 %v955_v30  ;;  %1205 = vmatmul.f32.vlgmr.msra.gmra.mxu0 %v955_v30  ;;  %v958_v32 = vmax.f32 %v911_v31, 0.0  ;;  %v1368_v30 = vld [vmem:[#allocation7 + $0x480] sm:$0xff]  ;;  %v1371_v31 = vld [vmem:[#allocation7 + $0x498] sm:$0xff] }
 0x14f   : > { %v715_v33 = vpop.f32.mrf.mxu2  ;;  %1430 = vmatpush.msra.mxu2 %v1368_v30  ;;  %1559 = vmatpush.msrb.mxu0 %v1371_v31 }
 0x150   : > { %v716_v34 = vadd.f32 %v715_v33, %v3477_v17  ;;  %1143 = vmatmul.f32.gmra.mxu3 %v958_v32  ;;  %1273 = vmatmul.f32.gmra.mxu1 %v958_v32  ;;  %v780_v35 = vpop.f32.mrf.mxu3 }
 0x151   : > { %v848_v38 = vpop.f32.mrf.mxu0 }
 0x152   : > { %v781_v41 = vadd.f32 %v780_v35, %v716_v34  ;;  %v849_v42 = vadd.f32 %v848_v38, %v3474_v10  ;;  %v913_v43 = vpop.f32.mrf.mxu1  ;;  %v1400_v38 = vld [vmem:[#allocation7 + $0x580] sm:$0xff] }
 0x153   : > { %1495 = vmatpush.msra.mxu3 %v1400_v38  ;;  %v1358_v38 = vld [vmem:[#allocation7 + $0x430] sm:$0xff] }
 0x154   : > { %v914_v46 = vadd.f32 %v913_v43, %v849_v42  ;;  %v957_v47 = vmax.f32 %v781_v41, 0.0  ;;  %v1403_v41 = vld [vmem:[#allocation7 + $0x598] sm:$0xff] }
 0x155   : > { %1624 = vmatpush.msrb.mxu1 %v1403_v41  ;;  %v1361_v41 = vld [vmem:[#allocation7 + $0x448] sm:$0xff] }
 0x156   : > { %1078 = vmatmul.f32.gmra.mxu2 %v957_v47  ;;  %1208 = vmatmul.f32.gmra.mxu0 %v957_v47  ;;  %v960_v48 = vmax.f32 %v914_v46, 0.0  ;;  %v1366_v46 = vld [vmem:[#allocation7 + $0x470] sm:$0xff]  ;;  %v1369_v47 = vld [vmem:[#allocation7 + $0x488] sm:$0xff] }
 0x157   : > { %v718_v49 = vpop.f32.mrf.mxu2  ;;  %1431 = vmatpush.msra.mxu2 %v1366_v46  ;;  %1560 = vmatpush.msrb.mxu0 %v1369_v47 }
 0x158   : > { %v719_v50 = vadd.f32 %v718_v49, %v3477_v17  ;;  %1146 = vmatmul.f32.gmra.mxu3 %v960_v48  ;;  %1276 = vmatmul.f32.gmra.mxu1 %v960_v48  ;;  %v783_v51 = vpop.f32.mrf.mxu3 }
 0x159   : > { %v851_v54 = vpop.f32.mrf.mxu0 }
 0x15a   : > { %v784_v55 = vadd.f32 %v783_v51, %v719_v50  ;;  %v852_v56 = vadd.f32 %v851_v54, %v3474_v10  ;;  %v916_v57 = vpop.f32.mrf.mxu1  ;;  %v1398_v54 = vld [vmem:[#allocation7 + $0x570] sm:$0xff] }
 0x15b   : > { %1496 = vmatpush.msra.mxu3 %v1398_v54  ;;  %v1356_v54 = vld [vmem:[#allocation7 + $0x420] sm:$0xff] }
 0x15c   : > { %v917_v60 = vadd.f32 %v916_v57, %v852_v56  ;;  %v959_v61 = vmax.f32 %v784_v55, 0.0  ;;  %v1401_v55 = vld [vmem:[#allocation7 + $0x588] sm:$0xff] }
 0x15d   : > { %1625 = vmatpush.msrb.mxu1 %v1401_v55  ;;  %v1359_v55 = vld [vmem:[#allocation7 + $0x438] sm:$0xff] }
 0x15e   : > { %1081 = vmatmul.f32.gmra.mxu2 %v959_v61  ;;  %1211 = vmatmul.f32.gmra.mxu0 %v959_v61  ;;  %v962_v62 = vmax.f32 %v917_v60, 0.0  ;;  %v1364_v60 = vld [vmem:[#allocation7 + $0x460] sm:$0xff]  ;;  %v1367_v61 = vld [vmem:[#allocation7 + $0x478] sm:$0xff] }
 0x15f   : > { %v721_v63 = vpop.f32.mrf.mxu2  ;;  %1432 = vmatpush.msra.mxu2 %v1364_v60  ;;  %1561 = vmatpush.msrb.mxu0 %v1367_v61 }
 0x160   : > { %v722_v0 = vadd.f32 %v721_v63, %v3477_v17  ;;  %1149 = vmatmul.f32.gmra.mxu3 %v962_v62  ;;  %1279 = vmatmul.f32.gmra.mxu1 %v962_v62  ;;  %v786_v1 = vpop.f32.mrf.mxu3 }
 0x161   : > { %v854_v4 = vpop.f32.mrf.mxu0 }
 0x162   : > { %v787_v5 = vadd.f32 %v786_v1, %v722_v0  ;;  %v855_v6 = vadd.f32 %v854_v4, %v3474_v10  ;;  %v919_v7 = vpop.f32.mrf.mxu1  ;;  %v1396_v4 = vld [vmem:[#allocation7 + $0x560] sm:$0xff] }
 0x163   : > { %1497 = vmatpush.msra.mxu3 %v1396_v4 }
 0x164   : > { %v920_v11 = vadd.f32 %v919_v7, %v855_v6  ;;  %v961_v12 = vmax.f32 %v787_v5, 0.0  ;;  %v1399_v5 = vld [vmem:[#allocation7 + $0x578] sm:$0xff] }
 0x165   : > { %1626 = vmatpush.msrb.mxu1 %v1399_v5  ;;  %v1389_v5 = vld [vmem:[#allocation7 + $0x528] sm:$0xff] }
 0x166   : > { %1084 = vmatmul.f32.gmra.mxu2 %v961_v12  ;;  %1214 = vmatmul.f32.gmra.mxu0 %v961_v12  ;;  %v964_v13 = vmax.f32 %v920_v11, 0.0  ;;  %v1362_v11 = vld [vmem:[#allocation7 + $0x450] sm:$0xff]  ;;  %v1365_v12 = vld [vmem:[#allocation7 + $0x468] sm:$0xff] }
 0x167   : > { %v724_v39 = vpop.f32.mrf.mxu2  ;;  %1433 = vmatpush.msra.mxu2 %v1362_v11  ;;  %1562 = vmatpush.msrb.mxu0 %v1365_v12 }
 0x168   : > { %v725_v40 = vadd.f32 %v724_v39, %v3477_v17  ;;  %1152 = vmatmul.f32.gmra.mxu3 %v964_v13  ;;  %1282 = vmatmul.f32.gmra.mxu1 %v964_v13  ;;  %v789_v14 = vpop.f32.mrf.mxu3 }
 0x169   : > { %v857_v18 = vpop.f32.mrf.mxu0  ;;  %1434 = vmatpush.msra.mxu2 %v1360_v24  ;;  %1563 = vmatpush.msrb.mxu0 %v1363_v25 }
 0x16a   : > { %v790_v19 = vadd.f32 %v789_v14, %v725_v40  ;;  %v858_v20 = vadd.f32 %v857_v18, %v3474_v10  ;;  %v922_v21 = vpop.f32.mrf.mxu1  ;;  %v1394_v18 = vld [vmem:[#allocation7 + $0x550] sm:$0xff] }
 0x16b   : > { %1498 = vmatpush.msra.mxu3 %v1394_v18  ;;  %1435 = vmatpush.msra.mxu2 %v1358_v38 }
 0x16c   : > { %v923_v22 = vadd.f32 %v922_v21, %v858_v20  ;;  %v963_v23 = vmax.f32 %v790_v19, 0.0  ;;  %v1397_v19 = vld [vmem:[#allocation7 + $0x568] sm:$0xff]  ;;  %1564 = vmatpush.msrb.mxu0 %v1361_v41 }
 0x16d   : > { %1627 = vmatpush.msrb.mxu1 %v1397_v19  ;;  %1436 = vmatpush.msra.mxu2 %v1356_v54  ;;  %v1352_v19 = vld [vmem:[#allocation7 + $0x400] sm:$0xff] }
 0x16e   : > { %1087 = vmatmul.f32.gmra.mxu2 %v963_v23  ;;  %1217 = vmatmul.f32.gmra.mxu0 %v963_v23  ;;  %v966_v26 = vmax.f32 %v923_v22, 0.0 }
 0x16f   : > { %v727_v27 = vpop.f32.mrf.mxu2  ;;  %1565 = vmatpush.msrb.mxu0 %v1359_v55  ;;  %v1747_v55 = vld [vmem:[#allocation7 + $0x6f8] sm:$0xff] }
 0x170   : > { %v728_v28 = vadd.f32 %v727_v27, %v3477_v17  ;;  %1155 = vmatmul.f32.gmra.mxu3 %v966_v26  ;;  %1285 = vmatmul.f32.gmra.mxu1 %v966_v26  ;;  %v792_v29 = vpop.f32.mrf.mxu3 }
 0x171   : > { %v860_v32 = vpop.f32.mrf.mxu0 }
 0x172   : > { %v793_v33 = vadd.f32 %v792_v29, %v728_v28  ;;  %v861_v34 = vadd.f32 %v860_v32, %v3474_v10  ;;  %v925_v35 = vpop.f32.mrf.mxu1  ;;  %v1392_v32 = vld [vmem:[#allocation7 + $0x540] sm:$0xff] }
 0x173   : > { %1499 = vmatpush.msra.mxu3 %v1392_v32 }
 0x174   : > { %v926_v36 = vadd.f32 %v925_v35, %v861_v34  ;;  %v965_v37 = vmax.f32 %v793_v33, 0.0  ;;  %v1395_v33 = vld [vmem:[#allocation7 + $0x558] sm:$0xff] }
 0x175   : > { %1628 = vmatpush.msrb.mxu1 %v1395_v33 }
 0x176   : > { %1090 = vmatmul.f32.gmra.mxu2 %v965_v37  ;;  %1220 = vmatmul.f32.gmra.mxu0 %v965_v37  ;;  %v968_v42 = vmax.f32 %v926_v36, 0.0 }
 0x177   : > { %v730_v43 = vpop.f32.mrf.mxu2 }
 0x178   : > { %v731_v44 = vadd.f32 %v730_v43, %v3477_v17  ;;  %1158 = vmatmul.f32.gmra.mxu3 %v968_v42  ;;  %1288 = vmatmul.f32.gmra.mxu1 %v968_v42  ;;  %v795_v45 = vpop.f32.mrf.mxu3 }
 0x179   : > { %v863_v48 = vpop.f32.mrf.mxu0 }
 0x17a   : > { %v796_v49 = vadd.f32 %v795_v45, %v731_v44  ;;  %v864_v50 = vadd.f32 %v863_v48, %v3474_v10  ;;  %v928_v51 = vpop.f32.mrf.mxu1  ;;  %v1390_v48 = vld [vmem:[#allocation7 + $0x530] sm:$0xff] }
 0x17b   : > { %1500 = vmatpush.msra.mxu3 %v1390_v48  ;;  %v1746_v48 = vld [vmem:[#allocation7 + $0x6f0] sm:$0xff] }
 0x17c   : > { %v929_v52 = vadd.f32 %v928_v51, %v864_v50  ;;  %v967_v53 = vmax.f32 %v796_v49, 0.0  ;;  %v1393_v49 = vld [vmem:[#allocation7 + $0x548] sm:$0xff] }
 0x17d   : > { %1629 = vmatpush.msrb.mxu1 %v1393_v49 }
 0x17e   : > { %1093 = vmatmul.f32.gmra.mxu2 %v967_v53  ;;  %1223 = vmatmul.f32.gmra.mxu0 %v967_v53  ;;  %v970_v56 = vmax.f32 %v929_v52, 0.0 }
 0x17f   : > { %v733_v57 = vpop.f32.mrf.mxu2 }
 0x180   : > { %v734_v58 = vadd.f32 %v733_v57, %v3477_v17  ;;  %1161 = vmatmul.f32.gmra.mxu3 %v970_v56  ;;  %1291 = vmatmul.f32.gmra.mxu1 %v970_v56  ;;  %v798_v59 = vpop.f32.mrf.mxu3 }
 0x181   : > { %v866_v62 = vpop.f32.mrf.mxu0 }
 0x182   : > { %v799_v63 = vadd.f32 %v798_v59, %v734_v58  ;;  %v867_v0 = vadd.f32 %v866_v62, %v3474_v10  ;;  %v931_v1 = vpop.f32.mrf.mxu1  ;;  %v1388_v62 = vld [vmem:[#allocation7 + $0x520] sm:$0xff] }
 0x183   : > { %1501 = vmatpush.msra.mxu3 %v1388_v62 }
 0x184   : > { %v932_v2 = vadd.f32 %v931_v1, %v867_v0  ;;  %v969_v3 = vmax.f32 %v799_v63, 0.0  ;;  %v1391_v63 = vld [vmem:[#allocation7 + $0x538] sm:$0xff]  ;;  %v1354_v1 = vld [vmem:[#allocation7 + $0x410] sm:$0xff] }
 0x185   : > { %1630 = vmatpush.msrb.mxu1 %v1391_v63  ;;  %1437 = vmatpush.msra.mxu2 %v1354_v1 }
 0x186   : > { %v972_v6 = vmax.f32 %v932_v2, 0.0  ;;  %1096 = vmatmul.f32.gmra.mxu2 %v969_v3  ;;  %1226 = vmatmul.f32.gmra.mxu0 %v969_v3  ;;  %v1357_v2 = vld [vmem:[#allocation7 + $0x428] sm:$0xff]  ;;  %v1386_v3 = vld [vmem:[#allocation7 + $0x510] sm:$0xff] }
 0x187   : > { %v736_v7 = vpop.f32.mrf.mxu2  ;;  %1566 = vmatpush.msrb.mxu0 %v1357_v2  ;;  %1502 = vmatpush.msra.mxu3 %v1386_v3 }
 0x188   : > { %v737_v8 = vadd.f32 %v736_v7, %v3477_v17  ;;  %1164 = vmatmul.f32.gmra.mxu3 %v972_v6  ;;  %1294 = vmatmul.f32.gmra.mxu1 %v972_v6  ;;  %v801_v9 = vpop.f32.mrf.mxu3 }
 0x189   : > { %v869_v13 = vpop.f32.mrf.mxu0  ;;  %1631 = vmatpush.msrb.mxu1 %v1389_v5  ;;  %1438 = vmatpush.msra.mxu2 %v1352_v19  ;;  %v1745_v5 = vld [vmem:[#allocation7 + $0x6e8] sm:$0xff]  ;;  %v1743_v19 = vld [vmem:[#allocation7 + $0x6d8] sm:$0xff] }
 0x18a   : > { %v802_v39 = vadd.f32 %v801_v9, %v737_v8  ;;  %v870_v40 = vadd.f32 %v869_v13, %v3474_v10  ;;  %v934_v14 = vpop.f32.mrf.mxu1 }
 0x18b   : > { %1787 = vmatpush.msrb.mxu2 %v1746_v48  ;;  %v1736_v48 = vld [vmem:[#allocation7 + $0x6a0] sm:$0xff] }
 0x18c   : > { %v971_v15 = vmax.f32 %v802_v39, 0.0  ;;  %v935_v16 = vadd.f32 %v934_v14, %v870_v40  ;;  %v1387_v14 = vld [vmem:[#allocation7 + $0x518] sm:$0xff] }
 0x18d   : > { %1632 = vmatpush.msrb.mxu1 %v1387_v14 }
 0x18e   : > { %v974_v20 = vmax.f32 %v935_v16, 0.0  ;;  %1099 = vmatmul.f32.gmra.mxu2 %v971_v15  ;;  %1229 = vmatmul.f32.gmra.mxu0 %v971_v15 }
 0x18f   : > { %v739_v21 = vpop.f32.mrf.mxu2 }
 0x190   : > { %v740_v22 = vadd.f32 %v739_v21, %v3477_v17  ;;  %1167 = vmatmul.f32.gmra.mxu3 %v974_v20  ;;  %1297 = vmatmul.f32.gmra.mxu1 %v974_v20  ;;  %v804_v23 = vpop.f32.mrf.mxu3  ;;  %v1355_v20 = vld [vmem:[#allocation7 + $0x418] sm:$0xff]  ;;  %v1384_v21 = vld [vmem:[#allocation7 + $0x500] sm:$0xff] }
 0x191   : > { %v872_v26 = vpop.f32.mrf.mxu0  ;;  %1567 = vmatpush.msrb.mxu0 %v1355_v20  ;;  %1503 = vmatpush.msra.mxu3 %v1384_v21 }
 0x192   : > { %v805_v27 = vadd.f32 %v804_v23, %v740_v22  ;;  %v873_v28 = vadd.f32 %v872_v26, %v3474_v10  ;;  %v937_v29 = vpop.f32.mrf.mxu1  ;;  %v1385_v23 = vld [vmem:[#allocation7 + $0x508] sm:$0xff] }
 0x193   : > { %1633 = vmatpush.msrb.mxu1 %v1385_v23  ;;  %v1772_v23 = vld [vmem:[#allocation7 + $0x7c0] sm:$0xff] }
 0x194   : > { %v973_v30 = vmax.f32 %v805_v27, 0.0  ;;  %v938_v31 = vadd.f32 %v937_v29, %v873_v28 }
 0x196   : > { %v976_v34 = vmax.f32 %v938_v31, 0.0  ;;  %1102 = vmatmul.f32.gmra.mxu2 %v973_v30  ;;  %1232 = vmatmul.f32.gmra.mxu0 %v973_v30  ;;  %v1353_v30 = vld [vmem:[#allocation7 + $0x408] sm:$0xff] }
 0x197   : > { %v742_v35 = vpop.f32.mrf.mxu2  ;;  %1568 = vmatpush.msrb.mxu0 %v1353_v30 }
 0x198   : > { %v743_v36 = vadd.f32 %v742_v35, %v3477_v17  ;;  %1170 = vmatmul.f32.gmra.mxu3 %v976_v34  ;;  %1300 = vmatmul.f32.gmra.mxu1 %v976_v34  ;;  %v807_v37 = vpop.f32.mrf.mxu3 }
 0x199   : > { %v875_v42 = vpop.f32.mrf.mxu0  ;;  %1917 = vmatpush.msra.mxu0 %v1747_v55 }
 0x19a   : > { %v808_v43 = vadd.f32 %v807_v37, %v743_v36  ;;  %v876_v44 = vadd.f32 %v875_v42, %v3474_v10  ;;  %v940_v45 = vpop.f32.mrf.mxu1 }
 0x19b   : > { %1918 = vmatpush.msra.mxu0 %v1745_v5 }
 0x19c   : > { %v975_v46 = vmax.f32 %v808_v43, 0.0  ;;  %v941_v47 = vadd.f32 %v940_v45, %v876_v44 }
 0x19d   : > { %1919 = vmatpush.msra.mxu0 %v1743_v19 }
 0x19e   : > { %v978_v50 = vmax.f32 %v941_v47, 0.0  ;;  %1105 = vmatmul.f32.gmra.mxu2 %v975_v46  ;;  %1235 = vmatmul.f32.gmra.mxu0 %v975_v46 }
 0x19f   : > { %v745_v51 = vpop.f32.mrf.mxu2 }
 0x1a0   : > { %v746_v52 = vadd.f32 %v745_v51, %v3477_v17  ;;  %1173 = vmatmul.f32.gmra.mxu3 %v978_v50  ;;  %1303 = vmatmul.f32.gmra.mxu1 %v978_v50  ;;  %v810_v53 = vpop.f32.mrf.mxu3  ;;  %v1053_v50 = vld [vmem:[#allocation8 + $0x2] sm:$0x3] }
 0x1a1   : > { %v878_v56 = vpop.f32.mrf.mxu0  ;;  %v3510_v51 = vperm.slane %v1053_v50, 1 }
 0x1a2   : > { %v811_v57 = vadd.f32 %v810_v53, %v746_v52  ;;  %v879_v58 = vadd.f32 %v878_v56, %v3474_v10  ;;  %v943_v59 = vpop.f32.mrf.mxu1 }
 0x1a4   : > { %v977_v60 = vmax.f32 %v811_v57, 0.0  ;;  %v944_v61 = vadd.f32 %v943_v59, %v879_v58  ;;  %v3513_v58 = vperm.slane %v1053_v50, 0  ;;  %v1776_v59 = vld [vmem:[#allocation7 + $0x7e0] sm:$0xff] }
 0x1a6   : > { %v980_v0 = vmax.f32 %v944_v61, 0.0  ;;  %1108 = vmatmul.f32.gmra.mxu2 %v977_v60  ;;  %1238 = vmatmul.f32.gmra.mxu0 %v977_v60  ;;  %v1779_v60 = vld [vmem:[#allocation7 + $0x7f8] sm:$0xff] }
 0x1a7   : > { %v748_v4 = vpop.f32.mrf.mxu2  ;;  %1982 = vmatpush.msra.mxu1 %v1779_v60 }
 0x1a8   : > { %v749_v6 = vadd.f32 %v748_v4, %v3477_v17  ;;  %1176 = vmatmul.f32.gmra.mxu3 %v980_v0  ;;  %1306 = vmatmul.f32.gmra.mxu1 %v980_v0  ;;  %v813_v7 = vpop.f32.mrf.mxu3  ;;  %v1742_v4 = vld [vmem:[#allocation7 + $0x6d0] sm:$0xff] }
 0x1a9   : > { %v881_v8 = vpop.f32.mrf.mxu0 }
 0x1aa   : > { %v814_v9 = vadd.f32 %v813_v7, %v749_v6  ;;  %v882_v11 = vadd.f32 %v881_v8, %v3474_v10  ;;  %v946_v12 = vpop.f32.mrf.mxu1 }
 0x1ac   : > { %v979_v13 = vmax.f32 %v814_v9, 0.0  ;;  %v947_v39 = vadd.f32 %v946_v12, %v882_v11  ;;  %v1774_v9 = vld [vmem:[#allocation7 + $0x7d0] sm:$0xff]  ;;  %v1777_v11 = vld [vmem:[#allocation7 + $0x7e8] sm:$0xff] }
 0x1ad   : > { %1983 = vmatpush.msra.mxu1 %v1777_v11 }
 0x1ae   : > { %v982_v40 = vmax.f32 %v947_v39, 0.0  ;;  %1111 = vmatmul.f32.gmra.mxu2 %v979_v13  ;;  %1241 = vmatmul.f32.gmra.mxu0 %v979_v13 }
 0x1af   : > { %v751_v15 = vpop.f32.mrf.mxu2 }
 0x1b0   : > { %v752_v16 = vadd.f32 %v751_v15, %v3477_v17  ;;  %1179 = vmatmul.f32.gmra.mxu3 %v982_v40  ;;  %1309 = vmatmul.f32.gmra.mxu1 %v982_v40  ;;  %v816_v18 = vpop.f32.mrf.mxu3 }
 0x1b1   : > { %v884_v22 = vpop.f32.mrf.mxu0 }
 0x1b2   : > { %v817_v24 = vadd.f32 %v816_v18, %v752_v16  ;;  %v885_v25 = vadd.f32 %v884_v22, %v3474_v10  ;;  %v949_v26 = vpop.f32.mrf.mxu1  ;;  %v1740_v18 = vld [vmem:[#allocation7 + $0x6c0] sm:$0xff] }
 0x1b4   : > { %v981_v27 = vmax.f32 %v817_v24, 0.0  ;;  %v950_v28 = vadd.f32 %v949_v26, %v885_v25  ;;  %v1775_v24 = vld [vmem:[#allocation7 + $0x7d8] sm:$0xff] }
 0x1b5   : > { %1984 = vmatpush.msra.mxu1 %v1775_v24 }
 0x1b6   : > { %v984_v29 = vmax.f32 %v950_v28, 0.0  ;;  %1114 = vmatmul.f32.gmra.mxu2 %v981_v27  ;;  %1244 = vmatmul.f32.gmra.mxu0 %v981_v27 }
 0x1b7   : > { %v754_v31 = vpop.f32.mrf.mxu2 }
 0x1b8   : > { %v755_v32 = vadd.f32 %v754_v31, %v3477_v17  ;;  %1182 = vmatmul.f32.gmra.mxu3 %v984_v29  ;;  %1312 = vmatmul.f32.gmra.mxu1 %v984_v29  ;;  %v819_v33 = vpop.f32.mrf.mxu3 }
 0x1b9   : > { %v887_v34 = vpop.f32.mrf.mxu0 }
 0x1ba   : > { %v820_v35 = vadd.f32 %v819_v33, %v755_v32  ;;  %v888_v36 = vadd.f32 %v887_v34, %v3474_v10  ;;  %v952_v37 = vpop.f32.mrf.mxu1  ;;  %v1778_v10 = vld [vmem:[#allocation7 + $0x7f0] sm:$0xff]  ;;  %v1741_v33 = vld [vmem:[#allocation7 + $0x6c8] sm:$0xff] }
 0x1bb   : > { %1852 = vmatpush.msrb.mxu3 %v1778_v10  ;;  %v1738_v32 = vld [vmem:[#allocation7 + $0x6b0] sm:$0xff]  ;;  %1920 = vmatpush.msra.mxu0 %v1741_v33 }
 0x1bc   : > { %v983_v38 = vmax.f32 %v820_v35, 0.0  ;;  %v953_v41 = vadd.f32 %v952_v37, %v888_v36  ;;  %v1770_v37 = vld [vmem:[#allocation7 + $0x7b0] sm:$0xff] }
 0x1bd   : > { %1853 = vmatpush.msrb.mxu3 %v1776_v59 }
 0x1be   : > { %v986_v42 = vmax.f32 %v953_v41, 0.0  ;;  %1117 = vmatmul.f32.gmra.mxu2 %v983_v38  ;;  %1247 = vmatmul.f32.gmra.mxu0 %v983_v38  ;;  %v1773_v38 = vld [vmem:[#allocation7 + $0x7c8] sm:$0xff] }
 0x1bf   : > { %v757_v43 = vpop.f32.mrf.mxu2  ;;  %1854 = vmatpush.msrb.mxu3 %v1774_v9  ;;  %1985 = vmatpush.msra.mxu1 %v1773_v38 }
 0x1c0   : > { %v758_v44 = vadd.f32 %v757_v43, %v3477_v17  ;;  %1185 = vmatmul.f32.gmra.mxu3 %v986_v42  ;;  %1315 = vmatmul.f32.gmra.mxu1 %v986_v42  ;;  %v822_v45 = vpop.f32.mrf.mxu3  ;;  %v1744_v17 = vld [vmem:[#allocation7 + $0x6e0] sm:$0xff] }
 0x1c1   : > { %1788 = vmatpush.msrb.mxu2 %v1744_v17  ;;  %1855 = vmatpush.msrb.mxu3 %v1772_v23 }
 0x1c2   : > { %v823_v46 = vadd.f32 %v822_v45, %v758_v44 }
 0x1c3   : > { %1789 = vmatpush.msrb.mxu2 %v1742_v4  ;;  %1856 = vmatpush.msrb.mxu3 %v1770_v37  ;;  %v1769_v4 = vld [vmem:[#allocation7 + $0x7a8] sm:$0xff] }
 0x1c4   : > { %v985_v47 = vmax.f32 %v823_v46, 0.0 }
 0x1c5   : > { %v1271_v49 = vpop.f32.mrf.mxu1  ;;  %1790 = vmatpush.msrb.mxu2 %v1740_v18  ;;  %v1767_v18 = vld [vmem:[#allocation7 + $0x798] sm:$0xff] }
 0x1c6   : > { %1120 = vmatmul.f32.gmra.mxu2 %v985_v47  ;;  %1250 = vmatmul.f32.gmra.mxu0 %v985_v47 }
 0x1c7   : > { %1791 = vmatpush.msrb.mxu2 %v1738_v32  ;;  %v1765_v32 = vld [vmem:[#allocation7 + $0x788] sm:$0xff] }
 0x1c9   : > { %1792 = vmatpush.msrb.mxu2 %v1736_v48  ;;  %v1763_v48 = vld [vmem:[#allocation7 + $0x778] sm:$0xff] }
 0x1cb   : > { %v1141_v52 = vpop.f32.mrf.mxu3  ;;  %v1206_v53 = vpop.f32.mrf.mxu0 }
 0x1cc   : > { %v1207_v54 = vadd.f32 %v1206_v53, %v3510_v51  ;;  %v1768_v53 = vld [vmem:[#allocation7 + $0x7a0] sm:$0xff] }
 0x1cd   : > { %v1274_v56 = vpop.f32.mrf.mxu1  ;;  %1857 = vmatpush.msrb.mxu3 %v1768_v53 }
 0x1ce   : > { %v1272_v57 = vadd.f32 %v1271_v49, %v1207_v54  ;;  %v1739_v49 = vld [vmem:[#allocation7 + $0x6b8] sm:$0xff] }
 0x1cf   : > { %1921 = vmatpush.msra.mxu0 %v1739_v49  ;;  %v1771_v54 = vld [vmem:[#allocation7 + $0x7b8] sm:$0xff] }
 0x1d0   : > { %v1320_v61 = vmax.f32 %v1272_v57, 0.0  ;;  %1986 = vmatpush.msra.mxu1 %v1771_v54 }
 0x1d1   : > { %v1076_v62 = vpop.f32.mrf.mxu2 }
 0x1d2   : > { %v1077_v63 = vadd.f32 %v1076_v62, %v3513_v58  ;;  %1504 = vmatmul.f32.vlgmr.msra.gmra.mxu3 %v1320_v61  ;;  %1634 = vmatmul.f32.vlgmr.msrb.gmra.mxu1 %v1320_v61  ;;  %v1734_v62 = vld [vmem:[#allocation7 + $0x690] sm:$0xff] }
 0x1d3   : > { %v1144_v0 = vpop.f32.mrf.mxu3  ;;  %v1209_v1 = vpop.f32.mrf.mxu0  ;;  %1793 = vmatpush.msrb.mxu2 %v1734_v62  ;;  %1987 = vmatpush.msra.mxu1 %v1769_v4  ;;  %v1761_v62 = vld [vmem:[#allocation7 + $0x768] sm:$0xff] }
 0x1d4   : > { %v1142_v2 = vadd.f32 %v1141_v52, %v1077_v63  ;;  %v1210_v3 = vadd.f32 %v1209_v1, %v3510_v51  ;;  %v1737_v63 = vld [vmem:[#allocation7 + $0x6a8] sm:$0xff] }
 0x1d5   : > { %v1277_v6 = vpop.f32.mrf.mxu1  ;;  %1922 = vmatpush.msra.mxu0 %v1737_v63  ;;  %1988 = vmatpush.msra.mxu1 %v1767_v18 }
 0x1d6   : > { %v1319_v7 = vmax.f32 %v1142_v2, 0.0  ;;  %v1275_v8 = vadd.f32 %v1274_v56, %v1210_v3  ;;  %v1766_v3 = vld [vmem:[#allocation7 + $0x790] sm:$0xff] }
 0x1d7   : > { %1858 = vmatpush.msrb.mxu3 %v1766_v3  ;;  %1989 = vmatpush.msra.mxu1 %v1765_v32 }
 0x1d8   : > { %1439 = vmatmul.f32.vlgmr.msra.gmra.mxu2 %v1319_v7  ;;  %1569 = vmatmul.f32.vlgmr.msrb.gmra.mxu0 %v1319_v7  ;;  %v1322_v12 = vmax.f32 %v1275_v8, 0.0 }
 0x1d9   : > { %v1079_v13 = vpop.f32.mrf.mxu2  ;;  %1990 = vmatpush.msra.mxu1 %v1763_v48  ;;  %v1753_v48 = vld [vmem:[#allocation7 + $0x728] sm:$0xff] }
 0x1da   : > { %v1080_v39 = vadd.f32 %v1079_v13, %v3513_v58  ;;  %1507 = vmatmul.f32.gmra.mxu3 %v1322_v12  ;;  %1637 = vmatmul.f32.gmra.mxu1 %v1322_v12  ;;  %v1732_v13 = vld [vmem:[#allocation7 + $0x680] sm:$0xff] }
 0x1db   : > { %v1147_v40 = vpop.f32.mrf.mxu3  ;;  %v1212_v14 = vpop.f32.mrf.mxu0  ;;  %1794 = vmatpush.msrb.mxu2 %v1732_v13  ;;  %1991 = vmatpush.msra.mxu1 %v1761_v62  ;;  %v1759_v13 = vld [vmem:[#allocation7 + $0x758] sm:$0xff]  ;;  %v1748_v62 = vld [vmem:[#allocation7 + $0x700] sm:$0xff] }
 0x1dc   : > { %v1145_v15 = vadd.f32 %v1144_v0, %v1080_v39  ;;  %v1213_v16 = vadd.f32 %v1212_v14, %v3510_v51  ;;  %v1735_v39 = vld [vmem:[#allocation7 + $0x698] sm:$0xff] }
 0x1dd   : > { %v1280_v20 = vpop.f32.mrf.mxu1  ;;  %1923 = vmatpush.msra.mxu0 %v1735_v39  ;;  %1992 = vmatpush.msra.mxu1 %v1759_v13 }
 0x1de   : > { %v1278_v21 = vadd.f32 %v1277_v6, %v1213_v16  ;;  %v1321_v22 = vmax.f32 %v1145_v15, 0.0  ;;  %v1764_v16 = vld [vmem:[#allocation7 + $0x780] sm:$0xff] }
 0x1df   : > { %1859 = vmatpush.msrb.mxu3 %v1764_v16 }
 0x1e0   : > { %1442 = vmatmul.f32.gmra.mxu2 %v1321_v22  ;;  %1572 = vmatmul.f32.gmra.mxu0 %v1321_v22  ;;  %v1324_v25 = vmax.f32 %v1278_v21, 0.0 }
 0x1e1   : > { %v1082_v26 = vpop.f32.mrf.mxu2 }
 0x1e2   : > { %v1083_v27 = vadd.f32 %v1082_v26, %v3513_v58  ;;  %1510 = vmatmul.f32.gmra.mxu3 %v1324_v25  ;;  %1640 = vmatmul.f32.gmra.mxu1 %v1324_v25  ;;  %v1730_v26 = vld [vmem:[#allocation7 + $0x670] sm:$0xff] }
 0x1e3   : > { %v1150_v28 = vpop.f32.mrf.mxu3  ;;  %v1215_v29 = vpop.f32.mrf.mxu0  ;;  %1795 = vmatpush.msrb.mxu2 %v1730_v26 }
 0x1e4   : > { %v1148_v30 = vadd.f32 %v1147_v40, %v1083_v27  ;;  %v1216_v31 = vadd.f32 %v1215_v29, %v3510_v51  ;;  %v1733_v27 = vld [vmem:[#allocation7 + $0x688] sm:$0xff] }
 0x1e5   : > { %v1283_v34 = vpop.f32.mrf.mxu1  ;;  %1924 = vmatpush.msra.mxu0 %v1733_v27 }
 0x1e6   : > { %v1281_v35 = vadd.f32 %v1280_v20, %v1216_v31  ;;  %v1323_v36 = vmax.f32 %v1148_v30, 0.0  ;;  %v1762_v31 = vld [vmem:[#allocation7 + $0x770] sm:$0xff] }
 0x1e7   : > { %1860 = vmatpush.msrb.mxu3 %v1762_v31 }
 0x1e8   : > { %1445 = vmatmul.f32.gmra.mxu2 %v1323_v36  ;;  %1575 = vmatmul.f32.gmra.mxu0 %v1323_v36  ;;  %v1326_v41 = vmax.f32 %v1281_v35, 0.0 }
 0x1e9   : > { %v1085_v42 = vpop.f32.mrf.mxu2 }
 0x1ea   : > { %v1086_v43 = vadd.f32 %v1085_v42, %v3513_v58  ;;  %1513 = vmatmul.f32.gmra.mxu3 %v1326_v41  ;;  %1643 = vmatmul.f32.gmra.mxu1 %v1326_v41  ;;  %v1728_v42 = vld [vmem:[#allocation7 + $0x660] sm:$0xff] }
 0x1eb   : > { %v1153_v44 = vpop.f32.mrf.mxu3  ;;  %v1218_v45 = vpop.f32.mrf.mxu0  ;;  %1796 = vmatpush.msrb.mxu2 %v1728_v42 }
 0x1ec   : > { %v1151_v46 = vadd.f32 %v1150_v28, %v1086_v43  ;;  %v1219_v47 = vadd.f32 %v1218_v45, %v3510_v51  ;;  %v1731_v43 = vld [vmem:[#allocation7 + $0x678] sm:$0xff] }
 0x1ed   : > { %v1286_v50 = vpop.f32.mrf.mxu1  ;;  %1925 = vmatpush.msra.mxu0 %v1731_v43  ;;  %v1718_v43 = vld [vmem:[#allocation7 + $0x610] sm:$0xff] }
 0x1ee   : > { %v1284_v10 = vadd.f32 %v1283_v34, %v1219_v47  ;;  %v1325_v52 = vmax.f32 %v1151_v46, 0.0  ;;  %v1760_v47 = vld [vmem:[#allocation7 + $0x760] sm:$0xff] }
 0x1ef   : > { %1861 = vmatpush.msrb.mxu3 %v1760_v47 }
 0x1f0   : > { %1448 = vmatmul.f32.gmra.mxu2 %v1325_v52  ;;  %1578 = vmatmul.f32.gmra.mxu0 %v1325_v52  ;;  %v1328_v17 = vmax.f32 %v1284_v10, 0.0 }
 0x1f1   : > { %v1088_v55 = vpop.f32.mrf.mxu2 }
 0x1f2   : > { %v1089_v56 = vadd.f32 %v1088_v55, %v3513_v58  ;;  %1516 = vmatmul.f32.gmra.mxu3 %v1328_v17  ;;  %1646 = vmatmul.f32.gmra.mxu1 %v1328_v17  ;;  %v1726_v55 = vld [vmem:[#allocation7 + $0x650] sm:$0xff] }
 0x1f3   : > { %v1156_v57 = vpop.f32.mrf.mxu3  ;;  %v1221_v59 = vpop.f32.mrf.mxu0  ;;  %1797 = vmatpush.msrb.mxu2 %v1726_v55 }
 0x1f4   : > { %v1154_v60 = vadd.f32 %v1153_v44, %v1089_v56  ;;  %v1222_v61 = vadd.f32 %v1221_v59, %v3510_v51  ;;  %v1729_v56 = vld [vmem:[#allocation7 + $0x668] sm:$0xff] }
 0x1f5   : > { %v1289_v0 = vpop.f32.mrf.mxu1  ;;  %1926 = vmatpush.msra.mxu0 %v1729_v56  ;;  %v1751_v56 = vld [vmem:[#allocation7 + $0x718] sm:$0xff] }
 0x1f6   : > { %v1287_v1 = vadd.f32 %v1286_v50, %v1222_v61  ;;  %v1327_v2 = vmax.f32 %v1154_v60, 0.0  ;;  %v1758_v61 = vld [vmem:[#allocation7 + $0x750] sm:$0xff] }
 0x1f7   : > { %1862 = vmatpush.msrb.mxu3 %v1758_v61  ;;  %v1719_v61 = vld [vmem:[#allocation7 + $0x618] sm:$0xff] }
 0x1f8   : > { %1451 = vmatmul.f32.gmra.mxu2 %v1327_v2  ;;  %1581 = vmatmul.f32.gmra.mxu0 %v1327_v2  ;;  %v1330_v5 = vmax.f32 %v1287_v1, 0.0 }
 0x1f9   : > { %v1091_v6 = vpop.f32.mrf.mxu2 }
 0x1fa   : > { %v1092_v7 = vadd.f32 %v1091_v6, %v3513_v58  ;;  %1519 = vmatmul.f32.gmra.mxu3 %v1330_v5  ;;  %1649 = vmatmul.f32.gmra.mxu1 %v1330_v5  ;;  %v1724_v6 = vld [vmem:[#allocation7 + $0x640] sm:$0xff] }
 0x1fb   : > { %v1159_v8 = vpop.f32.mrf.mxu3  ;;  %v1224_v9 = vpop.f32.mrf.mxu0  ;;  %1798 = vmatpush.msrb.mxu2 %v1724_v6 }
 0x1fc   : > { %v1157_v11 = vadd.f32 %v1156_v57, %v1092_v7  ;;  %v1225_v12 = vadd.f32 %v1224_v9, %v3510_v51  ;;  %v1727_v7 = vld [vmem:[#allocation7 + $0x658] sm:$0xff] }
 0x1fd   : > { %v1292_v40 = vpop.f32.mrf.mxu1  ;;  %1927 = vmatpush.msra.mxu0 %v1727_v7  ;;  %v1717_v7 = vld [vmem:[#allocation7 + $0x608] sm:$0xff] }
 0x1fe   : > { %v1290_v14 = vadd.f32 %v1289_v0, %v1225_v12  ;;  %v1329_v15 = vmax.f32 %v1157_v11, 0.0  ;;  %v1756_v12 = vld [vmem:[#allocation7 + $0x740] sm:$0xff] }
 0x1ff   : > { %1863 = vmatpush.msrb.mxu3 %v1756_v12 }
 0x200   : > { %1454 = vmatmul.f32.gmra.mxu2 %v1329_v15  ;;  %1584 = vmatmul.f32.gmra.mxu0 %v1329_v15  ;;  %v1332_v19 = vmax.f32 %v1290_v14, 0.0 }
 0x201   : > { %v1094_v20 = vpop.f32.mrf.mxu2 }
 0x202   : > { %v1095_v21 = vadd.f32 %v1094_v20, %v3513_v58  ;;  %1522 = vmatmul.f32.gmra.mxu3 %v1332_v19  ;;  %1652 = vmatmul.f32.gmra.mxu1 %v1332_v19  ;;  %v1722_v20 = vld [vmem:[#allocation7 + $0x630] sm:$0xff] }
 0x203   : > { %v1162_v22 = vpop.f32.mrf.mxu3  ;;  %v1227_v23 = vpop.f32.mrf.mxu0  ;;  %1799 = vmatpush.msrb.mxu2 %v1722_v20 }
 0x204   : > { %v1160_v24 = vadd.f32 %v1159_v8, %v1095_v21  ;;  %v1228_v25 = vadd.f32 %v1227_v23, %v3510_v51  ;;  %v1725_v21 = vld [vmem:[#allocation7 + $0x648] sm:$0xff] }
 0x205   : > { %v1295_v28 = vpop.f32.mrf.mxu1  ;;  %1928 = vmatpush.msra.mxu0 %v1725_v21 }
 0x206   : > { %v1293_v29 = vadd.f32 %v1292_v40, %v1228_v25  ;;  %v1331_v30 = vmax.f32 %v1160_v24, 0.0  ;;  %v1754_v24 = vld [vmem:[#allocation7 + $0x730] sm:$0xff]  ;;  %v1757_v25 = vld [vmem:[#allocation7 + $0x748] sm:$0xff] }
 0x207   : > { %1864 = vmatpush.msrb.mxu3 %v1754_v24  ;;  %1993 = vmatpush.msra.mxu1 %v1757_v25  ;;  %v1417_v25 = vld [vmem:[#allocation8 + $0x4] sm:$0x3] }
 0x208   : > { %1457 = vmatmul.f32.gmra.mxu2 %v1331_v30  ;;  %1587 = vmatmul.f32.gmra.mxu0 %v1331_v30  ;;  %v1334_v33 = vmax.f32 %v1293_v29, 0.0 }
 0x209   : > { %v1097_v34 = vpop.f32.mrf.mxu2 }
 0x20a   : > { %v1098_v35 = vadd.f32 %v1097_v34, %v3513_v58  ;;  %1525 = vmatmul.f32.gmra.mxu3 %v1334_v33  ;;  %1655 = vmatmul.f32.gmra.mxu1 %v1334_v33  ;;  %v1720_v33 = vld [vmem:[#allocation7 + $0x620] sm:$0xff]  ;;  %v1723_v34 = vld [vmem:[#allocation7 + $0x638] sm:$0xff] }
 0x20b   : > { %v1165_v36 = vpop.f32.mrf.mxu3  ;;  %v1230_v37 = vpop.f32.mrf.mxu0  ;;  %1800 = vmatpush.msrb.mxu2 %v1720_v33  ;;  %1929 = vmatpush.msra.mxu0 %v1723_v34  ;;  %v3549_v33 = vperm.slane %v1417_v25, 0  ;;  %v2140_v34 = vld [vmem:[#allocation7 + $0x9e0] sm:$0xff] }
 0x20c   : > { %v1163_v38 = vadd.f32 %v1162_v22, %v1098_v35  ;;  %v1231_v41 = vadd.f32 %v1230_v37, %v3510_v51  ;;  %v1752_v35 = vld [vmem:[#allocation7 + $0x720] sm:$0xff]  ;;  %v1755_v37 = vld [vmem:[#allocation7 + $0x738] sm:$0xff] }
 0x20d   : > { %v1298_v44 = vpop.f32.mrf.mxu1  ;;  %1865 = vmatpush.msrb.mxu3 %v1752_v35  ;;  %1994 = vmatpush.msra.mxu1 %v1755_v37  ;;  %v2143_v35 = vld [vmem:[#allocation7 + $0x9f8] sm:$0xff] }
 0x20e   : > { %v1296_v45 = vadd.f32 %v1295_v28, %v1231_v41  ;;  %v1333_v46 = vmax.f32 %v1163_v38, 0.0  ;;  %1801 = vmatpush.msrb.mxu2 %v1718_v43 }
 0x20f   : > { %1995 = vmatpush.msra.mxu1 %v1753_v48 }
 0x210   : > { %1460 = vmatmul.f32.gmra.mxu2 %v1333_v46  ;;  %1590 = vmatmul.f32.gmra.mxu0 %v1333_v46  ;;  %v1336_v49 = vmax.f32 %v1296_v45, 0.0  ;;  %v1750_v45 = vld [vmem:[#allocation7 + $0x710] sm:$0xff] }
 0x211   : > { %v1100_v50 = vpop.f32.mrf.mxu2  ;;  %1866 = vmatpush.msrb.mxu3 %v1750_v45  ;;  %1996 = vmatpush.msra.mxu1 %v1751_v56  ;;  %v2106_v45 = vld [vmem:[#allocation7 + $0x8d0] sm:$0xff] }
 0x212   : > { %v1101_v10 = vadd.f32 %v1100_v50, %v3513_v58  ;;  %1528 = vmatmul.f32.gmra.mxu3 %v1336_v49  ;;  %1658 = vmatmul.f32.gmra.mxu1 %v1336_v49 }
 0x213   : > { %v1168_v52 = vpop.f32.mrf.mxu3  ;;  %v1233_v53 = vpop.f32.mrf.mxu0  ;;  %1867 = vmatpush.msrb.mxu3 %v1748_v62 }
 0x214   : > { %v1166_v54 = vadd.f32 %v1165_v36, %v1101_v10  ;;  %v1234_v17 = vadd.f32 %v1233_v53, %v3510_v51 }
 0x215   : > { %v1301_v57 = vpop.f32.mrf.mxu1 }
 0x216   : > { %v1299_v59 = vadd.f32 %v1298_v44, %v1234_v17  ;;  %v1335_v60 = vmax.f32 %v1166_v54, 0.0  ;;  %v1721_v44 = vld [vmem:[#allocation7 + $0x628] sm:$0xff] }
 0x217   : > { %1930 = vmatpush.msra.mxu0 %v1721_v44 }
 0x218   : > { %1463 = vmatmul.f32.gmra.mxu2 %v1335_v60  ;;  %1593 = vmatmul.f32.gmra.mxu0 %v1335_v60  ;;  %v1338_v63 = vmax.f32 %v1299_v59, 0.0  ;;  %v1716_v60 = vld [vmem:[#allocation7 + $0x600] sm:$0xff] }
 0x219   : > { %v1103_v0 = vpop.f32.mrf.mxu2  ;;  %1802 = vmatpush.msrb.mxu2 %v1716_v60  ;;  %1931 = vmatpush.msra.mxu0 %v1719_v61  ;;  %v2107_v60 = vld [vmem:[#allocation7 + $0x8d8] sm:$0xff] }
 0x21a   : > { %v1104_v1 = vadd.f32 %v1103_v0, %v3513_v58  ;;  %1531 = vmatmul.f32.gmra.mxu3 %v1338_v63  ;;  %1661 = vmatmul.f32.gmra.mxu1 %v1338_v63 }
 0x21b   : > { %v1171_v2 = vpop.f32.mrf.mxu3  ;;  %v1236_v3 = vpop.f32.mrf.mxu0  ;;  %1932 = vmatpush.msra.mxu0 %v1717_v7 }
 0x21c   : > { %v1169_v4 = vadd.f32 %v1168_v52, %v1104_v1  ;;  %v1237_v5 = vadd.f32 %v1236_v3, %v3510_v51  ;;  %v1749_v1 = vld [vmem:[#allocation7 + $0x708] sm:$0xff] }
 0x21d   : > { %v1304_v8 = vpop.f32.mrf.mxu1  ;;  %1997 = vmatpush.msra.mxu1 %v1749_v1  ;;  %v2139_v1 = vld [vmem:[#allocation7 + $0x9d8] sm:$0xff] }
 0x21e   : > { %v1302_v9 = vadd.f32 %v1301_v57, %v1237_v5  ;;  %v1337_v11 = vmax.f32 %v1169_v4, 0.0 }
 0x21f   : > { %2346 = vmatpush.msrb.mxu1 %v2143_v35 }
 0x220   : > { %1466 = vmatmul.f32.gmra.mxu2 %v1337_v11  ;;  %1596 = vmatmul.f32.gmra.mxu0 %v1337_v11  ;;  %v1340_v39 = vmax.f32 %v1302_v9, 0.0 }
 0x221   : > { %v1106_v40 = vpop.f32.mrf.mxu2 }
 0x222   : > { %v1107_v14 = vadd.f32 %v1106_v40, %v3513_v58  ;;  %1534 = vmatmul.f32.gmra.mxu3 %v1340_v39  ;;  %1664 = vmatmul.f32.gmra.mxu1 %v1340_v39 }
 0x223   : > { %v1174_v15 = vpop.f32.mrf.mxu3  ;;  %v1239_v16 = vpop.f32.mrf.mxu0 }
 0x224   : > { %v1172_v18 = vadd.f32 %v1171_v2, %v1107_v14  ;;  %v1240_v19 = vadd.f32 %v1239_v16, %v3510_v51 }
 0x225   : > { %v1307_v26 = vpop.f32.mrf.mxu1 }
 0x226   : > { %v1305_v22 = vadd.f32 %v1304_v8, %v1240_v19  ;;  %v1339_v23 = vmax.f32 %v1172_v18, 0.0 }
 0x228   : > { %1469 = vmatmul.f32.gmra.mxu2 %v1339_v23  ;;  %1599 = vmatmul.f32.gmra.mxu0 %v1339_v23  ;;  %v1342_v27 = vmax.f32 %v1305_v22, 0.0  ;;  %v2110_v23 = vld [vmem:[#allocation7 + $0x8f0] sm:$0xff] }
 0x229   : > { %v1109_v28 = vpop.f32.mrf.mxu2  ;;  %2151 = vmatpush.msra.mxu2 %v2110_v23  ;;  %v2100_v23 = vld [vmem:[#allocation7 + $0x8a0] sm:$0xff] }
 0x22a   : > { %v1110_v29 = vadd.f32 %v1109_v28, %v3513_v58  ;;  %1537 = vmatmul.f32.gmra.mxu3 %v1342_v27  ;;  %1667 = vmatmul.f32.gmra.mxu1 %v1342_v27 }
 0x22b   : > { %v1242_v30 = vpop.f32.mrf.mxu0  ;;  %v1177_v36 = vpop.f32.mrf.mxu3 }
 0x22c   : > { %v1175_v31 = vadd.f32 %v1174_v15, %v1110_v29  ;;  %v1243_v32 = vadd.f32 %v1242_v30, %v3510_v51  ;;  %v2111_v30 = vld [vmem:[#allocation7 + $0x8f8] sm:$0xff] }
 0x22d   : > { %v1310_v46 = vpop.f32.mrf.mxu1  ;;  %2281 = vmatpush.msrb.mxu0 %v2111_v30 }
 0x22e   : > { %v1308_v38 = vadd.f32 %v1307_v26, %v1243_v32  ;;  %v1341_v41 = vmax.f32 %v1175_v31, 0.0  ;;  %v3546_v26 = vperm.slane %v1417_v25, 1 }
 0x230   : > { %1472 = vmatmul.f32.gmra.mxu2 %v1341_v41  ;;  %1602 = vmatmul.f32.gmra.mxu0 %v1341_v41  ;;  %v1344_v42 = vmax.f32 %v1308_v38, 0.0 }
 0x231   : > { %v1112_v47 = vpop.f32.mrf.mxu2 }
 0x232   : > { %v1113_v49 = vadd.f32 %v1112_v47, %v3513_v58  ;;  %1540 = vmatmul.f32.gmra.mxu3 %v1344_v42  ;;  %1670 = vmatmul.f32.gmra.mxu1 %v1344_v42 }
 0x233   : > { %v1245_v50 = vpop.f32.mrf.mxu0  ;;  %v1180_v17 = vpop.f32.mrf.mxu3 }
 0x234   : > { %v1178_v10 = vadd.f32 %v1177_v36, %v1113_v49  ;;  %v1246_v52 = vadd.f32 %v1245_v50, %v3510_v51  ;;  %v2138_v50 = vld [vmem:[#allocation7 + $0x9d0] sm:$0xff] }
 0x235   : > { %v1313_v63 = vpop.f32.mrf.mxu1 }
 0x236   : > { %v1311_v53 = vadd.f32 %v1310_v46, %v1246_v52  ;;  %v1343_v54 = vmax.f32 %v1178_v10, 0.0  ;;  %v2109_v46 = vld [vmem:[#allocation7 + $0x8e8] sm:$0xff] }
 0x237   : > { %2282 = vmatpush.msrb.mxu0 %v2109_v46  ;;  %v2141_v10 = vld [vmem:[#allocation7 + $0x9e8] sm:$0xff] }
 0x238   : > { %1475 = vmatmul.f32.gmra.mxu2 %v1343_v54  ;;  %1605 = vmatmul.f32.gmra.mxu0 %v1343_v54  ;;  %v1346_v55 = vmax.f32 %v1311_v53, 0.0 }
 0x239   : > { %v1115_v57 = vpop.f32.mrf.mxu2  ;;  %2347 = vmatpush.msrb.mxu1 %v2141_v10  ;;  %2283 = vmatpush.msrb.mxu0 %v2107_v60 }
 0x23a   : > { %v1116_v59 = vadd.f32 %v1115_v57, %v3513_v58  ;;  %1543 = vmatmul.f32.gmra.mxu3 %v1346_v55  ;;  %1673 = vmatmul.f32.gmra.mxu1 %v1346_v55 }
 0x23b   : > { %v1248_v0 = vpop.f32.mrf.mxu0  ;;  %v1183_v8 = vpop.f32.mrf.mxu3  ;;  %2348 = vmatpush.msrb.mxu1 %v2139_v1 }
 0x23c   : > { %v1181_v2 = vadd.f32 %v1180_v17, %v1116_v59  ;;  %v1249_v3 = vadd.f32 %v1248_v0, %v3510_v51  ;;  %v2104_v59 = vld [vmem:[#allocation7 + $0x8c0] sm:$0xff] }
 0x23d   : > { %v1316_v40 = vpop.f32.mrf.mxu1  ;;  %v2136_v0 = vld [vmem:[#allocation7 + $0x9c0] sm:$0xff] }
 0x23e   : > { %v1314_v4 = vadd.f32 %v1313_v63, %v1249_v3  ;;  %v1345_v5 = vmax.f32 %v1181_v2, 0.0 }
 0x240   : > { %1478 = vmatmul.f32.gmra.mxu2 %v1345_v5  ;;  %1608 = vmatmul.f32.gmra.mxu0 %v1345_v5  ;;  %v1348_v6 = vmax.f32 %v1314_v4, 0.0 }
 0x241   : > { %v1118_v9 = vpop.f32.mrf.mxu2 }
 0x242   : > { %v1119_v11 = vadd.f32 %v1118_v9, %v3513_v58  ;;  %1546 = vmatmul.f32.gmra.mxu3 %v1348_v6  ;;  %1676 = vmatmul.f32.gmra.mxu1 %v1348_v6  ;;  %v2102_v9 = vld [vmem:[#allocation7 + $0x8b0] sm:$0xff] }
 0x243   : > { %v1251_v12 = vpop.f32.mrf.mxu0  ;;  %v1186_v20 = vpop.f32.mrf.mxu3 }
 0x244   : > { %v1184_v13 = vadd.f32 %v1183_v8, %v1119_v11  ;;  %v1252_v39 = vadd.f32 %v1251_v12, %v3510_v51  ;;  %v2142_v51 = vld [vmem:[#allocation7 + $0x9f0] sm:$0xff]  ;;  %v2105_v11 = vld [vmem:[#allocation7 + $0x8c8] sm:$0xff] }
 0x245   : > { %2216 = vmatpush.msra.mxu3 %v2142_v51  ;;  %2284 = vmatpush.msrb.mxu0 %v2105_v11 }
 0x246   : > { %v1317_v14 = vadd.f32 %v1316_v40, %v1252_v39  ;;  %v1347_v15 = vmax.f32 %v1184_v13, 0.0  ;;  %v2134_v40 = vld [vmem:[#allocation7 + $0x9b0] sm:$0xff] }
 0x247   : > { %2217 = vmatpush.msra.mxu3 %v2140_v34 }
 0x248   : > { %1481 = vmatmul.f32.gmra.mxu2 %v1347_v15  ;;  %1611 = vmatmul.f32.gmra.mxu0 %v1347_v15  ;;  %v1350_v16 = vmax.f32 %v1317_v14, 0.0  ;;  %v2137_v14 = vld [vmem:[#allocation7 + $0x9c8] sm:$0xff] }
 0x249   : > { %v1121_v18 = vpop.f32.mrf.mxu2  ;;  %2218 = vmatpush.msra.mxu3 %v2138_v50  ;;  %2349 = vmatpush.msrb.mxu1 %v2137_v14 }
 0x24a   : > { %v1122_v19 = vadd.f32 %v1121_v18, %v3513_v58  ;;  %1549 = vmatmul.f32.gmra.mxu3 %v1350_v16  ;;  %1679 = vmatmul.f32.gmra.mxu1 %v1350_v16  ;;  %v2108_v58 = vld [vmem:[#allocation7 + $0x8e0] sm:$0xff] }
 0x24b   : > { %2152 = vmatpush.msra.mxu2 %v2108_v58  ;;  %2219 = vmatpush.msra.mxu3 %v2136_v0 }
 0x24c   : > { %v1187_v21 = vadd.f32 %v1186_v20, %v1122_v19 }
 0x24d   : > { %2153 = vmatpush.msra.mxu2 %v2106_v45  ;;  %2220 = vmatpush.msra.mxu3 %v2134_v40  ;;  %v2133_v45 = vld [vmem:[#allocation7 + $0x9a8] sm:$0xff] }
 0x24e   : > { %v1349_v22 = vmax.f32 %v1187_v21, 0.0 }
 0x24f   : > { %v1635_v24 = vpop.f32.mrf.mxu1  ;;  %2154 = vmatpush.msra.mxu2 %v2104_v59  ;;  %v2131_v59 = vld [vmem:[#allocation7 + $0x998] sm:$0xff] }
 0x250   : > { %1484 = vmatmul.f32.gmra.mxu2 %v1349_v22  ;;  %1614 = vmatmul.f32.gmra.mxu0 %v1349_v22 }
 0x251   : > { %2155 = vmatpush.msra.mxu2 %v2102_v9  ;;  %v2129_v9 = vld [vmem:[#allocation7 + $0x988] sm:$0xff] }
 0x253   : > { %2156 = vmatpush.msra.mxu2 %v2100_v23  ;;  %v2127_v23 = vld [vmem:[#allocation7 + $0x978] sm:$0xff] }
 0x255   : > { %v1505_v27 = vpop.f32.mrf.mxu3  ;;  %v1570_v28 = vpop.f32.mrf.mxu0 }
 0x256   : > { %v1571_v29 = vadd.f32 %v1570_v28, %v3546_v26  ;;  %v2132_v28 = vld [vmem:[#allocation7 + $0x9a0] sm:$0xff] }
 0x257   : > { %v1638_v31 = vpop.f32.mrf.mxu1  ;;  %2221 = vmatpush.msra.mxu3 %v2132_v28 }
 0x258   : > { %v1636_v32 = vadd.f32 %v1635_v24, %v1571_v29  ;;  %v2103_v24 = vld [vmem:[#allocation7 + $0x8b8] sm:$0xff] }
 0x259   : > { %2285 = vmatpush.msrb.mxu0 %v2103_v24  ;;  %v2135_v29 = vld [vmem:[#allocation7 + $0x9b8] sm:$0xff] }
 0x25a   : > { %v1684_v36 = vmax.f32 %v1636_v32, 0.0  ;;  %2350 = vmatpush.msrb.mxu1 %v2135_v29 }
 0x25b   : > { %v1440_v37 = vpop.f32.mrf.mxu2 }
 0x25c   : > { %v1441_v38 = vadd.f32 %v1440_v37, %v3549_v33  ;;  %1868 = vmatmul.f32.vlgmr.msrb.gmra.mxu3 %v1684_v36  ;;  %1998 = vmatmul.f32.vlgmr.msra.gmra.mxu1 %v1684_v36  ;;  %v2098_v37 = vld [vmem:[#allocation7 + $0x890] sm:$0xff] }
 0x25d   : > { %v1508_v41 = vpop.f32.mrf.mxu3  ;;  %v1573_v42 = vpop.f32.mrf.mxu0  ;;  %2157 = vmatpush.msra.mxu2 %v2098_v37  ;;  %2351 = vmatpush.msrb.mxu1 %v2133_v45  ;;  %v2125_v37 = vld [vmem:[#allocation7 + $0x968] sm:$0xff] }
 0x25e   : > { %v1506_v43 = vadd.f32 %v1505_v27, %v1441_v38  ;;  %v1574_v44 = vadd.f32 %v1573_v42, %v3546_v26  ;;  %v2101_v38 = vld [vmem:[#allocation7 + $0x8a8] sm:$0xff] }
 0x25f   : > { %v1641_v47 = vpop.f32.mrf.mxu1  ;;  %2286 = vmatpush.msrb.mxu0 %v2101_v38  ;;  %2352 = vmatpush.msrb.mxu1 %v2131_v59 }
 0x260   : > { %v1683_v48 = vmax.f32 %v1506_v43, 0.0  ;;  %v1639_v49 = vadd.f32 %v1638_v31, %v1574_v44  ;;  %v2130_v44 = vld [vmem:[#allocation7 + $0x990] sm:$0xff] }
 0x261   : > { %2222 = vmatpush.msra.mxu3 %v2130_v44  ;;  %2353 = vmatpush.msrb.mxu1 %v2129_v9 }
 0x262   : > { %1803 = vmatmul.f32.vlgmr.msrb.gmra.mxu2 %v1683_v48  ;;  %1933 = vmatmul.f32.vlgmr.msra.gmra.mxu0 %v1683_v48  ;;  %v1686_v52 = vmax.f32 %v1639_v49, 0.0 }
 0x263   : > { %v1443_v53 = vpop.f32.mrf.mxu2  ;;  %2354 = vmatpush.msrb.mxu1 %v2127_v23  ;;  %v2117_v23 = vld [vmem:[#allocation7 + $0x928] sm:$0xff] }
 0x264   : > { %v1444_v54 = vadd.f32 %v1443_v53, %v3549_v33  ;;  %1871 = vmatmul.f32.gmra.mxu3 %v1686_v52  ;;  %2001 = vmatmul.f32.gmra.mxu1 %v1686_v52  ;;  %v2096_v53 = vld [vmem:[#allocation7 + $0x880] sm:$0xff] }
 0x265   : > { %v1511_v17 = vpop.f32.mrf.mxu3  ;;  %v1576_v55 = vpop.f32.mrf.mxu0  ;;  %2158 = vmatpush.msra.mxu2 %v2096_v53  ;;  %2355 = vmatpush.msrb.mxu1 %v2125_v37  ;;  %v2123_v53 = vld [vmem:[#allocation7 + $0x958] sm:$0xff]  ;;  %v2112_v37 = vld [vmem:[#allocation7 + $0x900] sm:$0xff] }
 0x266   : > { %v1509_v56 = vadd.f32 %v1508_v41, %v1444_v54  ;;  %v1577_v57 = vadd.f32 %v1576_v55, %v3546_v26  ;;  %v2099_v54 = vld [vmem:[#allocation7 + $0x898] sm:$0xff] }
 0x267   : > { %v1644_v61 = vpop.f32.mrf.mxu1  ;;  %2287 = vmatpush.msrb.mxu0 %v2099_v54  ;;  %2356 = vmatpush.msrb.mxu1 %v2123_v53 }
 0x268   : > { %v1642_v62 = vadd.f32 %v1641_v47, %v1577_v57  ;;  %v1685_v63 = vmax.f32 %v1509_v56, 0.0  ;;  %v2128_v57 = vld [vmem:[#allocation7 + $0x980] sm:$0xff] }
 0x269   : > { %2223 = vmatpush.msra.mxu3 %v2128_v57 }
 0x26a   : > { %1806 = vmatmul.f32.gmra.mxu2 %v1685_v63  ;;  %1936 = vmatmul.f32.gmra.mxu0 %v1685_v63  ;;  %v1688_v2 = vmax.f32 %v1642_v62, 0.0 }
 0x26b   : > { %v1446_v3 = vpop.f32.mrf.mxu2 }
 0x26c   : > { %v1447_v4 = vadd.f32 %v1446_v3, %v3549_v33  ;;  %1874 = vmatmul.f32.gmra.mxu3 %v1688_v2  ;;  %2004 = vmatmul.f32.gmra.mxu1 %v1688_v2  ;;  %v2094_v3 = vld [vmem:[#allocation7 + $0x870] sm:$0xff] }
 0x26d   : > { %v1514_v5 = vpop.f32.mrf.mxu3  ;;  %v1579_v6 = vpop.f32.mrf.mxu0  ;;  %2159 = vmatpush.msra.mxu2 %v2094_v3 }
 0x26e   : > { %v1512_v7 = vadd.f32 %v1511_v17, %v1447_v4  ;;  %v1580_v8 = vadd.f32 %v1579_v6, %v3546_v26  ;;  %v2097_v4 = vld [vmem:[#allocation7 + $0x888] sm:$0xff] }
 0x26f   : > { %v1647_v12 = vpop.f32.mrf.mxu1  ;;  %2288 = vmatpush.msrb.mxu0 %v2097_v4 }
 0x270   : > { %v1645_v13 = vadd.f32 %v1644_v61, %v1580_v8  ;;  %v1687_v39 = vmax.f32 %v1512_v7, 0.0  ;;  %v2126_v8 = vld [vmem:[#allocation7 + $0x970] sm:$0xff] }
 0x271   : > { %2224 = vmatpush.msra.mxu3 %v2126_v8 }
 0x272   : > { %1809 = vmatmul.f32.gmra.mxu2 %v1687_v39  ;;  %1939 = vmatmul.f32.gmra.mxu0 %v1687_v39  ;;  %v1690_v15 = vmax.f32 %v1645_v13, 0.0 }
 0x273   : > { %v1449_v16 = vpop.f32.mrf.mxu2 }
 0x274   : > { %v1450_v18 = vadd.f32 %v1449_v16, %v3549_v33  ;;  %1877 = vmatmul.f32.gmra.mxu3 %v1690_v15  ;;  %2007 = vmatmul.f32.gmra.mxu1 %v1690_v15  ;;  %v2092_v16 = vld [vmem:[#allocation7 + $0x860] sm:$0xff] }
 0x275   : > { %v1517_v19 = vpop.f32.mrf.mxu3  ;;  %v1582_v20 = vpop.f32.mrf.mxu0  ;;  %2160 = vmatpush.msra.mxu2 %v2092_v16 }
 0x276   : > { %v1515_v21 = vadd.f32 %v1514_v5, %v1450_v18  ;;  %v1583_v22 = vadd.f32 %v1582_v20, %v3546_v26  ;;  %v2095_v18 = vld [vmem:[#allocation7 + $0x878] sm:$0xff] }
 0x277   : > { %v1650_v25 = vpop.f32.mrf.mxu1  ;;  %2289 = vmatpush.msrb.mxu0 %v2095_v18  ;;  %v2082_v18 = vld [vmem:[#allocation7 + $0x810] sm:$0xff] }
 0x278   : > { %v1648_v51 = vadd.f32 %v1647_v12, %v1583_v22  ;;  %v1689_v27 = vmax.f32 %v1515_v21, 0.0  ;;  %v2124_v22 = vld [vmem:[#allocation7 + $0x960] sm:$0xff] }
 0x279   : > { %2225 = vmatpush.msra.mxu3 %v2124_v22 }
 0x27a   : > { %1812 = vmatmul.f32.gmra.mxu2 %v1689_v27  ;;  %1942 = vmatmul.f32.gmra.mxu0 %v1689_v27  ;;  %v1692_v58 = vmax.f32 %v1648_v51, 0.0 }
 0x27b   : > { %v1452_v30 = vpop.f32.mrf.mxu2 }
 0x27c   : > { %v1453_v31 = vadd.f32 %v1452_v30, %v3549_v33  ;;  %1880 = vmatmul.f32.gmra.mxu3 %v1692_v58  ;;  %2010 = vmatmul.f32.gmra.mxu1 %v1692_v58  ;;  %v2090_v30 = vld [vmem:[#allocation7 + $0x850] sm:$0xff] }
 0x27d   : > { %v1520_v32 = vpop.f32.mrf.mxu3  ;;  %v1585_v34 = vpop.f32.mrf.mxu0  ;;  %2161 = vmatpush.msra.mxu2 %v2090_v30 }
 0x27e   : > { %v1518_v35 = vadd.f32 %v1517_v19, %v1453_v31  ;;  %v1586_v36 = vadd.f32 %v1585_v34, %v3546_v26  ;;  %v2093_v31 = vld [vmem:[#allocation7 + $0x868] sm:$0xff] }
 0x27f   : > { %v1653_v41 = vpop.f32.mrf.mxu1  ;;  %2290 = vmatpush.msrb.mxu0 %v2093_v31  ;;  %v2115_v31 = vld [vmem:[#allocation7 + $0x918] sm:$0xff] }
 0x280   : > { %v1651_v42 = vadd.f32 %v1650_v25, %v1586_v36  ;;  %v1691_v43 = vmax.f32 %v1518_v35, 0.0  ;;  %v2122_v36 = vld [vmem:[#allocation7 + $0x950] sm:$0xff] }
 0x281   : > { %2226 = vmatpush.msra.mxu3 %v2122_v36  ;;  %v2083_v36 = vld [vmem:[#allocation7 + $0x818] sm:$0xff] }
 0x282   : > { %1815 = vmatmul.f32.gmra.mxu2 %v1691_v43  ;;  %1945 = vmatmul.f32.gmra.mxu0 %v1691_v43  ;;  %v1694_v46 = vmax.f32 %v1651_v42, 0.0 }
 0x283   : > { %v1455_v47 = vpop.f32.mrf.mxu2 }
 0x284   : > { %v1456_v48 = vadd.f32 %v1455_v47, %v3549_v33  ;;  %1883 = vmatmul.f32.gmra.mxu3 %v1694_v46  ;;  %2013 = vmatmul.f32.gmra.mxu1 %v1694_v46  ;;  %v2088_v47 = vld [vmem:[#allocation7 + $0x840] sm:$0xff] }
 0x285   : > { %v1523_v49 = vpop.f32.mrf.mxu3  ;;  %v1588_v50 = vpop.f32.mrf.mxu0  ;;  %2162 = vmatpush.msra.mxu2 %v2088_v47 }
 0x286   : > { %v1521_v10 = vadd.f32 %v1520_v32, %v1456_v48  ;;  %v1589_v52 = vadd.f32 %v1588_v50, %v3546_v26  ;;  %v2091_v48 = vld [vmem:[#allocation7 + $0x858] sm:$0xff] }
 0x287   : > { %v1656_v17 = vpop.f32.mrf.mxu1  ;;  %2291 = vmatpush.msrb.mxu0 %v2091_v48  ;;  %v2081_v48 = vld [vmem:[#allocation7 + $0x808] sm:$0xff] }
 0x288   : > { %v1654_v55 = vadd.f32 %v1653_v41, %v1589_v52  ;;  %v1693_v56 = vmax.f32 %v1521_v10, 0.0  ;;  %v2120_v52 = vld [vmem:[#allocation7 + $0x940] sm:$0xff] }
 0x289   : > { %2227 = vmatpush.msra.mxu3 %v2120_v52 }
 0x28a   : > { %1818 = vmatmul.f32.gmra.mxu2 %v1693_v56  ;;  %1948 = vmatmul.f32.gmra.mxu0 %v1693_v56  ;;  %v1696_v60 = vmax.f32 %v1654_v55, 0.0 }
 0x28b   : > { %v1458_v61 = vpop.f32.mrf.mxu2 }
 0x28c   : > { %v1459_v62 = vadd.f32 %v1458_v61, %v3549_v33  ;;  %1886 = vmatmul.f32.gmra.mxu3 %v1696_v60  ;;  %2016 = vmatmul.f32.gmra.mxu1 %v1696_v60  ;;  %v2086_v61 = vld [vmem:[#allocation7 + $0x830] sm:$0xff] }
 0x28d   : > { %v1526_v63 = vpop.f32.mrf.mxu3  ;;  %v1591_v0 = vpop.f32.mrf.mxu0  ;;  %2163 = vmatpush.msra.mxu2 %v2086_v61 }
 0x28e   : > { %v1524_v1 = vadd.f32 %v1523_v49, %v1459_v62  ;;  %v1592_v2 = vadd.f32 %v1591_v0, %v3546_v26  ;;  %v2089_v62 = vld [vmem:[#allocation7 + $0x848] sm:$0xff] }
 0x28f   : > { %v1659_v5 = vpop.f32.mrf.mxu1  ;;  %2292 = vmatpush.msrb.mxu0 %v2089_v62 }
 0x290   : > { %v1657_v6 = vadd.f32 %v1656_v17, %v1592_v2  ;;  %v1695_v7 = vmax.f32 %v1524_v1, 0.0  ;;  %v2118_v1 = vld [vmem:[#allocation7 + $0x930] sm:$0xff]  ;;  %v2121_v2 = vld [vmem:[#allocation7 + $0x948] sm:$0xff] }
 0x291   : > { %2228 = vmatpush.msra.mxu3 %v2118_v1  ;;  %2357 = vmatpush.msrb.mxu1 %v2121_v2  ;;  %v1781_v1 = vld [vmem:[#allocation8 + $0x6] sm:$0x3] }
 0x292   : > { %1821 = vmatmul.f32.gmra.mxu2 %v1695_v7  ;;  %1951 = vmatmul.f32.gmra.mxu0 %v1695_v7  ;;  %v1698_v11 = vmax.f32 %v1657_v6, 0.0  ;;  %v3582_v2 = vperm.slane %v1781_v1, 1 }
 0x293   : > { %v1461_v12 = vpop.f32.mrf.mxu2 }
 0x294   : > { %v1462_v13 = vadd.f32 %v1461_v12, %v3549_v33  ;;  %1889 = vmatmul.f32.gmra.mxu3 %v1698_v11  ;;  %2019 = vmatmul.f32.gmra.mxu1 %v1698_v11  ;;  %v2084_v11 = vld [vmem:[#allocation7 + $0x820] sm:$0xff]  ;;  %v2087_v12 = vld [vmem:[#allocation7 + $0x838] sm:$0xff] }
 0x295   : > { %v1529_v39 = vpop.f32.mrf.mxu3  ;;  %v1594_v40 = vpop.f32.mrf.mxu0  ;;  %2164 = vmatpush.msra.mxu2 %v2084_v11  ;;  %2293 = vmatpush.msrb.mxu0 %v2087_v12 }
 0x296   : > { %v1527_v14 = vadd.f32 %v1526_v63, %v1462_v13  ;;  %v1595_v15 = vadd.f32 %v1594_v40, %v3546_v26  ;;  %v2116_v13 = vld [vmem:[#allocation7 + $0x920] sm:$0xff]  ;;  %v2119_v40 = vld [vmem:[#allocation7 + $0x938] sm:$0xff] }
 0x297   : > { %v1662_v19 = vpop.f32.mrf.mxu1  ;;  %2229 = vmatpush.msra.mxu3 %v2116_v13  ;;  %2358 = vmatpush.msrb.mxu1 %v2119_v40 }
 0x298   : > { %v1660_v20 = vadd.f32 %v1659_v5, %v1595_v15  ;;  %v1697_v21 = vmax.f32 %v1527_v14, 0.0  ;;  %2165 = vmatpush.msra.mxu2 %v2082_v18 }
 0x299   : > { %2359 = vmatpush.msrb.mxu1 %v2117_v23 }
 0x29a   : > { %1824 = vmatmul.f32.gmra.mxu2 %v1697_v21  ;;  %1954 = vmatmul.f32.gmra.mxu0 %v1697_v21  ;;  %v1700_v24 = vmax.f32 %v1660_v20, 0.0  ;;  %v2114_v20 = vld [vmem:[#allocation7 + $0x910] sm:$0xff] }
 0x29b   : > { %v1464_v25 = vpop.f32.mrf.mxu2  ;;  %2230 = vmatpush.msra.mxu3 %v2114_v20  ;;  %2360 = vmatpush.msrb.mxu1 %v2115_v31  ;;  %v2473_v20 = vld [vmem:[#allocation10 + $0xf0] sm:$0xff]  ;;  %v2472_v31 = vld [vmem:[#allocation10 + $0xe8] sm:$0xff] }
 0x29c   : > { %v1465_v51 = vadd.f32 %v1464_v25, %v3549_v33  ;;  %1892 = vmatmul.f32.gmra.mxu3 %v1700_v24  ;;  %2022 = vmatmul.f32.gmra.mxu1 %v1700_v24 }
 0x29d   : > { %v1532_v27 = vpop.f32.mrf.mxu3  ;;  %v1597_v28 = vpop.f32.mrf.mxu0  ;;  %2231 = vmatpush.msra.mxu3 %v2112_v37 }
 0x29e   : > { %v1530_v29 = vadd.f32 %v1529_v39, %v1465_v51  ;;  %v1598_v58 = vadd.f32 %v1597_v28, %v3546_v26 }
 0x29f   : > { %v1665_v32 = vpop.f32.mrf.mxu1 }
 0x2a0   : > { %v1663_v34 = vadd.f32 %v1662_v19, %v1598_v58  ;;  %v1699_v35 = vmax.f32 %v1530_v29, 0.0  ;;  %v2085_v19 = vld [vmem:[#allocation7 + $0x828] sm:$0xff] }
 0x2a1   : > { %2294 = vmatpush.msrb.mxu0 %v2085_v19 }
 0x2a2   : > { %1827 = vmatmul.f32.gmra.mxu2 %v1699_v35  ;;  %1957 = vmatmul.f32.gmra.mxu0 %v1699_v35  ;;  %v1702_v38 = vmax.f32 %v1663_v34, 0.0  ;;  %v2080_v35 = vld [vmem:[#allocation7 + $0x800] sm:$0xff] }
 0x2a3   : > { %v1467_v41 = vpop.f32.mrf.mxu2  ;;  %2166 = vmatpush.msra.mxu2 %v2080_v35  ;;  %2295 = vmatpush.msrb.mxu0 %v2083_v36 }
 0x2a4   : > { %v1468_v42 = vadd.f32 %v1467_v41, %v3549_v33  ;;  %1895 = vmatmul.f32.gmra.mxu3 %v1702_v38  ;;  %2025 = vmatmul.f32.gmra.mxu1 %v1702_v38 }
 0x2a5   : > { %v1535_v43 = vpop.f32.mrf.mxu3  ;;  %v1600_v44 = vpop.f32.mrf.mxu0  ;;  %2296 = vmatpush.msrb.mxu0 %v2081_v48 }
 0x2a6   : > { %v1533_v45 = vadd.f32 %v1532_v27, %v1468_v42  ;;  %v1601_v46 = vadd.f32 %v1600_v44, %v3546_v26  ;;  %v2113_v42 = vld [vmem:[#allocation7 + $0x908] sm:$0xff] }
 0x2a7   : > { %v1668_v49 = vpop.f32.mrf.mxu1  ;;  %2361 = vmatpush.msrb.mxu1 %v2113_v42  ;;  %v2455_v42 = vld [vmem:[#allocation10 + $0x60] sm:$0xff] }
 0x2a8   : > { %v1666_v50 = vadd.f32 %v1665_v32, %v1601_v46  ;;  %v1701_v10 = vmax.f32 %v1533_v45, 0.0 }
 0x2aa   : > { %1830 = vmatmul.f32.gmra.mxu2 %v1701_v10  ;;  %1960 = vmatmul.f32.gmra.mxu0 %v1701_v10  ;;  %v1704_v54 = vmax.f32 %v1666_v50, 0.0 }
 0x2ab   : > { %v1470_v17 = vpop.f32.mrf.mxu2 }
 0x2ac   : > { %v1471_v55 = vadd.f32 %v1470_v17, %v3549_v33  ;;  %1898 = vmatmul.f32.gmra.mxu3 %v1704_v54  ;;  %2028 = vmatmul.f32.gmra.mxu1 %v1704_v54 }
 0x2ad   : > { %v1538_v56 = vpop.f32.mrf.mxu3  ;;  %v1603_v57 = vpop.f32.mrf.mxu0 }
 0x2ae   : > { %v1536_v59 = vadd.f32 %v1535_v43, %v1471_v55  ;;  %v1604_v60 = vadd.f32 %v1603_v57, %v3546_v26 }
 0x2af   : > { %v1671_v3 = vpop.f32.mrf.mxu1 }
 0x2b0   : > { %v1669_v63 = vadd.f32 %v1668_v49, %v1604_v60  ;;  %v1703_v0 = vmax.f32 %v1536_v59, 0.0 }
 0x2b2   : > { %1833 = vmatmul.f32.gmra.mxu2 %v1703_v0  ;;  %1963 = vmatmul.f32.gmra.mxu0 %v1703_v0  ;;  %v1706_v4 = vmax.f32 %v1669_v63, 0.0 }
 0x2b3   : > { %v1473_v5 = vpop.f32.mrf.mxu2 }
 0x2b4   : > { %v1474_v6 = vadd.f32 %v1473_v5, %v3549_v33  ;;  %1901 = vmatmul.f32.gmra.mxu3 %v1706_v4  ;;  %2031 = vmatmul.f32.gmra.mxu1 %v1706_v4  ;;  %v2458_v5 = vld [vmem:[#allocation10 + $0x78] sm:$0xff] }
 0x2b5   : > { %v1606_v7 = vpop.f32.mrf.mxu0  ;;  %v1541_v39 = vpop.f32.mrf.mxu3  ;;  %2820 = vmatpush.msrb.mxu2 %v2458_v5  ;;  %2479 = vmatpush.msra.mxu0 %v2458_v5 }
 0x2b6   : > { %v1539_v8 = vadd.f32 %v1538_v56, %v1474_v6  ;;  %v1607_v9 = vadd.f32 %v1606_v7, %v3546_v26  ;;  %v3585_v7 = vperm.slane %v1781_v1, 0 }
 0x2b7   : > { %v1674_v21 = vpop.f32.mrf.mxu1 }
 0x2b8   : > { %v1672_v14 = vadd.f32 %v1671_v3, %v1607_v9  ;;  %v1705_v15 = vmax.f32 %v1539_v8, 0.0  ;;  %v2474_v8 = vld [vmem:[#allocation10 + $0xf8] sm:$0xff] }
 0x2b9   : > { %2836 = vmatpush.msrb.mxu3 %v2474_v8  ;;  %2544 = vmatpush.msra.mxu1 %v2474_v8 }
 0x2ba   : > { %1836 = vmatmul.f32.gmra.mxu2 %v1705_v15  ;;  %1966 = vmatmul.f32.gmra.mxu0 %v1705_v15  ;;  %v1708_v16 = vmax.f32 %v1672_v14, 0.0  ;;  %v2457_v15 = vld [vmem:[#allocation10 + $0x70] sm:$0xff] }
 0x2bb   : > { %v1476_v22 = vpop.f32.mrf.mxu2  ;;  %2821 = vmatpush.msrb.mxu2 %v2457_v15  ;;  %2480 = vmatpush.msra.mxu0 %v2457_v15 }
 0x2bc   : > { %v1477_v24 = vadd.f32 %v1476_v22, %v3549_v33  ;;  %1904 = vmatmul.f32.gmra.mxu3 %v1708_v16  ;;  %2034 = vmatmul.f32.gmra.mxu1 %v1708_v16 }
 0x2bd   : > { %v1609_v25 = vpop.f32.mrf.mxu0  ;;  %v1544_v58 = vpop.f32.mrf.mxu3  ;;  %2837 = vmatpush.msrb.mxu3 %v2473_v20  ;;  %2545 = vmatpush.msra.mxu1 %v2473_v20 }
 0x2be   : > { %v1542_v51 = vadd.f32 %v1541_v39, %v1477_v24  ;;  %v1610_v27 = vadd.f32 %v1609_v25, %v3546_v26 }
 0x2bf   : > { %v1677_v38 = vpop.f32.mrf.mxu1  ;;  %2838 = vmatpush.msrb.mxu3 %v2472_v31  ;;  %2546 = vmatpush.msra.mxu1 %v2472_v31 }
 0x2c0   : > { %v1675_v28 = vadd.f32 %v1674_v21, %v1610_v27  ;;  %v1707_v29 = vmax.f32 %v1542_v51, 0.0 }
 0x2c2   : > { %1839 = vmatmul.f32.gmra.mxu2 %v1707_v29  ;;  %1969 = vmatmul.f32.gmra.mxu0 %v1707_v29  ;;  %v1710_v30 = vmax.f32 %v1675_v28, 0.0  ;;  %v2456_v28 = vld [vmem:[#allocation10 + $0x68] sm:$0xff] }
 0x2c3   : > { %v1479_v32 = vpop.f32.mrf.mxu2  ;;  %2822 = vmatpush.msrb.mxu2 %v2456_v28  ;;  %2481 = vmatpush.msra.mxu0 %v2456_v28 }
 0x2c4   : > { %v1480_v34 = vadd.f32 %v1479_v32, %v3549_v33  ;;  %1907 = vmatmul.f32.gmra.mxu3 %v1710_v30  ;;  %2037 = vmatmul.f32.gmra.mxu1 %v1710_v30 }
 0x2c5   : > { %v1612_v41 = vpop.f32.mrf.mxu0  ;;  %v1547_v49 = vpop.f32.mrf.mxu3  ;;  %2823 = vmatpush.msrb.mxu2 %v2455_v42  ;;  %2482 = vmatpush.msra.mxu0 %v2455_v42 }
 0x2c6   : > { %v1545_v43 = vadd.f32 %v1544_v58, %v1480_v34  ;;  %v1613_v44 = vadd.f32 %v1612_v41, %v3546_v26 }
 0x2c7   : > { %v1680_v17 = vpop.f32.mrf.mxu1 }
 0x2c8   : > { %v1678_v45 = vadd.f32 %v1677_v38, %v1613_v44  ;;  %v1709_v46 = vmax.f32 %v1545_v43, 0.0 }
 0x2ca   : > { %1842 = vmatmul.f32.gmra.mxu2 %v1709_v46  ;;  %1972 = vmatmul.f32.gmra.mxu0 %v1709_v46  ;;  %v1712_v47 = vmax.f32 %v1678_v45, 0.0  ;;  %v2471_v46 = vld [vmem:[#allocation10 + $0xe0] sm:$0xff] }
 0x2cb   : > { %v1482_v50 = vpop.f32.mrf.mxu2  ;;  %2839 = vmatpush.msrb.mxu3 %v2471_v46  ;;  %2547 = vmatpush.msra.mxu1 %v2471_v46 }
 0x2cc   : > { %v1483_v10 = vadd.f32 %v1482_v50, %v3549_v33  ;;  %1910 = vmatmul.f32.gmra.mxu3 %v1712_v47  ;;  %2040 = vmatmul.f32.gmra.mxu1 %v1712_v47 }
 0x2cd   : > { %v1615_v52 = vpop.f32.mrf.mxu0  ;;  %v1550_v61 = vpop.f32.mrf.mxu3 }
 0x2ce   : > { %v1548_v53 = vadd.f32 %v1547_v49, %v1483_v10  ;;  %v1616_v54 = vadd.f32 %v1615_v52, %v3546_v26 }
 0x2d0   : > { %v1681_v55 = vadd.f32 %v1680_v17, %v1616_v54  ;;  %v1711_v56 = vmax.f32 %v1548_v53, 0.0  ;;  %v2454_v54 = vld [vmem:[#allocation10 + $0x58] sm:$0xff] }
 0x2d1   : > { %2824 = vmatpush.msrb.mxu2 %v2454_v54  ;;  %2483 = vmatpush.msra.mxu0 %v2454_v54 }
 0x2d2   : > { %1845 = vmatmul.f32.gmra.mxu2 %v1711_v56  ;;  %1975 = vmatmul.f32.gmra.mxu0 %v1711_v56  ;;  %v1714_v57 = vmax.f32 %v1681_v55, 0.0 }
 0x2d3   : > { %v1485_v59 = vpop.f32.mrf.mxu2 }
 0x2d4   : > { %v1486_v60 = vadd.f32 %v1485_v59, %v3549_v33  ;;  %1913 = vmatmul.f32.gmra.mxu3 %v1714_v57  ;;  %2043 = vmatmul.f32.gmra.mxu1 %v1714_v57  ;;  %v2470_v57 = vld [vmem:[#allocation10 + $0xd8] sm:$0xff] }
 0x2d5   : > { %2840 = vmatpush.msrb.mxu3 %v2470_v57  ;;  %2548 = vmatpush.msra.mxu1 %v2470_v57 }
 0x2d6   : > { %v1551_v62 = vadd.f32 %v1550_v61, %v1486_v60 }
 0x2d8   : > { %v1713_v63 = vmax.f32 %v1551_v62, 0.0 }
 0x2d9   : > { %v1999_v0 = vpop.f32.mrf.mxu1 }
 0x2da   : > { %1848 = vmatmul.f32.gmra.mxu2 %v1713_v63  ;;  %1978 = vmatmul.f32.gmra.mxu0 %v1713_v63 }
 0x2df   : > { %v1869_v26 = vpop.f32.mrf.mxu3  ;;  %v1934_v3 = vpop.f32.mrf.mxu0 }
 0x2e0   : > { %v1935_v4 = vadd.f32 %v1934_v3, %v3582_v2 }
 0x2e1   : > { %v2002_v6 = vpop.f32.mrf.mxu1 }
 0x2e2   : > { %v2000_v33 = vadd.f32 %v1999_v0, %v1935_v4 }
 0x2e4   : > { %v2048_v9 = vmax.f32 %v2000_v33, 0.0  ;;  %v2469_v33 = vld [vmem:[#allocation10 + $0xd0] sm:$0xff] }
 0x2e5   : > { %v1804_v11 = vpop.f32.mrf.mxu2  ;;  %2841 = vmatpush.msrb.mxu3 %v2469_v33  ;;  %2549 = vmatpush.msra.mxu1 %v2469_v33 }
 0x2e6   : > { %v1805_v12 = vadd.f32 %v1804_v11, %v3585_v7  ;;  %2232 = vmatmul.f32.vlgmr.msra.gmra.mxu3 %v2048_v9  ;;  %2362 = vmatmul.f32.vlgmr.msrb.gmra.mxu1 %v2048_v9 }
 0x2e7   : > { %v1872_v13 = vpop.f32.mrf.mxu3  ;;  %v1937_v39 = vpop.f32.mrf.mxu0 }
 0x2e8   : > { %v1870_v40 = vadd.f32 %v1869_v26, %v1805_v12  ;;  %v1938_v14 = vadd.f32 %v1937_v39, %v3582_v2  ;;  %v2453_v26 = vld [vmem:[#allocation10 + $0x50] sm:$0xff] }
 0x2e9   : > { %v2005_v16 = vpop.f32.mrf.mxu1  ;;  %2825 = vmatpush.msrb.mxu2 %v2453_v26  ;;  %2484 = vmatpush.msra.mxu0 %v2453_v26 }
 0x2ea   : > { %v2047_v18 = vmax.f32 %v1870_v40, 0.0  ;;  %v2003_v19 = vadd.f32 %v2002_v6, %v1938_v14  ;;  %v2452_v40 = vld [vmem:[#allocation10 + $0x48] sm:$0xff] }
 0x2eb   : > { %2826 = vmatpush.msrb.mxu2 %v2452_v40  ;;  %2485 = vmatpush.msra.mxu0 %v2452_v40 }
 0x2ec   : > { %2167 = vmatmul.f32.vlgmr.msra.gmra.mxu2 %v2047_v18  ;;  %2297 = vmatmul.f32.vlgmr.msrb.gmra.mxu0 %v2047_v18  ;;  %v2050_v21 = vmax.f32 %v2003_v19, 0.0  ;;  %v2468_v19 = vld [vmem:[#allocation10 + $0xc8] sm:$0xff] }
 0x2ed   : > { %v1807_v22 = vpop.f32.mrf.mxu2  ;;  %2842 = vmatpush.msrb.mxu3 %v2468_v19  ;;  %2550 = vmatpush.msra.mxu1 %v2468_v19 }
 0x2ee   : > { %v1808_v23 = vadd.f32 %v1807_v22, %v3585_v7  ;;  %2235 = vmatmul.f32.gmra.mxu3 %v2050_v21  ;;  %2365 = vmatmul.f32.gmra.mxu1 %v2050_v21 }
 0x2ef   : > { %v1875_v24 = vpop.f32.mrf.mxu3  ;;  %v1940_v25 = vpop.f32.mrf.mxu0 }
 0x2f0   : > { %v1873_v51 = vadd.f32 %v1872_v13, %v1808_v23  ;;  %v1941_v27 = vadd.f32 %v1940_v25, %v3582_v2 }
 0x2f1   : > { %v2008_v29 = vpop.f32.mrf.mxu1 }
 0x2f2   : > { %v2006_v58 = vadd.f32 %v2005_v16, %v1941_v27  ;;  %v2049_v30 = vmax.f32 %v1873_v51, 0.0  ;;  %v2451_v51 = vld [vmem:[#allocation10 + $0x40] sm:$0xff] }
 0x2f3   : > { %2827 = vmatpush.msrb.mxu2 %v2451_v51  ;;  %2486 = vmatpush.msra.mxu0 %v2451_v51 }
 0x2f4   : > { %2170 = vmatmul.f32.gmra.mxu2 %v2049_v30  ;;  %2300 = vmatmul.f32.gmra.mxu0 %v2049_v30  ;;  %v2052_v32 = vmax.f32 %v2006_v58, 0.0  ;;  %v2467_v30 = vld [vmem:[#allocation10 + $0xc0] sm:$0xff] }
 0x2f5   : > { %v1810_v34 = vpop.f32.mrf.mxu2  ;;  %2843 = vmatpush.msrb.mxu3 %v2467_v30  ;;  %2551 = vmatpush.msra.mxu1 %v2467_v30 }
 0x2f6   : > { %v1811_v35 = vadd.f32 %v1810_v34, %v3585_v7  ;;  %2238 = vmatmul.f32.gmra.mxu3 %v2052_v32  ;;  %2368 = vmatmul.f32.gmra.mxu1 %v2052_v32 }
 0x2f7   : > { %v1878_v36 = vpop.f32.mrf.mxu3  ;;  %v1943_v37 = vpop.f32.mrf.mxu0 }
 0x2f8   : > { %v1876_v38 = vadd.f32 %v1875_v24, %v1811_v35  ;;  %v1944_v41 = vadd.f32 %v1943_v37, %v3582_v2 }
 0x2f9   : > { %v2011_v43 = vpop.f32.mrf.mxu1 }
 0x2fa   : > { %v2009_v44 = vadd.f32 %v2008_v29, %v1944_v41  ;;  %v2051_v45 = vmax.f32 %v1876_v38, 0.0  ;;  %v2450_v38 = vld [vmem:[#allocation10 + $0x38] sm:$0xff] }
 0x2fb   : > { %2828 = vmatpush.msrb.mxu2 %v2450_v38  ;;  %2487 = vmatpush.msra.mxu0 %v2450_v38 }
 0x2fc   : > { %2173 = vmatmul.f32.gmra.mxu2 %v2051_v45  ;;  %2303 = vmatmul.f32.gmra.mxu0 %v2051_v45  ;;  %v2054_v47 = vmax.f32 %v2009_v44, 0.0  ;;  %v2466_v45 = vld [vmem:[#allocation10 + $0xb8] sm:$0xff] }
 0x2fd   : > { %v1813_v48 = vpop.f32.mrf.mxu2  ;;  %2844 = vmatpush.msrb.mxu3 %v2466_v45  ;;  %2552 = vmatpush.msra.mxu1 %v2466_v45 }
 0x2fe   : > { %v1814_v49 = vadd.f32 %v1813_v48, %v3585_v7  ;;  %2241 = vmatmul.f32.gmra.mxu3 %v2054_v47  ;;  %2371 = vmatmul.f32.gmra.mxu1 %v2054_v47 }
 0x2ff   : > { %v1881_v50 = vpop.f32.mrf.mxu3  ;;  %v1946_v10 = vpop.f32.mrf.mxu0 }
 0x300   : > { %v1879_v52 = vadd.f32 %v1878_v36, %v1814_v49  ;;  %v1947_v53 = vadd.f32 %v1946_v10, %v3582_v2 }
 0x301   : > { %v2014_v17 = vpop.f32.mrf.mxu1 }
 0x302   : > { %v2012_v55 = vadd.f32 %v2011_v43, %v1947_v53  ;;  %v2053_v56 = vmax.f32 %v1879_v52, 0.0  ;;  %v2449_v52 = vld [vmem:[#allocation10 + $0x30] sm:$0xff] }
 0x303   : > { %2829 = vmatpush.msrb.mxu2 %v2449_v52  ;;  %2488 = vmatpush.msra.mxu0 %v2449_v52 }
 0x304   : > { %2176 = vmatmul.f32.gmra.mxu2 %v2053_v56  ;;  %2306 = vmatmul.f32.gmra.mxu0 %v2053_v56  ;;  %v2056_v59 = vmax.f32 %v2012_v55, 0.0  ;;  %v2465_v56 = vld [vmem:[#allocation10 + $0xb0] sm:$0xff] }
 0x305   : > { %v1816_v60 = vpop.f32.mrf.mxu2  ;;  %2845 = vmatpush.msrb.mxu3 %v2465_v56  ;;  %2553 = vmatpush.msra.mxu1 %v2465_v56 }
 0x306   : > { %v1817_v61 = vadd.f32 %v1816_v60, %v3585_v7  ;;  %2244 = vmatmul.f32.gmra.mxu3 %v2056_v59  ;;  %2374 = vmatmul.f32.gmra.mxu1 %v2056_v59 }
 0x307   : > { %v1884_v62 = vpop.f32.mrf.mxu3  ;;  %v1949_v63 = vpop.f32.mrf.mxu0 }
 0x308   : > { %v1882_v0 = vadd.f32 %v1881_v50, %v1817_v61  ;;  %v1950_v1 = vadd.f32 %v1949_v63, %v3582_v2 }
 0x309   : > { %v2017_v3 = vpop.f32.mrf.mxu1 }
 0x30a   : > { %v2015_v4 = vadd.f32 %v2014_v17, %v1950_v1  ;;  %v2055_v5 = vmax.f32 %v1882_v0, 0.0  ;;  %v2448_v0 = vld [vmem:[#allocation10 + $0x28] sm:$0xff] }
 0x30b   : > { %2830 = vmatpush.msrb.mxu2 %v2448_v0  ;;  %2489 = vmatpush.msra.mxu0 %v2448_v0 }
 0x30c   : > { %2179 = vmatmul.f32.gmra.mxu2 %v2055_v5  ;;  %2309 = vmatmul.f32.gmra.mxu0 %v2055_v5  ;;  %v2058_v6 = vmax.f32 %v2015_v4, 0.0  ;;  %v2464_v5 = vld [vmem:[#allocation10 + $0xa8] sm:$0xff] }
 0x30d   : > { %v1819_v8 = vpop.f32.mrf.mxu2  ;;  %2846 = vmatpush.msrb.mxu3 %v2464_v5  ;;  %2554 = vmatpush.msra.mxu1 %v2464_v5 }
 0x30e   : > { %v1820_v9 = vadd.f32 %v1819_v8, %v3585_v7  ;;  %2247 = vmatmul.f32.gmra.mxu3 %v2058_v6  ;;  %2377 = vmatmul.f32.gmra.mxu1 %v2058_v6 }
 0x30f   : > { %v1887_v11 = vpop.f32.mrf.mxu3  ;;  %v1952_v12 = vpop.f32.mrf.mxu0 }
 0x310   : > { %v1885_v13 = vadd.f32 %v1884_v62, %v1820_v9  ;;  %v1953_v39 = vadd.f32 %v1952_v12, %v3582_v2 }
 0x311   : > { %v2020_v14 = vpop.f32.mrf.mxu1 }
 0x312   : > { %v2018_v15 = vadd.f32 %v2017_v3, %v1953_v39  ;;  %v2057_v16 = vmax.f32 %v1885_v13, 0.0  ;;  %v2447_v13 = vld [vmem:[#allocation10 + $0x20] sm:$0xff] }
 0x313   : > { %2831 = vmatpush.msrb.mxu2 %v2447_v13  ;;  %2490 = vmatpush.msra.mxu0 %v2447_v13 }
 0x314   : > { %2182 = vmatmul.f32.gmra.mxu2 %v2057_v16  ;;  %2312 = vmatmul.f32.gmra.mxu0 %v2057_v16  ;;  %v2060_v18 = vmax.f32 %v2018_v15, 0.0  ;;  %v2463_v16 = vld [vmem:[#allocation10 + $0xa0] sm:$0xff] }
 0x315   : > { %v1822_v20 = vpop.f32.mrf.mxu2  ;;  %2847 = vmatpush.msrb.mxu3 %v2463_v16  ;;  %2555 = vmatpush.msra.mxu1 %v2463_v16 }
 0x316   : > { %v1823_v21 = vadd.f32 %v1822_v20, %v3585_v7  ;;  %2250 = vmatmul.f32.gmra.mxu3 %v2060_v18  ;;  %2380 = vmatmul.f32.gmra.mxu1 %v2060_v18 }
 0x317   : > { %v1890_v22 = vpop.f32.mrf.mxu3  ;;  %v1955_v23 = vpop.f32.mrf.mxu0 }
 0x318   : > { %v1888_v24 = vadd.f32 %v1887_v11, %v1823_v21  ;;  %v1956_v25 = vadd.f32 %v1955_v23, %v3582_v2  ;;  %v2446_v23 = vld [vmem:[#allocation10 + $0x18] sm:$0xff] }
 0x319   : > { %v2023_v27 = vpop.f32.mrf.mxu1  ;;  %2832 = vmatpush.msrb.mxu2 %v2446_v23  ;;  %2491 = vmatpush.msra.mxu0 %v2446_v23 }
 0x31a   : > { %v2021_v28 = vadd.f32 %v2020_v14, %v1956_v25  ;;  %v2059_v29 = vmax.f32 %v1888_v24, 0.0  ;;  %v2462_v24 = vld [vmem:[#allocation10 + $0x98] sm:$0xff] }
 0x31b   : > { %2848 = vmatpush.msrb.mxu3 %v2462_v24  ;;  %2556 = vmatpush.msra.mxu1 %v2462_v24 }
 0x31c   : > { %2185 = vmatmul.f32.gmra.mxu2 %v2059_v29  ;;  %2315 = vmatmul.f32.gmra.mxu0 %v2059_v29  ;;  %v2062_v58 = vmax.f32 %v2021_v28, 0.0  ;;  %v2445_v29 = vld [vmem:[#allocation10 + $0x10] sm:$0xff] }
 0x31d   : > { %v1825_v31 = vpop.f32.mrf.mxu2  ;;  %2833 = vmatpush.msrb.mxu2 %v2445_v29  ;;  %2492 = vmatpush.msra.mxu0 %v2445_v29 }
 0x31e   : > { %v1826_v32 = vadd.f32 %v1825_v31, %v3585_v7  ;;  %2253 = vmatmul.f32.gmra.mxu3 %v2062_v58  ;;  %2383 = vmatmul.f32.gmra.mxu1 %v2062_v58  ;;  %v2461_v58 = vld [vmem:[#allocation10 + $0x90] sm:$0xff] }
 0x31f   : > { %v1893_v34 = vpop.f32.mrf.mxu3  ;;  %v1958_v35 = vpop.f32.mrf.mxu0  ;;  %2849 = vmatpush.msrb.mxu3 %v2461_v58  ;;  %2557 = vmatpush.msra.mxu1 %v2461_v58 }
 0x320   : > { %v1891_v36 = vadd.f32 %v1890_v22, %v1826_v32  ;;  %v1959_v37 = vadd.f32 %v1958_v35, %v3582_v2 }
 0x321   : > { %v2026_v41 = vpop.f32.mrf.mxu1 }
 0x322   : > { %v2024_v42 = vadd.f32 %v2023_v27, %v1959_v37  ;;  %v2061_v43 = vmax.f32 %v1891_v36, 0.0 }
 0x324   : > { %2188 = vmatmul.f32.gmra.mxu2 %v2061_v43  ;;  %2318 = vmatmul.f32.gmra.mxu0 %v2061_v43  ;;  %v2064_v44 = vmax.f32 %v2024_v42, 0.0  ;;  %v2460_v43 = vld [vmem:[#allocation10 + $0x88] sm:$0xff] }
 0x325   : > { %v1828_v46 = vpop.f32.mrf.mxu2  ;;  %2558 = vmatpush.msra.mxu1 %v2460_v43  ;;  %2850 = vmatpush.msrb.mxu3 %v2460_v43 }
 0x326   : > { %v1829_v47 = vadd.f32 %v1828_v46, %v3585_v7  ;;  %2256 = vmatmul.f32.gmra.mxu3 %v2064_v44  ;;  %2386 = vmatmul.f32.gmra.mxu1 %v2064_v44  ;;  %v2444_v46 = vld [vmem:[#allocation10 + $0x8] sm:$0xff] }
 0x327   : > { %v1896_v48 = vpop.f32.mrf.mxu3  ;;  %v1961_v49 = vpop.f32.mrf.mxu0  ;;  %2834 = vmatpush.msrb.mxu2 %v2444_v46  ;;  %2493 = vmatpush.msra.mxu0 %v2444_v46 }
 0x328   : > { %v1894_v50 = vadd.f32 %v1893_v34, %v1829_v47  ;;  %v1962_v10 = vadd.f32 %v1961_v49, %v3582_v2  ;;  %v2459_v47 = vld [vmem:[#allocation10 + $0x80] sm:$0xff] }
 0x329   : > { %v2029_v53 = vpop.f32.mrf.mxu1  ;;  %2559 = vmatpush.msra.mxu1 %v2459_v47  ;;  %2851 = vmatpush.msrb.mxu3 %v2459_v47 }
 0x32a   : > { %v2027_v54 = vadd.f32 %v2026_v41, %v1962_v10  ;;  %v2063_v17 = vmax.f32 %v1894_v50, 0.0 }
 0x32c   : > { %v2066_v55 = vmax.f32 %v2027_v54, 0.0  ;;  %2191 = vmatmul.f32.gmra.mxu2 %v2063_v17  ;;  %2321 = vmatmul.f32.gmra.mxu0 %v2063_v17  ;;  %v2443_v17 = vld [vmem:[#allocation10] sm:$0xff] }
 0x32d   : > { %v1831_v57 = vpop.f32.mrf.mxu2  ;;  %2494 = vmatpush.msra.mxu0 %v2443_v17  ;;  %2835 = vmatpush.msrb.mxu2 %v2443_v17 }
 0x32e   : > { %v1832_v59 = vadd.f32 %v1831_v57, %v3585_v7  ;;  %2259 = vmatmul.f32.gmra.mxu3 %v2066_v55  ;;  %2389 = vmatmul.f32.gmra.mxu1 %v2066_v55 }
 0x32f   : > { %v1899_v60 = vpop.f32.mrf.mxu3  ;;  %v1964_v61 = vpop.f32.mrf.mxu0 }
 0x330   : > { %v1897_v62 = vadd.f32 %v1896_v48, %v1832_v59  ;;  %v1965_v63 = vadd.f32 %v1964_v61, %v3582_v2 }
 0x331   : > { %v2032_v1 = vpop.f32.mrf.mxu1 }
 0x332   : > { %v2030_v26 = vadd.f32 %v2029_v53, %v1965_v63  ;;  %v2065_v3 = vmax.f32 %v1897_v62, 0.0 }
 0x334   : > { %v2068_v4 = vmax.f32 %v2030_v26, 0.0  ;;  %2194 = vmatmul.f32.gmra.mxu2 %v2065_v3  ;;  %2324 = vmatmul.f32.gmra.mxu0 %v2065_v3 }
 0x335   : > { %v1834_v6 = vpop.f32.mrf.mxu2 }
 0x336   : > { %v1835_v33 = vadd.f32 %v1834_v6, %v3585_v7  ;;  %2262 = vmatmul.f32.gmra.mxu3 %v2068_v4  ;;  %2392 = vmatmul.f32.gmra.mxu1 %v2068_v4 }
 0x337   : > { %v1902_v8 = vpop.f32.mrf.mxu3  ;;  %v1967_v9 = vpop.f32.mrf.mxu0 }
 0x338   : > { %v1900_v11 = vadd.f32 %v1899_v60, %v1835_v33  ;;  %v1968_v12 = vadd.f32 %v1967_v9, %v3582_v2 }
 0x339   : > { %v2035_v14 = vpop.f32.mrf.mxu1 }
 0x33a   : > { %v2033_v39 = vadd.f32 %v2032_v1, %v1968_v12  ;;  %v2067_v40 = vmax.f32 %v1900_v11, 0.0 }
 0x33c   : > { %v2070_v15 = vmax.f32 %v2033_v39, 0.0  ;;  %2197 = vmatmul.f32.gmra.mxu2 %v2067_v40  ;;  %2327 = vmatmul.f32.gmra.mxu0 %v2067_v40 }
 0x33d   : > { %v1837_v18 = vpop.f32.mrf.mxu2 }
 0x33e   : > { %v1838_v19 = vadd.f32 %v1837_v18, %v3585_v7  ;;  %2265 = vmatmul.f32.gmra.mxu3 %v2070_v15  ;;  %2395 = vmatmul.f32.gmra.mxu1 %v2070_v15 }
 0x33f   : > { %v1970_v20 = vpop.f32.mrf.mxu0  ;;  %v1905_v25 = vpop.f32.mrf.mxu3 }
 0x340   : > { %v1903_v21 = vadd.f32 %v1902_v8, %v1838_v19  ;;  %v1971_v22 = vadd.f32 %v1970_v20, %v3582_v2  ;;  %v2145_v8 = vld [vmem:[#allocation8 + $0x8] sm:$0x3] }
 0x341   : > { %v2038_v30 = vpop.f32.mrf.mxu1  ;;  %v3618_v9 = vperm.slane %v2145_v8, 1  ;;  %v3621_v40 = vperm.slane %v2145_v8, 0 }
 0x342   : > { %v2036_v51 = vadd.f32 %v2035_v14, %v1971_v22  ;;  %v2069_v27 = vmax.f32 %v1903_v21, 0.0 }
 0x344   : > { %v2072_v28 = vmax.f32 %v2036_v51, 0.0  ;;  %2200 = vmatmul.f32.gmra.mxu2 %v2069_v27  ;;  %2330 = vmatmul.f32.gmra.mxu0 %v2069_v27 }
 0x345   : > { %v1840_v31 = vpop.f32.mrf.mxu2 }
 0x346   : > { %v1841_v32 = vadd.f32 %v1840_v31, %v3585_v7  ;;  %2268 = vmatmul.f32.gmra.mxu3 %v2072_v28  ;;  %2398 = vmatmul.f32.gmra.mxu1 %v2072_v28 }
 0x347   : > { %v1973_v34 = vpop.f32.mrf.mxu0  ;;  %v1908_v41 = vpop.f32.mrf.mxu3 }
 0x348   : > { %v1906_v35 = vadd.f32 %v1905_v25, %v1841_v32  ;;  %v1974_v36 = vadd.f32 %v1973_v34, %v3582_v2 }
 0x349   : > { %v2041_v48 = vpop.f32.mrf.mxu1 }
 0x34a   : > { %v2039_v37 = vadd.f32 %v2038_v30, %v1974_v36  ;;  %v2071_v38 = vmax.f32 %v1906_v35, 0.0 }
 0x34c   : > { %v2074_v42 = vmax.f32 %v2039_v37, 0.0  ;;  %2203 = vmatmul.f32.gmra.mxu2 %v2071_v38  ;;  %2333 = vmatmul.f32.gmra.mxu0 %v2071_v38 }
 0x34d   : > { %v1843_v44 = vpop.f32.mrf.mxu2 }
 0x34e   : > { %v1844_v45 = vadd.f32 %v1843_v44, %v3585_v7  ;;  %2271 = vmatmul.f32.gmra.mxu3 %v2074_v42  ;;  %2401 = vmatmul.f32.gmra.mxu1 %v2074_v42 }
 0x34f   : > { %v1976_v49 = vpop.f32.mrf.mxu0  ;;  %v1911_v55 = vpop.f32.mrf.mxu3 }
 0x350   : > { %v1909_v50 = vadd.f32 %v1908_v41, %v1844_v45  ;;  %v1977_v10 = vadd.f32 %v1976_v49, %v3582_v2 }
 0x351   : > { %v2044_v62 = vpop.f32.mrf.mxu1 }
 0x352   : > { %v2042_v52 = vadd.f32 %v2041_v48, %v1977_v10  ;;  %v2073_v53 = vmax.f32 %v1909_v50, 0.0 }
 0x354   : > { %v2076_v54 = vmax.f32 %v2042_v52, 0.0  ;;  %2206 = vmatmul.f32.gmra.mxu2 %v2073_v53  ;;  %2336 = vmatmul.f32.gmra.mxu0 %v2073_v53 }
 0x355   : > { %v1846_v56 = vpop.f32.mrf.mxu2 }
 0x356   : > { %v1847_v57 = vadd.f32 %v1846_v56, %v3585_v7  ;;  %2274 = vmatmul.f32.gmra.mxu3 %v2076_v54  ;;  %2404 = vmatmul.f32.gmra.mxu1 %v2076_v54 }
 0x357   : > { %v1979_v59 = vpop.f32.mrf.mxu0  ;;  %v1914_v4 = vpop.f32.mrf.mxu3 }
 0x358   : > { %v1912_v60 = vadd.f32 %v1911_v55, %v1847_v57  ;;  %v1980_v61 = vadd.f32 %v1979_v59, %v3582_v2 }
 0x35a   : > { %v2045_v63 = vadd.f32 %v2044_v62, %v1980_v61  ;;  %v2075_v0 = vmax.f32 %v1912_v60, 0.0 }
 0x35c   : > { %v2078_v1 = vmax.f32 %v2045_v63, 0.0  ;;  %2209 = vmatmul.f32.gmra.mxu2 %v2075_v0  ;;  %2339 = vmatmul.f32.gmra.mxu0 %v2075_v0 }
 0x35d   : > { %v1849_v26 = vpop.f32.mrf.mxu2 }
 0x35e   : > { %v1850_v3 = vadd.f32 %v1849_v26, %v3585_v7  ;;  %2277 = vmatmul.f32.gmra.mxu3 %v2078_v1  ;;  %2407 = vmatmul.f32.gmra.mxu1 %v2078_v1 }
 0x360   : > { %v1915_v5 = vadd.f32 %v1914_v4, %v1850_v3 }
 0x362   : > { %v2077_v6 = vmax.f32 %v1915_v5, 0.0 }
 0x363   : > { %v2363_v33 = vpop.f32.mrf.mxu1 }
 0x364   : > { %2212 = vmatmul.f32.gmra.mxu2 %v2077_v6  ;;  %2342 = vmatmul.f32.gmra.mxu0 %v2077_v6 }
 0x369   : > { %v2233_v2 = vpop.f32.mrf.mxu3  ;;  %v2298_v11 = vpop.f32.mrf.mxu0 }
 0x36a   : > { %v2299_v12 = vadd.f32 %v2298_v11, %v3618_v9 }
 0x36b   : > { %v2366_v13 = vpop.f32.mrf.mxu1 }
 0x36c   : > { %v2364_v39 = vadd.f32 %v2363_v33, %v2299_v12 }
 0x36e   : > { %v2412_v7 = vmax.f32 %v2364_v39, 0.0 }
 0x36f   : > { %v2168_v14 = vpop.f32.mrf.mxu2 }
 0x370   : > { %v2169_v15 = vadd.f32 %v2168_v14, %v3621_v40  ;;  %2560 = vmatmul.f32.vlgmr.msra.gmra.mxu1 %v2412_v7 }
 0x371   : > { %v2236_v16 = vpop.f32.mrf.mxu3  ;;  %v2301_v18 = vpop.f32.mrf.mxu0 }
 0x372   : > { %v2234_v19 = vadd.f32 %v2233_v2, %v2169_v15  ;;  %v2302_v20 = vadd.f32 %v2301_v18, %v3618_v9 }
 0x373   : > { %v2369_v21 = vpop.f32.mrf.mxu1 }
 0x374   : > { %v2411_v22 = vmax.f32 %v2234_v19, 0.0  ;;  %v2367_v23 = vadd.f32 %v2366_v13, %v2302_v20 }
 0x376   : > { %v2414_v24 = vmax.f32 %v2367_v23, 0.0  ;;  %2495 = vmatmul.f32.vlgmr.msra.gmra.mxu0 %v2411_v22 }
 0x377   : > { %v2171_v25 = vpop.f32.mrf.mxu2 }
 0x378   : > { %v2172_v51 = vadd.f32 %v2171_v25, %v3621_v40  ;;  %2563 = vmatmul.f32.vlgmr.msrb.gmra.mxu3 %v2414_v24 }
 0x379   : > { %v2239_v27 = vpop.f32.mrf.mxu3  ;;  %v2304_v28 = vpop.f32.mrf.mxu0 }
 0x37a   : > { %v2237_v29 = vadd.f32 %v2236_v16, %v2172_v51  ;;  %v2305_v58 = vadd.f32 %v2304_v28, %v3618_v9 }
 0x37b   : > { %v2372_v30 = vpop.f32.mrf.mxu1 }
 0x37c   : > { %v2413_v31 = vmax.f32 %v2237_v29, 0.0  ;;  %v2370_v32 = vadd.f32 %v2369_v21, %v2305_v58 }
 0x37e   : > { %v2416_v34 = vmax.f32 %v2370_v32, 0.0  ;;  %2498 = vmatmul.f32.vlgmr.msrb.gmra.mxu2 %v2413_v31 }
 0x37f   : > { %v2174_v35 = vpop.f32.mrf.mxu2 }
 0x380   : > { %v2175_v36 = vadd.f32 %v2174_v35, %v3621_v40  ;;  %2566 = vmatmul.f32.gmra.mxu3 %v2416_v34 }
 0x381   : > { %v2242_v37 = vpop.f32.mrf.mxu3  ;;  %v2307_v38 = vpop.f32.mrf.mxu0 }
 0x382   : > { %v2240_v41 = vadd.f32 %v2239_v27, %v2175_v36  ;;  %v2308_v42 = vadd.f32 %v2307_v38, %v3618_v9 }
 0x383   : > { %v2375_v43 = vpop.f32.mrf.mxu1 }
 0x384   : > { %v2373_v44 = vadd.f32 %v2372_v30, %v2308_v42  ;;  %v2415_v45 = vmax.f32 %v2240_v41, 0.0 }
 0x386   : > { %v2418_v46 = vmax.f32 %v2373_v44, 0.0  ;;  %2501 = vmatmul.f32.gmra.mxu2 %v2415_v45 }
 0x387   : > { %v2177_v47 = vpop.f32.mrf.mxu2 }
 0x388   : > { %v2178_v48 = vadd.f32 %v2177_v47, %v3621_v40  ;;  %2569 = vmatmul.f32.gmra.mxu3 %v2418_v46 }
 0x389   : > { %v2245_v49 = vpop.f32.mrf.mxu3  ;;  %v2310_v50 = vpop.f32.mrf.mxu0 }
 0x38a   : > { %v2243_v10 = vadd.f32 %v2242_v37, %v2178_v48  ;;  %v2311_v52 = vadd.f32 %v2310_v50, %v3618_v9 }
 0x38b   : > { %v2378_v53 = vpop.f32.mrf.mxu1 }
 0x38c   : > { %v2376_v54 = vadd.f32 %v2375_v43, %v2311_v52  ;;  %v2417_v17 = vmax.f32 %v2243_v10, 0.0 }
 0x38e   : > { %v2420_v55 = vmax.f32 %v2376_v54, 0.0  ;;  %2504 = vmatmul.f32.gmra.mxu2 %v2417_v17 }
 0x38f   : > { %v2180_v56 = vpop.f32.mrf.mxu2 }
 0x390   : > { %v2181_v57 = vadd.f32 %v2180_v56, %v3621_v40  ;;  %2572 = vmatmul.f32.gmra.mxu3 %v2420_v55 }
 0x391   : > { %v2248_v59 = vpop.f32.mrf.mxu3  ;;  %v2313_v60 = vpop.f32.mrf.mxu0 }
 0x392   : > { %v2246_v61 = vadd.f32 %v2245_v49, %v2181_v57  ;;  %v2314_v62 = vadd.f32 %v2313_v60, %v3618_v9 }
 0x393   : > { %v2381_v63 = vpop.f32.mrf.mxu1 }
 0x394   : > { %v2379_v0 = vadd.f32 %v2378_v53, %v2314_v62  ;;  %v2419_v1 = vmax.f32 %v2246_v61, 0.0 }
 0x396   : > { %v2422_v26 = vmax.f32 %v2379_v0, 0.0  ;;  %2507 = vmatmul.f32.gmra.mxu2 %v2419_v1 }
 0x397   : > { %v2183_v3 = vpop.f32.mrf.mxu2 }
 0x398   : > { %v2184_v4 = vadd.f32 %v2183_v3, %v3621_v40  ;;  %2575 = vmatmul.f32.gmra.mxu3 %v2422_v26 }
 0x399   : > { %v2251_v5 = vpop.f32.mrf.mxu3  ;;  %v2316_v6 = vpop.f32.mrf.mxu0 }
 0x39a   : > { %v2249_v33 = vadd.f32 %v2248_v59, %v2184_v4  ;;  %v2317_v8 = vadd.f32 %v2316_v6, %v3618_v9 }
 0x39b   : > { %v2384_v2 = vpop.f32.mrf.mxu1 }
 0x39c   : > { %v2382_v11 = vadd.f32 %v2381_v63, %v2317_v8  ;;  %v2421_v12 = vmax.f32 %v2249_v33, 0.0 }
 0x39e   : > { %v2424_v13 = vmax.f32 %v2382_v11, 0.0  ;;  %2510 = vmatmul.f32.gmra.mxu2 %v2421_v12 }
 0x39f   : > { %v2186_v39 = vpop.f32.mrf.mxu2 }
 0x3a0   : > { %v2187_v7 = vadd.f32 %v2186_v39, %v3621_v40  ;;  %2578 = vmatmul.f32.gmra.mxu3 %v2424_v13 }
 0x3a1   : > { %v2254_v14 = vpop.f32.mrf.mxu3  ;;  %v2319_v15 = vpop.f32.mrf.mxu0 }
 0x3a2   : > { %v2252_v16 = vadd.f32 %v2251_v5, %v2187_v7  ;;  %v2320_v18 = vadd.f32 %v2319_v15, %v3618_v9 }
 0x3a3   : > { %v2387_v19 = vpop.f32.mrf.mxu1 }
 0x3a4   : > { %v2385_v20 = vadd.f32 %v2384_v2, %v2320_v18  ;;  %v2423_v21 = vmax.f32 %v2252_v16, 0.0 }
 0x3a6   : > { %v2426_v22 = vmax.f32 %v2385_v20, 0.0  ;;  %2513 = vmatmul.f32.gmra.mxu2 %v2423_v21 }
 0x3a7   : > { %v2189_v23 = vpop.f32.mrf.mxu2 }
 0x3a8   : > { %v2190_v24 = vadd.f32 %v2189_v23, %v3621_v40  ;;  %2581 = vmatmul.f32.gmra.mxu3 %v2426_v22 }
 0x3a9   : > { %v2257_v25 = vpop.f32.mrf.mxu3  ;;  %v2322_v51 = vpop.f32.mrf.mxu0 }
 0x3aa   : > { %v2255_v27 = vadd.f32 %v2254_v14, %v2190_v24  ;;  %v2323_v28 = vadd.f32 %v2322_v51, %v3618_v9 }
 0x3ab   : > { %v2390_v29 = vpop.f32.mrf.mxu1 }
 0x3ac   : > { %v2425_v58 = vmax.f32 %v2255_v27, 0.0  ;;  %v2388_v30 = vadd.f32 %v2387_v19, %v2323_v28 }
 0x3ae   : > { %v2428_v31 = vmax.f32 %v2388_v30, 0.0  ;;  %2516 = vmatmul.f32.gmra.mxu2 %v2425_v58 }
 0x3af   : > { %v2192_v32 = vpop.f32.mrf.mxu2 }
 0x3b0   : > { %v2193_v34 = vadd.f32 %v2192_v32, %v3621_v40  ;;  %2584 = vmatmul.f32.gmra.mxu3 %v2428_v31 }
 0x3b1   : > { %v2260_v35 = vpop.f32.mrf.mxu3  ;;  %v2325_v36 = vpop.f32.mrf.mxu0 }
 0x3b2   : > { %v2258_v37 = vadd.f32 %v2257_v25, %v2193_v34  ;;  %v2326_v38 = vadd.f32 %v2325_v36, %v3618_v9 }
 0x3b3   : > { %v2393_v41 = vpop.f32.mrf.mxu1 }
 0x3b4   : > { %v2427_v42 = vmax.f32 %v2258_v37, 0.0  ;;  %v2391_v43 = vadd.f32 %v2390_v29, %v2326_v38 }
 0x3b6   : > { %v2430_v44 = vmax.f32 %v2391_v43, 0.0  ;;  %2519 = vmatmul.f32.gmra.mxu2 %v2427_v42 }
 0x3b7   : > { %v2195_v45 = vpop.f32.mrf.mxu2 }
 0x3b8   : > { %v2196_v46 = vadd.f32 %v2195_v45, %v3621_v40  ;;  %2587 = vmatmul.f32.gmra.mxu3 %v2430_v44 }
 0x3b9   : > { %v2263_v47 = vpop.f32.mrf.mxu3  ;;  %v2328_v48 = vpop.f32.mrf.mxu0 }
 0x3ba   : > { %v2261_v49 = vadd.f32 %v2260_v35, %v2196_v46  ;;  %v2329_v50 = vadd.f32 %v2328_v48, %v3618_v9  ;;  %v3655_v46 = vld [vmem:[#allocation11] ss:$0 sm:$0xff] }
 0x3bb   : > { %v2396_v10 = vpop.f32.mrf.mxu1 }
 0x3bc   : > { %v2429_v52 = vmax.f32 %v2261_v49, 0.0  ;;  %v2394_v53 = vadd.f32 %v2393_v41, %v2329_v50 }
 0x3be   : > { %v2432_v54 = vmax.f32 %v2394_v53, 0.0  ;;  %2522 = vmatmul.f32.gmra.mxu2 %v2429_v52 }
 0x3bf   : > { %v2198_v17 = vpop.f32.mrf.mxu2 }
 0x3c0   : > { %v2199_v55 = vadd.f32 %v2198_v17, %v3621_v40  ;;  %2590 = vmatmul.f32.gmra.mxu3 %v2432_v54 }
 0x3c1   : > { %v2266_v56 = vpop.f32.mrf.mxu3  ;;  %v2331_v57 = vpop.f32.mrf.mxu0 }
 0x3c2   : > { %v2264_v59 = vadd.f32 %v2263_v47, %v2199_v55  ;;  %v2332_v60 = vadd.f32 %v2331_v57, %v3618_v9 }
 0x3c3   : > { %v2399_v63 = vpop.f32.mrf.mxu1 }
 0x3c4   : > { %v2431_v61 = vmax.f32 %v2264_v59, 0.0  ;;  %v2397_v62 = vadd.f32 %v2396_v10, %v2332_v60 }
 0x3c6   : > { %v2434_v0 = vmax.f32 %v2397_v62, 0.0  ;;  %2525 = vmatmul.f32.gmra.mxu2 %v2431_v61 }
 0x3c7   : > { %v2201_v1 = vpop.f32.mrf.mxu2 }
 0x3c8   : > { %v2202_v26 = vadd.f32 %v2201_v1, %v3621_v40  ;;  %2593 = vmatmul.f32.gmra.mxu3 %v2434_v0 }
 0x3c9   : > { %v2334_v3 = vpop.f32.mrf.mxu0  ;;  %v2269_v6 = vpop.f32.mrf.mxu3 }
 0x3ca   : > { %v2267_v4 = vadd.f32 %v2266_v56, %v2202_v26  ;;  %v2335_v5 = vadd.f32 %v2334_v3, %v3618_v9 }
 0x3cb   : > { %v2402_v11 = vpop.f32.mrf.mxu1 }
 0x3cc   : > { %v2433_v33 = vmax.f32 %v2267_v4, 0.0  ;;  %v2400_v8 = vadd.f32 %v2399_v63, %v2335_v5 }
 0x3ce   : > { %v2436_v2 = vmax.f32 %v2400_v8, 0.0  ;;  %2528 = vmatmul.f32.gmra.mxu2 %v2433_v33 }
 0x3cf   : > { %v2204_v12 = vpop.f32.mrf.mxu2 }
 0x3d0   : > { %v2205_v13 = vadd.f32 %v2204_v12, %v3621_v40  ;;  %2596 = vmatmul.f32.gmra.mxu3 %v2436_v2 }
 0x3d1   : > { %v2337_v39 = vpop.f32.mrf.mxu0  ;;  %v2272_v18 = vpop.f32.mrf.mxu3 }
 0x3d2   : > { %v2270_v7 = vadd.f32 %v2269_v6, %v2205_v13  ;;  %v2338_v14 = vadd.f32 %v2337_v39, %v3618_v9 }
 0x3d3   : > { %v2405_v22 = vpop.f32.mrf.mxu1 }
 0x3d4   : > { %v2435_v15 = vmax.f32 %v2270_v7, 0.0  ;;  %v2403_v16 = vadd.f32 %v2402_v11, %v2338_v14 }
 0x3d6   : > { %v2438_v19 = vmax.f32 %v2403_v16, 0.0  ;;  %2531 = vmatmul.f32.gmra.mxu2 %v2435_v15 }
 0x3d7   : > { %v2207_v20 = vpop.f32.mrf.mxu2 }
 0x3d8   : > { %v2208_v21 = vadd.f32 %v2207_v20, %v3621_v40  ;;  %2599 = vmatmul.f32.gmra.mxu3 %v2438_v19 }
 0x3d9   : > { %v2340_v23 = vpop.f32.mrf.mxu0  ;;  %v2275_v29 = vpop.f32.mrf.mxu3 }
 0x3da   : > { %v2273_v24 = vadd.f32 %v2272_v18, %v2208_v21  ;;  %v2341_v25 = vadd.f32 %v2340_v23, %v3618_v9 }
 0x3db   : > { %v2408_v35 = vpop.f32.mrf.mxu1 }
 0x3dc   : > { %v2437_v51 = vmax.f32 %v2273_v24, 0.0  ;;  %v2406_v27 = vadd.f32 %v2405_v22, %v2341_v25 }
 0x3de   : > { %v2440_v28 = vmax.f32 %v2406_v27, 0.0  ;;  %2534 = vmatmul.f32.gmra.mxu2 %v2437_v51 }
 0x3df   : > { %v2210_v58 = vpop.f32.mrf.mxu2 }
 0x3e0   : > { %v2211_v30 = vadd.f32 %v2210_v58, %v3621_v40  ;;  %2602 = vmatmul.f32.gmra.mxu3 %v2440_v28 }
 0x3e1   : > { %v2343_v31 = vpop.f32.mrf.mxu0  ;;  %v2278_v43 = vpop.f32.mrf.mxu3 }
 0x3e2   : > { %v2276_v32 = vadd.f32 %v2275_v29, %v2211_v30  ;;  %v2344_v34 = vadd.f32 %v2343_v31, %v3618_v9 }
 0x3e4   : > { %v2439_v36 = vmax.f32 %v2276_v32, 0.0  ;;  %v2409_v37 = vadd.f32 %v2408_v35, %v2344_v34 }
 0x3e6   : > { %v2442_v38 = vmax.f32 %v2409_v37, 0.0  ;;  %2537 = vmatmul.f32.gmra.mxu2 %v2439_v36 }
 0x3e7   : > { %v2213_v41 = vpop.f32.mrf.mxu2 }
 0x3e8   : > { %v2214_v42 = vadd.f32 %v2213_v41, %v3621_v40  ;;  %2605 = vmatmul.f32.gmra.mxu3 %v2442_v38 }
 0x3ea   : > { %v2279_v44 = vadd.f32 %v2278_v43, %v2214_v42 }
 0x3ec   : > { %v2441_v45 = vmax.f32 %v2279_v44, 0.0 }
 0x3ed   : > { %v2561_v48 = vpop.f32.mrf.mxu1 }
 0x3ee   : > { %2540 = vmatmul.f32.gmra.mxu2 %v2441_v45 }
 0x3f3   : > { %v2496_v47 = vpop.f32.mrf.mxu0 }
 0x3f4   : > { %v2497_v9 = vadd.f32 %v3655_v46, %v2496_v47 }
 0x3f6   : > { %v2562_v49 = vadd.f32 %v2561_v48, %v2497_v9 }
 0x3f8   : > { %2609 = vst [vmem:[%s3660_s9] sm:$0xff] %v2562_v49 }
 0x3fb   : > { %v2564_v40 = vpop.f32.mrf.mxu3 }
 0x401   : > { %v2499_v50 = vpop.f32.mrf.mxu2 }
 0x402   : > { %v2500_v10 = vadd.f32 %v3655_v46, %v2499_v50 }
 0x403   : > { %v2567_v52 = vpop.f32.mrf.mxu3 }
 0x404   : > { %v2565_v53 = vadd.f32 %v2564_v40, %v2500_v10 }
 0x406   : > { %2610 = vst [vmem:[%s3660_s9 + $0x8] sm:$0xff] %v2565_v53 }
 0x409   : > { %v2502_v54 = vpop.f32.mrf.mxu2 }
 0x40a   : > { %v2503_v17 = vadd.f32 %v3655_v46, %v2502_v54 }
 0x40b   : > { %v2570_v55 = vpop.f32.mrf.mxu3 }
 0x40c   : > { %v2568_v56 = vadd.f32 %v2567_v52, %v2503_v17 }
 0x40e   : > { %2611 = vst [vmem:[%s3660_s9 + $0x10] sm:$0xff] %v2568_v56 }
 0x411   : > { %v2505_v57 = vpop.f32.mrf.mxu2 }
 0x412   : > { %v2506_v59 = vadd.f32 %v3655_v46, %v2505_v57 }
 0x413   : > { %v2573_v60 = vpop.f32.mrf.mxu3 }
 0x414   : > { %v2571_v61 = vadd.f32 %v2570_v55, %v2506_v59 }
 0x416   : > { %2612 = vst [vmem:[%s3660_s9 + $0x18] sm:$0xff] %v2571_v61 }
 0x419   : > { %v2508_v62 = vpop.f32.mrf.mxu2 }
 0x41a   : > { %v2509_v63 = vadd.f32 %v3655_v46, %v2508_v62 }
 0x41b   : > { %v2576_v0 = vpop.f32.mrf.mxu3 }
 0x41c   : > { %v2574_v1 = vadd.f32 %v2573_v60, %v2509_v63 }
 0x41e   : > { %2613 = vst [vmem:[%s3660_s9 + $0x20] sm:$0xff] %v2574_v1 }
 0x421   : > { %v2511_v26 = vpop.f32.mrf.mxu2 }
 0x422   : > { %v2512_v3 = vadd.f32 %v3655_v46, %v2511_v26 }
 0x423   : > { %v2579_v4 = vpop.f32.mrf.mxu3 }
 0x424   : > { %v2577_v5 = vadd.f32 %v2576_v0, %v2512_v3 }
 0x426   : > { %2614 = vst [vmem:[%s3660_s9 + $0x28] sm:$0xff] %v2577_v5 }
 0x429   : > { %v2514_v6 = vpop.f32.mrf.mxu2 }
 0x42a   : > { %v2515_v33 = vadd.f32 %v3655_v46, %v2514_v6 }
 0x42b   : > { %v2582_v8 = vpop.f32.mrf.mxu3 }
 0x42c   : > { %v2580_v2 = vadd.f32 %v2579_v4, %v2515_v33 }
 0x42e   : > { %2615 = vst [vmem:[%s3660_s9 + $0x30] sm:$0xff] %v2580_v2 }
 0x431   : > { %v2517_v11 = vpop.f32.mrf.mxu2 }
 0x432   : > { %v2518_v12 = vadd.f32 %v3655_v46, %v2517_v11 }
 0x433   : > { %v2585_v13 = vpop.f32.mrf.mxu3 }
 0x434   : > { %v2583_v39 = vadd.f32 %v2582_v8, %v2518_v12 }
 0x436   : > { %2616 = vst [vmem:[%s3660_s9 + $0x38] sm:$0xff] %v2583_v39 }
 0x439   : > { %v2520_v7 = vpop.f32.mrf.mxu2 }
 0x43a   : > { %v2521_v14 = vadd.f32 %v3655_v46, %v2520_v7 }
 0x43b   : > { %v2588_v15 = vpop.f32.mrf.mxu3 }
 0x43c   : > { %v2586_v16 = vadd.f32 %v2585_v13, %v2521_v14 }
 0x43e   : > { %2617 = vst [vmem:[%s3660_s9 + $0x40] sm:$0xff] %v2586_v16 }
 0x441   : > { %v2523_v18 = vpop.f32.mrf.mxu2 }
 0x442   : > { %v2524_v19 = vadd.f32 %v3655_v46, %v2523_v18 }
 0x443   : > { %v2591_v20 = vpop.f32.mrf.mxu3 }
 0x444   : > { %v2589_v21 = vadd.f32 %v2588_v15, %v2524_v19 }
 0x446   : > { %2618 = vst [vmem:[%s3660_s9 + $0x48] sm:$0xff] %v2589_v21 }
 0x449   : > { %v2526_v22 = vpop.f32.mrf.mxu2 }
 0x44a   : > { %v2527_v23 = vadd.f32 %v3655_v46, %v2526_v22 }
 0x44b   : > { %v2594_v24 = vpop.f32.mrf.mxu3 }
 0x44c   : > { %v2592_v25 = vadd.f32 %v2591_v20, %v2527_v23 }
 0x44e   : > { %2619 = vst [vmem:[%s3660_s9 + $0x50] sm:$0xff] %v2592_v25 }
 0x451   : > { %v2529_v51 = vpop.f32.mrf.mxu2 }
 0x452   : > { %v2530_v27 = vadd.f32 %v3655_v46, %v2529_v51 }
 0x453   : > { %v2597_v29 = vpop.f32.mrf.mxu3 }
 0x454   : > { %v2595_v28 = vadd.f32 %v2594_v24, %v2530_v27 }
 0x456   : > { %2620 = vst [vmem:[%s3660_s9 + $0x58] sm:$0xff] %v2595_v28 }
 0x459   : > { %v2532_v58 = vpop.f32.mrf.mxu2 }
 0x45a   : > { %v2533_v30 = vadd.f32 %v3655_v46, %v2532_v58 }
 0x45b   : > { %v2600_v32 = vpop.f32.mrf.mxu3 }
 0x45c   : > { %v2598_v31 = vadd.f32 %v2597_v29, %v2533_v30 }
 0x45e   : > { %2621 = vst [vmem:[%s3660_s9 + $0x60] sm:$0xff] %v2598_v31 }
 0x461   : > { %v2535_v34 = vpop.f32.mrf.mxu2 }
 0x462   : > { %v2536_v35 = vadd.f32 %v3655_v46, %v2535_v34 }
 0x463   : > { %v2603_v37 = vpop.f32.mrf.mxu3 }
 0x464   : > { %v2601_v36 = vadd.f32 %v2600_v32, %v2536_v35 }
 0x466   : > { %2622 = vst [vmem:[%s3660_s9 + $0x68] sm:$0xff] %v2601_v36 }
 0x469   : > { %v2538_v38 = vpop.f32.mrf.mxu2 }
 0x46a   : > { %v2539_v41 = vadd.f32 %v3655_v46, %v2538_v38 }
 0x46b   : > { %v2606_v45 = vpop.f32.mrf.mxu3 }
 0x46c   : > { %v2604_v42 = vadd.f32 %v2603_v37, %v2539_v41 }
 0x46e   : > { %2623 = vst [vmem:[%s3660_s9 + $0x70] sm:$0xff] %v2604_v42 }
 0x471   : > { %v2541_v43 = vpop.f32.mrf.mxu2 }
 0x472   : > { %v2542_v44 = vadd.f32 %v3655_v46, %v2541_v43 }
 0x474   : > { %v2607_v47 = vadd.f32 %v2606_v45, %v2542_v44 }
 0x476   : > { %2624 = vst [vmem:[%s3660_s9 + $0x78] sm:$0xff] %v2607_v47 }
 0x477   : > { %3168 = shalt.err (!%p3165_p8)
}
 0x478   : > { %s3233_s16 = smov 128   ;;  %s3234_s21 = smov 8  }
 0x479   : > { %2876 = dma.vmem_to_hbm [thread:$0]  (%p3313_p5), %s2639_s19, 2048, %s2641_s17, %s2626_s20, %s3233_s16, %s3233_s16, %s3234_s21  }
 0x47a PF: > { %p2913_p9 = scmp.ge.s32.totalorder %s3219_s27, 2  ;;  %s2655_s8 = sand.u32 1, %s3207_s24  }
 0x47b   : > { %s2656_s9 = scalar_lea.sflag [#allocation4], %s2655_s8 }
 0x47c   : > { %p2898_p10 = pnand %p2913_p9, %p3317_p6 }
 0x47e   : > { %p2899_p11 = pneg %p2898_p10 }
 0x480   : > { %3202 = dma.done.wait (%p2899_p11), %s2656_s9, 2048  }
 0x481   : > { %3204 = vsyncadd (%p2899_p11), %s2656_s9, 4294965248  ;;  %s3744_s14 = sld [smem:[#allocation19_spill]]  ;;  %p21_p12 = scmp.ge.s32.totalorder %s3300_s30, 6  }
 0x482   : > { %s3745_s24 = smov %s3211_s25  ;;  %s3746_s25 = smov %s3215_s26 }
 0x483   : > { %s3748_s27 = smov %s3300_s30  ;;  %23 = sbr.rel (!%p21_p12) target bundleno = 10 (0xa), region = 116 }
 0x487   : > { %s3747_s26 = smov %s3744_s14 }
 0x488   :  { %2662 = vsyncpa [#allocation3], 1 }
 0x489   :  { %2664 = vsyncpa [#allocation3 + $0x1], 1 }
 0x48a   :  { %2665 = vsyncpa [#allocation6], 1 }
 0x48b   :  { %2666 = vsyncpa [#allocation9], 1 }
 0x48c   :  { %2667 = vsyncpa [#allocation12], 1 }
 0x48d   :  { %2668 = vsyncpa [#allocation4], 1 }
 0x48e   :  { %2670 = vsyncpa [#allocation4 + $0x1], 1 }

</bundles_post_ra>
